<compile_context>
chip_gen: v6e
topology: v6e:2x2x1
jax: 0.10.0
libtpu: 0.0.40
codegen_flags: <defaults>
</compile_context>

<pallas_src>
import math

import numpy as np

import jax
import jax.numpy as jnp
from jax import lax
from jax.experimental import pallas as pl
from jax.experimental.pallas import tpu as pltpu


NEG = -1.0e30          # finite "-inf" used inside the recursion (avoids NaN from inf*0)
_PAD_LOGP = -1.0e9     # padding value for padded vocab / time entries (exp() == 0)


def _round_up(x, m):
    return ((x + m - 1) // m) * m


# ----------------------------------------------------------------------------
# Fused CTC-forward + label-prior kernel
# ----------------------------------------------------------------------------
def _ctc_kernel(lp_ref, ext_ref, prior_ext_ref, skip_ref, fmask_ref, lens_ref,
                nll_ref, prior_ref, onehot_ref, alpha_ref, lpx_ref):
    tb = pl.program_id(1)
    n_tb = pl.num_programs(1)
    BB, TT, Vp = lp_ref.shape
    Sp = alpha_ref.shape[1]

    @pl.when(tb == 0)
    def _init():
        alpha_ref[...] = jnp.full((BB, Sp), NEG, dtype=jnp.float32)
        prior_ref[...] = jnp.zeros_like(prior_ref)
        nll_ref[...] = jnp.zeros_like(nll_ref)
        # Build the one-hot gather matrix in VMEM scratch (once per batch block,
        # single-buffered; never touches HBM).
        ids = ext_ref[:, 0, :]                                     # (BB, Sp) int32
        v_iota = lax.broadcasted_iota(jnp.int32, (BB, Vp, Sp), 1)  # vocab on sublanes
        onehot_ref[...] = (ids[:, None, :] == v_iota).astype(jnp.float32)

    lp = lp_ref[...]                      # (BB, TT, Vp) raw log-probs (pre-prior)
    lens_v = lens_ref[:, 0, 0:1]          # (BB, 1) f32 input lengths
    t0 = tb * TT

    # ---- label-prior statistic: sum over valid frames of exp(log_probs) --------
    t_iota = lax.broadcasted_iota(jnp.int32, (BB, TT, 1), 1) + t0
    tmask = (t_iota.astype(jnp.float32) < lens_v[:, :, None]).astype(jnp.float32)
    e = jnp.exp(lp) * tmask                                        # (BB, TT, Vp)
    prior_ref[...] += jnp.sum(jnp.sum(e, axis=1, keepdims=True), axis=0,
                              keepdims=True)                       # (1, 1, Vp)

    # ---- gather extended-label log-probs with the MXU, prior correction folded -
    lp_ext = jnp.einsum("btv,bvs->bts", lp, onehot_ref[...],
                        preferred_element_type=jnp.float32)        # (BB, TT, Sp)
    lpx_ref[...] = lp_ext - prior_ext_ref[...]                     # broadcast (BB,1,Sp)

    skip_ok = skip_ref[:, 0, :] > 0.0                              # (BB, Sp) bool
    lane = lax.broadcasted_iota(jnp.int32, (BB, Sp), 1)
    m1 = lane >= 1
    init_row = jnp.where(lane < 2, 0.0, NEG)                       # (BB, Sp)

    # ---- alpha recursion: carried in registers across the unrolled TT loop -----
    a = alpha_ref[...]                                             # (BB, Sp)
    for lt in range(TT):
        a1 = jnp.where(m1, pltpu.roll(a, 1, axis=1), NEG)          # alpha[s-1]
        a2 = jnp.where(skip_ok, pltpu.roll(a, 2, axis=1), NEG)     # alpha[s-2]
        m = jnp.maximum(jnp.maximum(a, a1), a2)
        lse = m + jnp.log(jnp.exp(a - m) + jnp.exp(a1 - m) + jnp.exp(a2 - m))
        lp_t = lpx_ref[:, lt, :]                                   # (BB, Sp)
        step = lse + lp_t
        if lt == 0:
            # global t == 0 initialization: alpha[0,s] = lp_ext[0,s] for s in {0,1}
            step = jnp.where(tb == 0, init_row + lp_t, step)
        t_f = (t0 + lt).astype(jnp.float32)
        a = jnp.where(t_f < lens_v, step, a)                       # freeze past T_b
    alpha_ref[...] = a

    # ---- final readout: -logsumexp(alpha[S_b-1], alpha[S_b-2]) -----------------
    @pl.when(tb == n_tb - 1)
    def _final():
        fm = fmask_ref[:, 0, :]                                    # (BB, Sp)
        aw = jnp.where(fm > 0.0, a, NEG)
        mm = jnp.max(aw, axis=1, keepdims=True)
        tot = mm + jnp.log(jnp.sum(jnp.exp(aw - mm) * fm, axis=1, keepdims=True))
        nll_ref[...] = jnp.broadcast_to(-tot[:, :, None], nll_ref.shape)


def ctc_forward_pallas(log_probs_btv, targets, input_lengths, target_lengths,
                       *, blank=0, log_priors=None, prior_scaling_factor=0.0,
                       time_block=128):
    """Returns (per-sample negative log-likelihood (B,), per-class sum_exp prior (V,))."""
    lp = jnp.asarray(log_probs_btv, jnp.float32)
    B, T, V = lp.shape
    targets = jnp.asarray(targets, jnp.int32)
    input_lengths = jnp.asarray(input_lengths, jnp.int32)
    target_lengths = jnp.asarray(target_lengths, jnp.int32)
    Lmax = targets.shape[1]

    TT = int(time_block)
    Vp = _round_up(max(V, 128), 128)
    S = 2 * Lmax + 1
    Sp = _round_up(max(S, 128), 128)
    Tp = _round_up(max(T, TT), TT)

    # lane-dense padded log-probs (padding masked by time mask / never selected)
    lp_p = jnp.pad(lp, ((0, 0), (0, Tp - T), (0, Vp - V)), constant_values=_PAD_LOGP)

    # extended label sequence ext[b, s] = blank for even s, target otherwise
    s_idx = jnp.arange(Sp, dtype=jnp.int32)
    is_label = (s_idx % 2) == 1
    lab_pos = jnp.maximum((s_idx - 1) // 2, 0)
    lab_pos_c = jnp.minimum(lab_pos, Lmax - 1)
    gathered = jnp.take_along_axis(
        targets, jnp.broadcast_to(lab_pos_c[None, :], (B, Sp)), axis=1)
    valid_label = is_label[None, :] & (lab_pos[None, :] < target_lengths[:, None])
    ext = jnp.where(valid_label, gathered, blank).astype(jnp.int32)        # (B, Sp)

    # skip transition allowed from s-2: label position, not equal to label two back
    ext_m2 = jnp.concatenate(
        [jnp.full((B, 2), blank, jnp.int32), ext[:, :-2]], axis=1)
    skip_ok = ((s_idx[None, :] >= 2) & (ext != blank) & (ext != ext_m2)
               ).astype(jnp.float32)

    # final-state mask: positions 2*L_b and 2*L_b - 1
    s_last = 2 * target_lengths[:, None]
    fmask = ((s_idx[None, :] == s_last) |
             ((s_idx[None, :] == s_last - 1) & (target_lengths[:, None] >= 1))
             ).astype(jnp.float32)

    # prior correction gathered onto the extended labels
    if log_priors is not None and prior_scaling_factor > 0.0:
        lpri = jnp.asarray(log_priors, jnp.float32).reshape(-1)
        lpri_p = jnp.pad(lpri, (0, Vp - V))
        prior_ext = prior_scaling_factor * jnp.take(lpri_p, ext, axis=0)
    else:
        prior_ext = jnp.zeros((B, Sp), jnp.float32)

    lens3 = jnp.tile(input_lengths.astype(jnp.float32)[:, None, None], (1, 1, 128))
    ext3 = ext[:, None, :]
    skip3 = skip_ok[:, None, :]
    fmask3 = fmask[:, None, :]
    prior3 = prior_ext[:, None, :]

    # Split the batch so the "parallel" grid axis has length > 1 (v7x megacore).
    BB = B // 2 if (B % 2 == 0 and B >= 2) else B
    n_bb = B // BB
    n_tb = Tp // TT

    # explicit VMEM budget (review: v5e scoped default is 16 MiB, v7x physical 64 MiB)
    est_bytes = 4 * (2 * BB * TT * Vp + BB * Vp * Sp + BB * TT * Sp
                     + 16 * BB * Sp + 8 * BB * 128 + 4 * Vp)
    vmem_limit = int(min(max(2 * est_bytes, 32 * 1024 * 1024), 64 * 1024 * 1024))

    grid_spec = pltpu.PrefetchScalarGridSpec(
        num_scalar_prefetch=0,
        grid=(n_bb, n_tb),
        in_specs=[
            pl.BlockSpec((BB, TT, Vp), lambda bb, tb: (bb, tb, 0)),   # log-probs
            pl.BlockSpec((BB, 1, Sp), lambda bb, tb: (bb, 0, 0)),     # ext labels (int32)
            pl.BlockSpec((BB, 1, Sp), lambda bb, tb: (bb, 0, 0)),     # prior_ext
            pl.BlockSpec((BB, 1, Sp), lambda bb, tb: (bb, 0, 0)),     # skip_ok
            pl.BlockSpec((BB, 1, Sp), lambda bb, tb: (bb, 0, 0)),     # final mask
            pl.BlockSpec((BB, 1, 128), lambda bb, tb: (bb, 0, 0)),    # input lengths
        ],
        out_specs=[
            pl.BlockSpec((BB, 1, 128), lambda bb, tb: (bb, 0, 0)),    # per-sample nll
            pl.BlockSpec((1, 1, Vp), lambda bb, tb: (bb, 0, 0)),      # prior sum-exp
        ],
        scratch_shapes=[
            pltpu.VMEM((BB, Vp, Sp), jnp.float32),   # one-hot gather matrix
            pltpu.VMEM((BB, Sp), jnp.float32),       # alpha carry across time blocks
            pltpu.VMEM((BB, TT, Sp), jnp.float32),   # gathered log-probs for this block
        ],
    )

    nll_out, prior_out = pl.pallas_call(
        _ctc_kernel,
        out_shape=(
            jax.ShapeDtypeStruct((B, 1, 128), jnp.float32),
            jax.ShapeDtypeStruct((n_bb, 1, Vp), jnp.float32),
        ),
        grid_spec=grid_spec,
        compiler_params=pltpu.CompilerParams(
            dimension_semantics=("parallel", "arbitrary"),
            vmem_limit_bytes=vmem_limit),
    )(lp_p, ext3, prior3, skip3, fmask3, lens3)

    nll = nll_out[:, 0, 0]                                 # (B,)
    prior_sumexp = jnp.sum(prior_out[:, 0, :], axis=0)[:V]  # (V,)
    return nll, prior_sumexp


# ----------------------------------------------------------------------------
# Module wrapper mirroring the PyTorch CTCLossWithLabelPriors
# ----------------------------------------------------------------------------
class CTCLossWithLabelPriors:
    def __init__(self, prior_scaling_factor=0.0, blank=0, reduction="mean",
                 time_block=128):
        self.blank = blank
        self.reduction = reduction
        self.log_priors = None          # (V,)
        self.log_priors_sum = None      # (V,)
        self.num_samples = 0
        self.prior_scaling_factor = prior_scaling_factor
        self.time_block = time_block

    def encode_supervisions(self, targets, target_lengths, input_lengths):
        # bookkeeping only (the Pallas kernel is per-sample, so the reordering
        # k2 needs does not change the loss value)
        targets = np.asarray(targets)
        target_lengths = np.asarray(target_lengths)
        input_lengths = np.asarray(input_lengths)
        B = targets.shape[0]
        supervision_segments = np.stack(
            [np.arange(B), np.zeros(B), input_lengths], axis=1).astype(np.int32)
        indices = np.argsort(-supervision_segments[:, 2], kind="stable")
        supervision_segments = supervision_segments[indices]
        res = [targets[i, : int(target_lengths[i])].tolist() for i in indices]
        return supervision_segments, res, indices

    def forward(self, log_probs, targets, input_lengths, target_lengths,
                step_type="train"):
        # log_probs: (T, B, V) log-softmax outputs (same layout the torch module
        # receives before .permute(1, 0, 2)).
        _ = self.encode_supervisions(targets, target_lengths, input_lengths)
        lp_btv = jnp.transpose(jnp.asarray(log_probs, jnp.float32), (1, 0, 2))

        use_prior = (step_type == "train" and self.log_priors is not None
                     and self.prior_scaling_factor > 0.0)
        nll, prior_sumexp = ctc_forward_pallas(
            lp_btv, targets, input_lengths, target_lengths,
            blank=self.blank,
            log_priors=self.log_priors if use_prior else None,
            prior_scaling_factor=self.prior_scaling_factor if use_prior else 0.0,
            time_block=self.time_block)

        if step_type == "train":
            # prior statistics use the RAW (pre-correction) log-probs, like torch
            log_batch_priors_sum = jnp.log(prior_sumexp)
            self.num_samples += int(jnp.sum(jnp.asarray(input_lengths)))
            if self.log_priors_sum is None:
                self.log_priors_sum = log_batch_priors_sum
            else:
                self.log_priors_sum = jnp.logaddexp(self.log_priors_sum,
                                                    log_batch_priors_sum)

        tl = jnp.asarray(target_lengths, jnp.float32)
        if self.reduction == "mean":
            # k2.ctc_loss 'mean': per-sample loss / target_length, then batch mean.
            loss = jnp.mean(nll / tl)
        elif self.reduction == "sum":
            loss = jnp.sum(nll)
        else:
            loss = nll
        return loss

    __call__ = forward

    def on_train_epoch_end(self, train=None):
        # TODO(synk): accelerator.gather across hosts has no in-kernel equivalent;
        # this is the single-process reduction of the accumulated statistics.
        if self.log_priors_sum is None:
            return
        new_log_prior = self.log_priors_sum - jnp.log(
            jnp.asarray(float(self.num_samples), jnp.float32))
        prior_threshold = -12.0
        new_log_prior = jnp.where(new_log_prior < prior_threshold,
                                  prior_threshold, new_log_prior)
        self.log_priors = new_log_prior
        self.log_priors_sum = None
        self.num_samples = 0


# ----------------------------------------------------------------------------
# Pure numpy (float64) reference for validation
# ----------------------------------------------------------------------------
def _np_lse(vals):
    m = max(vals)
    return m + math.log(sum(math.exp(v - m) for v in vals))


def _ctc_reference(lp_btv, targets, input_lengths, target_lengths, blank,
                   log_priors=None, prior_scaling_factor=0.0):
    lp_btv = np.asarray(lp_btv, dtype=np.float64)
    B = lp_btv.shape[0]
    out = np.zeros(B, dtype=np.float64)
    for b in range(B):
        Tb, Lb = int(input_lengths[b]), int(target_lengths[b])
        lp = np.array(lp_btv[b, :Tb], dtype=np.float64)
        if log_priors is not None and prior_scaling_factor > 0:
            lp = lp - prior_scaling_factor * np.asarray(log_priors, np.float64)[None, :]
        ext = [blank]
        for i in range(Lb):
            ext.extend([int(targets[b, i]), blank])
        S = len(ext)
        alpha = np.full(S, NEG, dtype=np.float64)
        alpha[0] = lp[0, ext[0]]
        if S > 1:
            alpha[1] = lp[0, ext[1]]
        for t in range(1, Tb):
            new = np.empty(S, dtype=np.float64)
            for s in range(S):
                cands = [alpha[s]]
                if s >= 1:
                    cands.append(alpha[s - 1])
                if s >= 2 and ext[s] != blank and ext[s] != ext[s - 2]:
                    cands.append(alpha[s - 2])
                new[s] = _np_lse(cands) + lp[t, ext[s]]
            alpha = new
        fin = [alpha[S - 1]] + ([alpha[S - 2]] if S >= 2 else [])
        out[b] = -_np_lse(fin)
    return out


def _prior_logsumexp_reference(lp_btv, input_lengths):
    lp_btv = np.asarray(lp_btv, dtype=np.float64)
    rows = [lp_btv[b, :int(input_lengths[b])] for b in range(lp_btv.shape[0])]
    flat = np.concatenate(rows, axis=0)
    m = flat.max(axis=0)
    return m + np.log(np.exp(flat - m).sum(axis=0))


if __name__ == "__main__":
    B, T, V, Lmax = 2, 64, 32, 8
    blank = 0

    key = jax.random.PRNGKey(0)
    k1, k2 = jax.random.split(key, 2)
    logits = jax.random.normal(k1, (T, B, V), dtype=jnp.float32)
    log_probs = jax.nn.log_softmax(logits, axis=-1)          # (T, B, V)
    targets = jax.random.randint(k2, (B, Lmax), 1, V, dtype=jnp.int32)
    target_lengths = jnp.array([Lmax, 5], dtype=jnp.int32)
    input_lengths = jnp.array([T, 50], dtype=jnp.int32)

    # time_block=32 exercises the multi-time-block alpha carry AND the batch split
    ctc = CTCLossWithLabelPriors(prior_scaling_factor=0.3, blank=blank,
                                 reduction="mean", time_block=32)

    # ---- step 1: no priors installed yet ------------------------------------
    loss1 = ctc(log_probs, targets, input_lengths, target_lengths, step_type="train")
    loss1 = jax.block_until_ready(loss1)

    lp_np = np.asarray(jnp.transpose(log_probs, (1, 0, 2)), dtype=np.float64)
    tgt_np = np.asarray(targets)
    il_np = np.asarray(input_lengths)
    tl_np = np.asarray(target_lengths)

    nll_ref1 = _ctc_reference(lp_np, tgt_np, il_np, tl_np, blank)
    loss1_ref = float(np.mean(nll_ref1 / tl_np.astype(np.float64)))
    assert abs(float(loss1) - loss1_ref) <= 5e-3 * abs(loss1_ref) + 5e-2, \
        (float(loss1), loss1_ref)

    prior_ref = _prior_logsumexp_reference(lp_np, il_np)
    got_prior = np.asarray(ctc.log_priors_sum, dtype=np.float64)
    assert np.allclose(got_prior, prior_ref, rtol=1e-4, atol=1e-3)
    assert ctc.num_samples == int(il_np.sum())

    # ---- epoch end installs priors; step 2 exercises the prior-corrected path -
    ctc.on_train_epoch_end()
    assert ctc.log_priors is not None and ctc.log_priors_sum is None

    loss2 = ctc(log_probs, targets, input_lengths, target_lengths, step_type="train")
    loss2 = jax.block_until_ready(loss2)

    nll_ref2 = _ctc_reference(lp_np, tgt_np, il_np, tl_np, blank,
                              log_priors=np.asarray(ctc.log_priors, np.float64),
                              prior_scaling_factor=0.3)
    loss2_ref = float(np.mean(nll_ref2 / tl_np.astype(np.float64)))
    assert abs(float(loss2) - loss2_ref) <= 5e-3 * abs(loss2_ref) + 5e-2, \
        (float(loss2), loss2_ref)

    print("KERNEL_OK")
</pallas_src>

<mosaic_0001>
module attributes {stable_mosaic.version = 11 : i64} {
  func.func @_ctc_kernel(%arg0: i32, %arg1: i32, %arg2: memref<1x32x128xf32, #tpu.memory_space<vmem>>, %arg3: memref<1x1x128xi32, #tpu.memory_space<vmem>>, %arg4: memref<1x1x128xf32, #tpu.memory_space<vmem>>, %arg5: memref<1x1x128xf32, #tpu.memory_space<vmem>>, %arg6: memref<1x1x128xf32, #tpu.memory_space<vmem>>, %arg7: memref<1x1x128xf32, #tpu.memory_space<vmem>>, %arg8: memref<1x1x128xf32, #tpu.memory_space<vmem>>, %arg9: memref<1x1x128xf32, #tpu.memory_space<vmem>>, %arg10: memref<1x128x128xf32, #tpu.memory_space<vmem>>, %arg11: memref<1x128xf32, #tpu.memory_space<vmem>>, %arg12: memref<1x32x128xf32, #tpu.memory_space<vmem>>) attributes {dimension_semantics = [#tpu.dimension_semantics<parallel>, #tpu.dimension_semantics<arbitrary>], iteration_bounds = array<i64: 2, 2>, scalar_prefetch = 0 : i64, scratch_operands = 3 : i64, tpu.core_type = #tpu.core_type<tc>, window_params = [{transform_indices = @transform_0, window_bounds = array<i64: 1, 32, 128>}, {transform_indices = @transform_1, window_bounds = array<i64: 1, 1, 128>}, {transform_indices = @transform_2, window_bounds = array<i64: 1, 1, 128>}, {transform_indices = @transform_3, window_bounds = array<i64: 1, 1, 128>}, {transform_indices = @transform_4, window_bounds = array<i64: 1, 1, 128>}, {transform_indices = @transform_5, window_bounds = array<i64: 1, 1, 128>}, {transform_indices = @transform_6, window_bounds = array<i64: 1, 1, 128>}, {transform_indices = @transform_7, window_bounds = array<i64: 1, 1, 128>}]} {
    %c0_i32 = arith.constant 0 : i32
    %0 = arith.cmpi eq, %arg1, %c0_i32 : i32
    %1 = arith.extui %0 : i1 to i32
    %c0_i32_0 = arith.constant 0 : i32
    %2 = arith.cmpi ne, %1, %c0_i32_0 : i32
    scf.if %2 {
      %cst_232 = arith.constant -1.000000e+30 : f32
      %948 = vector.broadcast %cst_232 : f32 to vector<1x128xf32>
      %c0_233 = arith.constant 0 : index
      %c0_234 = arith.constant 0 : index
      %949 = vector.load %arg11[%c0_233, %c0_234] : memref<1x128xf32, #tpu.memory_space<vmem>>, vector<1x128xf32>
      tpu.vector_store %arg11[%c0_233, %c0_234], %948 {strides = array<i32>} : memref<1x128xf32, #tpu.memory_space<vmem>>, vector<1x128xf32>,
      %cst_235 = arith.constant 0.000000e+00 : f32
      %950 = vector.broadcast %cst_235 : f32 to vector<1x1x128xf32>
      %c0_236 = arith.constant 0 : index
      %c0_237 = arith.constant 0 : index
      %c0_238 = arith.constant 0 : index
      %951 = vector.load %arg9[%c0_236, %c0_237, %c0_238] : memref<1x1x128xf32, #tpu.memory_space<vmem>>, vector<1x1x128xf32>
      tpu.vector_store %arg9[%c0_236, %c0_237, %c0_238], %950 {strides = array<i32>} : memref<1x1x128xf32, #tpu.memory_space<vmem>>, vector<1x1x128xf32>,
      %cst_239 = arith.constant 0.000000e+00 : f32
      %952 = vector.broadcast %cst_239 : f32 to vector<1x1x128xf32>
      %c0_240 = arith.constant 0 : index
      %c0_241 = arith.constant 0 : index
      %c0_242 = arith.constant 0 : index
      %953 = vector.load %arg8[%c0_240, %c0_241, %c0_242] : memref<1x1x128xf32, #tpu.memory_space<vmem>>, vector<1x1x128xf32>
      tpu.vector_store %arg8[%c0_240, %c0_241, %c0_242], %952 {strides = array<i32>} : memref<1x1x128xf32, #tpu.memory_space<vmem>>, vector<1x1x128xf32>,
      %c0_243 = arith.constant 0 : index
      %c0_244 = arith.constant 0 : index
      %c0_245 = arith.constant 0 : index
      %954 = vector.load %arg3[%c0_243, %c0_244, %c0_245] : memref<1x1x128xi32, #tpu.memory_space<vmem>>, vector<1x1x128xi32>
      %955 = vector.shape_cast %954 : vector<1x1x128xi32> to vector<1x128xi32>
      %956 = tpu.iota {dimensions = array<i32: 1>} : vector<1x128x128xi32>
      %957 = vector.shape_cast %955 : vector<1x128xi32> to vector<1x1x128xi32>
      %958 = vector.broadcast %957 : vector<1x1x128xi32> to vector<1x128x128xi32>
      %959 = arith.cmpi eq, %958, %956 : vector<1x128x128xi32>
      %960 = arith.extui %959 : vector<1x128x128xi1> to vector<1x128x128xi32>
      %961 = arith.sitofp %960 : vector<1x128x128xi32> to vector<1x128x128xf32>
      %c0_246 = arith.constant 0 : index
      %c0_247 = arith.constant 0 : index
      %c0_248 = arith.constant 0 : index
      %962 = vector.load %arg10[%c0_246, %c0_247, %c0_248] : memref<1x128x128xf32, #tpu.memory_space<vmem>>, vector<1x128x128xf32>
      tpu.vector_store %arg10[%c0_246, %c0_247, %c0_248], %961 {strides = array<i32>} : memref<1x128x128xf32, #tpu.memory_space<vmem>>, vector<1x128x128xf32>,
    } else {
    }
    %c0 = arith.constant 0 : index
    %c0_1 = arith.constant 0 : index
    %c0_2 = arith.constant 0 : index
    %3 = vector.load %arg2[%c0, %c0_1, %c0_2] : memref<1x32x128xf32, #tpu.memory_space<vmem>>, vector<1x32x128xf32>
    %c0_3 = arith.constant 0 : index
    %c0_4 = arith.constant 0 : index
    %c0_5 = arith.constant 0 : index
    %4 = vector.load %arg7[%c0_3, %c0_4, %c0_5] : memref<1x1x128xf32, #tpu.memory_space<vmem>>, vector<1x1x1xf32>
    %5 = vector.shape_cast %4 : vector<1x1x1xf32> to vector<1x1xf32>
    %c32_i32 = arith.constant 32 : i32
    %6 = arith.muli %arg1, %c32_i32 : i32
    %7 = tpu.iota {dimensions = array<i32: 1>} : vector<1x32x1xi32>
    %8 = vector.broadcast %6 : i32 to vector<1x32x1xi32>
    %9 = arith.addi %7, %8 : vector<1x32x1xi32>
    %10 = arith.sitofp %9 : vector<1x32x1xi32> to vector<1x32x1xf32>
    %11 = vector.shape_cast %5 : vector<1x1xf32> to vector<1x1x1xf32>
    %12 = vector.broadcast %11 : vector<1x1x1xf32> to vector<1x32x1xf32>
    %13 = arith.cmpf olt, %10, %12 : vector<1x32x1xf32>
    %14 = arith.extui %13 : vector<1x32x1xi1> to vector<1x32x1xi32>
    %15 = arith.sitofp %14 : vector<1x32x1xi32> to vector<1x32x1xf32>
    %16 = math.exp %3 : vector<1x32x128xf32>
    %17 = vector.broadcast %15 : vector<1x32x1xf32> to vector<1x32x128xf32>
    %18 = arith.mulf %16, %17 : vector<1x32x128xf32>
    %c0_6 = arith.constant 0 : index
    %c0_7 = arith.constant 0 : index
    %c0_8 = arith.constant 0 : index
    %19 = vector.load %arg9[%c0_6, %c0_7, %c0_8] : memref<1x1x128xf32, #tpu.memory_space<vmem>>, vector<1x1x128xf32>
    %cst = arith.constant dense<0.000000e+00> : vector<1x128xf32>
    %20 = vector.multi_reduction <add>, %18, %cst [1] : vector<1x32x128xf32> to vector<1x128xf32>
    %21 = vector.shape_cast %20 : vector<1x128xf32> to vector<1x1x128xf32>
    %cst_9 = arith.constant dense<0.000000e+00> : vector<1x128xf32>
    %22 = vector.multi_reduction <add>, %21, %cst_9 [0] : vector<1x1x128xf32> to vector<1x128xf32>
    %23 = vector.shape_cast %22 : vector<1x128xf32> to vector<1x1x128xf32>
    %24 = arith.addf %19, %23 : vector<1x1x128xf32>
    %c0_10 = arith.constant 0 : index
    %c0_11 = arith.constant 0 : index
    %c0_12 = arith.constant 0 : index
    %25 = vector.load %arg9[%c0_10, %c0_11, %c0_12] : memref<1x1x128xf32, #tpu.memory_space<vmem>>, vector<1x1x128xf32>
    tpu.vector_store %arg9[%c0_10, %c0_11, %c0_12], %24 {strides = array<i32>} : memref<1x1x128xf32, #tpu.memory_space<vmem>>, vector<1x1x128xf32>,
    %c0_13 = arith.constant 0 : index
    %c0_14 = arith.constant 0 : index
    %c0_15 = arith.constant 0 : index
    %26 = vector.load %arg10[%c0_13, %c0_14, %c0_15] : memref<1x128x128xf32, #tpu.memory_space<vmem>>, vector<1x128x128xf32>
    "tpu.trace_start"() <{level = 10 : i32, message = "btv,bvs->bts"}> : () -> ()
    %cst_16 = arith.constant dense<0.000000e+00> : vector<1x32x128xf32>
    %27 = tpu.matmul %3, %26, %cst_16 {dimension_numbers = #tpu.dot_dimension_numbers<[2], [1], [1], [2], [0, 0, 0, 1, 1, 2], [0], [0]>} : vector<1x32x128xf32>, vector<1x128x128xf32>, vector<1x32x128xf32> -> vector<1x32x128xf32>
    "tpu.trace_stop"() : () -> ()
    %c0_17 = arith.constant 0 : index
    %c0_18 = arith.constant 0 : index
    %c0_19 = arith.constant 0 : index
    %28 = vector.load %arg4[%c0_17, %c0_18, %c0_19] : memref<1x1x128xf32, #tpu.memory_space<vmem>>, vector<1x1x128xf32>
    %29 = vector.broadcast %28 : vector<1x1x128xf32> to vector<1x32x128xf32>
    %30 = arith.subf %27, %29 : vector<1x32x128xf32>
    %c0_20 = arith.constant 0 : index
    %c0_21 = arith.constant 0 : index
    %c0_22 = arith.constant 0 : index
    %31 = vector.load %arg12[%c0_20, %c0_21, %c0_22] : memref<1x32x128xf32, #tpu.memory_space<vmem>>, vector<1x32x128xf32>
    tpu.vector_store %arg12[%c0_20, %c0_21, %c0_22], %30 {strides = array<i32>} : memref<1x32x128xf32, #tpu.memory_space<vmem>>, vector<1x32x128xf32>,
    %c0_23 = arith.constant 0 : index
    %c0_24 = arith.constant 0 : index
    %c0_25 = arith.constant 0 : index
    %32 = vector.load %arg5[%c0_23, %c0_24, %c0_25] : memref<1x1x128xf32, #tpu.memory_space<vmem>>, vector<1x1x128xf32>
    %33 = vector.shape_cast %32 : vector<1x1x128xf32> to vector<1x128xf32>
    %cst_26 = arith.constant 0.000000e+00 : f32
    %34 = vector.broadcast %cst_26 : f32 to vector<1x128xf32>
    %35 = arith.cmpf ogt, %33, %34 : vector<1x128xf32>
    %36 = tpu.iota {dimensions = array<i32: 1>} : vector<1x128xi32>
    %c1_i32 = arith.constant 1 : i32
    %37 = vector.broadcast %c1_i32 : i32 to vector<1x128xi32>
    %38 = arith.cmpi sge, %36, %37 : vector<1x128xi32>
    %c2_i32 = arith.constant 2 : i32
    %39 = vector.broadcast %c2_i32 : i32 to vector<1x128xi32>
    %40 = arith.cmpi slt, %36, %39 : vector<1x128xi32>
    %cst_27 = arith.constant 0.000000e+00 : f32
    %cst_28 = arith.constant -1.000000e+30 : f32
    %41 = vector.broadcast %cst_27 : f32 to vector<1x128xf32>
    %42 = vector.broadcast %cst_28 : f32 to vector<1x128xf32>
    %43 = arith.select %40, %41, %42 : vector<1x128xi1>, vector<1x128xf32>
    %c0_29 = arith.constant 0 : index
    %c0_30 = arith.constant 0 : index
    %44 = vector.load %arg11[%c0_29, %c0_30] : memref<1x128xf32, #tpu.memory_space<vmem>>, vector<1x128xf32>
    %c1_i32_31 = arith.constant 1 : i32
    %45 = tpu.dynamic_rotate %44 by %c1_i32_31 dim 1 : vector<1x128xf32>, i32 -> vector<1x128xf32>
    %cst_32 = arith.constant -1.000000e+30 : f32
    %46 = vector.broadcast %cst_32 : f32 to vector<1x128xf32>
    %47 = arith.select %38, %45, %46 : vector<1x128xi1>, vector<1x128xf32>
    %c2_i32_33 = arith.constant 2 : i32
    %48 = tpu.dynamic_rotate %44 by %c2_i32_33 dim 1 : vector<1x128xf32>, i32 -> vector<1x128xf32>
    %cst_34 = arith.constant -1.000000e+30 : f32
    %49 = vector.broadcast %cst_34 : f32 to vector<1x128xf32>
    %50 = arith.select %35, %48, %49 : vector<1x128xi1>, vector<1x128xf32>
    %51 = arith.maximumf %44, %47 : vector<1x128xf32>
    %52 = arith.maximumf %51, %50 : vector<1x128xf32>
    %53 = arith.subf %44, %52 : vector<1x128xf32>
    %54 = math.exp %53 : vector<1x128xf32>
    %55 = arith.subf %47, %52 : vector<1x128xf32>
    %56 = math.exp %55 : vector<1x128xf32>
    %57 = arith.addf %54, %56 : vector<1x128xf32>
    %58 = arith.subf %50, %52 : vector<1x128xf32>
    %59 = math.exp %58 : vector<1x128xf32>
    %60 = arith.addf %57, %59 : vector<1x128xf32>
    %61 = math.log %60 : vector<1x128xf32>
    %62 = arith.addf %52, %61 : vector<1x128xf32>
    %c0_35 = arith.constant 0 : index
    %c0_36 = arith.constant 0 : index
    %c0_37 = arith.constant 0 : index
    %63 = vector.load %arg12[%c0_35, %c0_36, %c0_37] : memref<1x32x128xf32, #tpu.memory_space<vmem>>, vector<1x1x128xf32>
    %64 = vector.shape_cast %63 : vector<1x1x128xf32> to vector<1x128xf32>
    %65 = arith.addf %62, %64 : vector<1x128xf32>
    %c0_i32_38 = arith.constant 0 : i32
    %66 = arith.cmpi eq, %arg1, %c0_i32_38 : i32
    %67 = arith.addf %43, %64 : vector<1x128xf32>
    %68 = arith.select %66, %67, %65 : vector<1x128xf32>
    %c0_i32_39 = arith.constant 0 : i32
    %69 = arith.addi %6, %c0_i32_39 : i32
    %70 = arith.sitofp %69 : i32 to f32
    %71 = vector.broadcast %70 : f32 to vector<1x1xf32>
    %72 = arith.cmpf olt, %71, %5 : vector<1x1xf32>
    %73 = vector.shape_cast %72 : vector<1x1xi1> to vector<1x1xi1>
    %74 = vector.broadcast %73 : vector<1x1xi1> to vector<1x128xi1>
    %75 = arith.select %74, %68, %44 : vector<1x128xi1>, vector<1x128xf32>
    %c1_i32_40 = arith.constant 1 : i32
    %76 = tpu.dynamic_rotate %75 by %c1_i32_40 dim 1 : vector<1x128xf32>, i32 -> vector<1x128xf32>
    %cst_41 = arith.constant -1.000000e+30 : f32
    %77 = vector.broadcast %cst_41 : f32 to vector<1x128xf32>
    %78 = arith.select %38, %76, %77 : vector<1x128xi1>, vector<1x128xf32>
    %c2_i32_42 = arith.constant 2 : i32
    %79 = tpu.dynamic_rotate %75 by %c2_i32_42 dim 1 : vector<1x128xf32>, i32 -> vector<1x128xf32>
    %cst_43 = arith.constant -1.000000e+30 : f32
    %80 = vector.broadcast %cst_43 : f32 to vector<1x128xf32>
    %81 = arith.select %35, %79, %80 : vector<1x128xi1>, vector<1x128xf32>
    %82 = arith.maximumf %75, %78 : vector<1x128xf32>
    %83 = arith.maximumf %82, %81 : vector<1x128xf32>
    %84 = arith.subf %75, %83 : vector<1x128xf32>
    %85 = math.exp %84 : vector<1x128xf32>
    %86 = arith.subf %78, %83 : vector<1x128xf32>
    %87 = math.exp %86 : vector<1x128xf32>
    %88 = arith.addf %85, %87 : vector<1x128xf32>
    %89 = arith.subf %81, %83 : vector<1x128xf32>
    %90 = math.exp %89 : vector<1x128xf32>
    %91 = arith.addf %88, %90 : vector<1x128xf32>
    %92 = math.log %91 : vector<1x128xf32>
    %93 = arith.addf %83, %92 : vector<1x128xf32>
    %c0_44 = arith.constant 0 : index
    %c1 = arith.constant 1 : index
    %c0_45 = arith.constant 0 : index
    %94 = vector.load %arg12[%c0_44, %c1, %c0_45] : memref<1x32x128xf32, #tpu.memory_space<vmem>>, vector<1x1x128xf32>
    %95 = vector.shape_cast %94 : vector<1x1x128xf32> to vector<1x128xf32>
    %96 = arith.addf %93, %95 : vector<1x128xf32>
    %c1_i32_46 = arith.constant 1 : i32
    %97 = arith.addi %6, %c1_i32_46 : i32
    %98 = arith.sitofp %97 : i32 to f32
    %99 = vector.broadcast %98 : f32 to vector<1x1xf32>
    %100 = arith.cmpf olt, %99, %5 : vector<1x1xf32>
    %101 = vector.shape_cast %100 : vector<1x1xi1> to vector<1x1xi1>
    %102 = vector.broadcast %101 : vector<1x1xi1> to vector<1x128xi1>
    %103 = arith.select %102, %96, %75 : vector<1x128xi1>, vector<1x128xf32>
    %c1_i32_47 = arith.constant 1 : i32
    %104 = tpu.dynamic_rotate %103 by %c1_i32_47 dim 1 : vector<1x128xf32>, i32 -> vector<1x128xf32>
    %cst_48 = arith.constant -1.000000e+30 : f32
    %105 = vector.broadcast %cst_48 : f32 to vector<1x128xf32>
    %106 = arith.select %38, %104, %105 : vector<1x128xi1>, vector<1x128xf32>
    %c2_i32_49 = arith.constant 2 : i32
    %107 = tpu.dynamic_rotate %103 by %c2_i32_49 dim 1 : vector<1x128xf32>, i32 -> vector<1x128xf32>
    %cst_50 = arith.constant -1.000000e+30 : f32
    %108 = vector.broadcast %cst_50 : f32 to vector<1x128xf32>
    %109 = arith.select %35, %107, %108 : vector<1x128xi1>, vector<1x128xf32>
    %110 = arith.maximumf %103, %106 : vector<1x128xf32>
    %111 = arith.maximumf %110, %109 : vector<1x128xf32>
    %112 = arith.subf %103, %111 : vector<1x128xf32>
    %113 = math.exp %112 : vector<1x128xf32>
    %114 = arith.subf %106, %111 : vector<1x128xf32>
    %115 = math.exp %114 : vector<1x128xf32>
    %116 = arith.addf %113, %115 : vector<1x128xf32>
    %117 = arith.subf %109, %111 : vector<1x128xf32>
    %118 = math.exp %117 : vector<1x128xf32>
    %119 = arith.addf %116, %118 : vector<1x128xf32>
    %120 = math.log %119 : vector<1x128xf32>
    %121 = arith.addf %111, %120 : vector<1x128xf32>
    %c0_51 = arith.constant 0 : index
    %c2 = arith.constant 2 : index
    %c0_52 = arith.constant 0 : index
    %122 = vector.load %arg12[%c0_51, %c2, %c0_52] : memref<1x32x128xf32, #tpu.memory_space<vmem>>, vector<1x1x128xf32>
    %123 = vector.shape_cast %122 : vector<1x1x128xf32> to vector<1x128xf32>
    %124 = arith.addf %121, %123 : vector<1x128xf32>
    %c2_i32_53 = arith.constant 2 : i32
    %125 = arith.addi %6, %c2_i32_53 : i32
    %126 = arith.sitofp %125 : i32 to f32
    %127 = vector.broadcast %126 : f32 to vector<1x1xf32>
    %128 = arith.cmpf olt, %127, %5 : vector<1x1xf32>
    %129 = vector.shape_cast %128 : vector<1x1xi1> to vector<1x1xi1>
    %130 = vector.broadcast %129 : vector<1x1xi1> to vector<1x128xi1>
    %131 = arith.select %130, %124, %103 : vector<1x128xi1>, vector<1x128xf32>
    %c1_i32_54 = arith.constant 1 : i32
    %132 = tpu.dynamic_rotate %131 by %c1_i32_54 dim 1 : vector<1x128xf32>, i32 -> vector<1x128xf32>
    %cst_55 = arith.constant -1.000000e+30 : f32
    %133 = vector.broadcast %cst_55 : f32 to vector<1x128xf32>
    %134 = arith.select %38, %132, %133 : vector<1x128xi1>, vector<1x128xf32>
    %c2_i32_56 = arith.constant 2 : i32
    %135 = tpu.dynamic_rotate %131 by %c2_i32_56 dim 1 : vector<1x128xf32>, i32 -> vector<1x128xf32>
    %cst_57 = arith.constant -1.000000e+30 : f32
    %136 = vector.broadcast %cst_57 : f32 to vector<1x128xf32>
    %137 = arith.select %35, %135, %136 : vector<1x128xi1>, vector<1x128xf32>
    %138 = arith.maximumf %131, %134 : vector<1x128xf32>
    %139 = arith.maximumf %138, %137 : vector<1x128xf32>
    %140 = arith.subf %131, %139 : vector<1x128xf32>
    %141 = math.exp %140 : vector<1x128xf32>
    %142 = arith.subf %134, %139 : vector<1x128xf32>
    %143 = math.exp %142 : vector<1x128xf32>
    %144 = arith.addf %141, %143 : vector<1x128xf32>
    %145 = arith.subf %137, %139 : vector<1x128xf32>
    %146 = math.exp %145 : vector<1x128xf32>
    %147 = arith.addf %144, %146 : vector<1x128xf32>
    %148 = math.log %147 : vector<1x128xf32>
    %149 = arith.addf %139, %148 : vector<1x128xf32>
    %c0_58 = arith.constant 0 : index
    %c3 = arith.constant 3 : index
    %c0_59 = arith.constant 0 : index
    %150 = vector.load %arg12[%c0_58, %c3, %c0_59] : memref<1x32x128xf32, #tpu.memory_space<vmem>>, vector<1x1x128xf32>
    %151 = vector.shape_cast %150 : vector<1x1x128xf32> to vector<1x128xf32>
    %152 = arith.addf %149, %151 : vector<1x128xf32>
    %c3_i32 = arith.constant 3 : i32
    %153 = arith.addi %6, %c3_i32 : i32
    %154 = arith.sitofp %153 : i32 to f32
    %155 = vector.broadcast %154 : f32 to vector<1x1xf32>
    %156 = arith.cmpf olt, %155, %5 : vector<1x1xf32>
    %157 = vector.shape_cast %156 : vector<1x1xi1> to vector<1x1xi1>
    %158 = vector.broadcast %157 : vector<1x1xi1> to vector<1x128xi1>
    %159 = arith.select %158, %152, %131 : vector<1x128xi1>, vector<1x128xf32>
    %c1_i32_60 = arith.constant 1 : i32
    %160 = tpu.dynamic_rotate %159 by %c1_i32_60 dim 1 : vector<1x128xf32>, i32 -> vector<1x128xf32>
    %cst_61 = arith.constant -1.000000e+30 : f32
    %161 = vector.broadcast %cst_61 : f32 to vector<1x128xf32>
    %162 = arith.select %38, %160, %161 : vector<1x128xi1>, vector<1x128xf32>
    %c2_i32_62 = arith.constant 2 : i32
    %163 = tpu.dynamic_rotate %159 by %c2_i32_62 dim 1 : vector<1x128xf32>, i32 -> vector<1x128xf32>
    %cst_63 = arith.constant -1.000000e+30 : f32
    %164 = vector.broadcast %cst_63 : f32 to vector<1x128xf32>
    %165 = arith.select %35, %163, %164 : vector<1x128xi1>, vector<1x128xf32>
    %166 = arith.maximumf %159, %162 : vector<1x128xf32>
    %167 = arith.maximumf %166, %165 : vector<1x128xf32>
    %168 = arith.subf %159, %167 : vector<1x128xf32>
    %169 = math.exp %168 : vector<1x128xf32>
    %170 = arith.subf %162, %167 : vector<1x128xf32>
    %171 = math.exp %170 : vector<1x128xf32>
    %172 = arith.addf %169, %171 : vector<1x128xf32>
    %173 = arith.subf %165, %167 : vector<1x128xf32>
    %174 = math.exp %173 : vector<1x128xf32>
    %175 = arith.addf %172, %174 : vector<1x128xf32>
    %176 = math.log %175 : vector<1x128xf32>
    %177 = arith.addf %167, %176 : vector<1x128xf32>
    %c0_64 = arith.constant 0 : index
    %c4 = arith.constant 4 : index
    %c0_65 = arith.constant 0 : index
    %178 = vector.load %arg12[%c0_64, %c4, %c0_65] : memref<1x32x128xf32, #tpu.memory_space<vmem>>, vector<1x1x128xf32>
    %179 = vector.shape_cast %178 : vector<1x1x128xf32> to vector<1x128xf32>
    %180 = arith.addf %177, %179 : vector<1x128xf32>
    %c4_i32 = arith.constant 4 : i32
    %181 = arith.addi %6, %c4_i32 : i32
    %182 = arith.sitofp %181 : i32 to f32
    %183 = vector.broadcast %182 : f32 to vector<1x1xf32>
    %184 = arith.cmpf olt, %183, %5 : vector<1x1xf32>
    %185 = vector.shape_cast %184 : vector<1x1xi1> to vector<1x1xi1>
    %186 = vector.broadcast %185 : vector<1x1xi1> to vector<1x128xi1>
    %187 = arith.select %186, %180, %159 : vector<1x128xi1>, vector<1x128xf32>
    %c1_i32_66 = arith.constant 1 : i32
    %188 = tpu.dynamic_rotate %187 by %c1_i32_66 dim 1 : vector<1x128xf32>, i32 -> vector<1x128xf32>
    %cst_67 = arith.constant -1.000000e+30 : f32
    %189 = vector.broadcast %cst_67 : f32 to vector<1x128xf32>
    %190 = arith.select %38, %188, %189 : vector<1x128xi1>, vector<1x128xf32>
    %c2_i32_68 = arith.constant 2 : i32
    %191 = tpu.dynamic_rotate %187 by %c2_i32_68 dim 1 : vector<1x128xf32>, i32 -> vector<1x128xf32>
    %cst_69 = arith.constant -1.000000e+30 : f32
    %192 = vector.broadcast %cst_69 : f32 to vector<1x128xf32>
    %193 = arith.select %35, %191, %192 : vector<1x128xi1>, vector<1x128xf32>
    %194 = arith.maximumf %187, %190 : vector<1x128xf32>
    %195 = arith.maximumf %194, %193 : vector<1x128xf32>
    %196 = arith.subf %187, %195 : vector<1x128xf32>
    %197 = math.exp %196 : vector<1x128xf32>
    %198 = arith.subf %190, %195 : vector<1x128xf32>
    %199 = math.exp %198 : vector<1x128xf32>
    %200 = arith.addf %197, %199 : vector<1x128xf32>
    %201 = arith.subf %193, %195 : vector<1x128xf32>
    %202 = math.exp %201 : vector<1x128xf32>
    %203 = arith.addf %200, %202 : vector<1x128xf32>
    %204 = math.log %203 : vector<1x128xf32>
    %205 = arith.addf %195, %204 : vector<1x128xf32>
    %c0_70 = arith.constant 0 : index
    %c5 = arith.constant 5 : index
    %c0_71 = arith.constant 0 : index
    %206 = vector.load %arg12[%c0_70, %c5, %c0_71] : memref<1x32x128xf32, #tpu.memory_space<vmem>>, vector<1x1x128xf32>
    %207 = vector.shape_cast %206 : vector<1x1x128xf32> to vector<1x128xf32>
    %208 = arith.addf %205, %207 : vector<1x128xf32>
    %c5_i32 = arith.constant 5 : i32
    %209 = arith.addi %6, %c5_i32 : i32
    %210 = arith.sitofp %209 : i32 to f32
    %211 = vector.broadcast %210 : f32 to vector<1x1xf32>
    %212 = arith.cmpf olt, %211, %5 : vector<1x1xf32>
    %213 = vector.shape_cast %212 : vector<1x1xi1> to vector<1x1xi1>
    %214 = vector.broadcast %213 : vector<1x1xi1> to vector<1x128xi1>
    %215 = arith.select %214, %208, %187 : vector<1x128xi1>, vector<1x128xf32>
    %c1_i32_72 = arith.constant 1 : i32
    %216 = tpu.dynamic_rotate %215 by %c1_i32_72 dim 1 : vector<1x128xf32>, i32 -> vector<1x128xf32>
    %cst_73 = arith.constant -1.000000e+30 : f32
    %217 = vector.broadcast %cst_73 : f32 to vector<1x128xf32>
    %218 = arith.select %38, %216, %217 : vector<1x128xi1>, vector<1x128xf32>
    %c2_i32_74 = arith.constant 2 : i32
    %219 = tpu.dynamic_rotate %215 by %c2_i32_74 dim 1 : vector<1x128xf32>, i32 -> vector<1x128xf32>
    %cst_75 = arith.constant -1.000000e+30 : f32
    %220 = vector.broadcast %cst_75 : f32 to vector<1x128xf32>
    %221 = arith.select %35, %219, %220 : vector<1x128xi1>, vector<1x128xf32>
    %222 = arith.maximumf %215, %218 : vector<1x128xf32>
    %223 = arith.maximumf %222, %221 : vector<1x128xf32>
    %224 = arith.subf %215, %223 : vector<1x128xf32>
    %225 = math.exp %224 : vector<1x128xf32>
    %226 = arith.subf %218, %223 : vector<1x128xf32>
    %227 = math.exp %226 : vector<1x128xf32>
    %228 = arith.addf %225, %227 : vector<1x128xf32>
    %229 = arith.subf %221, %223 : vector<1x128xf32>
    %230 = math.exp %229 : vector<1x128xf32>
    %231 = arith.addf %228, %230 : vector<1x128xf32>
    %232 = math.log %231 : vector<1x128xf32>
    %233 = arith.addf %223, %232 : vector<1x128xf32>
    %c0_76 = arith.constant 0 : index
    %c6 = arith.constant 6 : index
    %c0_77 = arith.constant 0 : index
    %234 = vector.load %arg12[%c0_76, %c6, %c0_77] : memref<1x32x128xf32, #tpu.memory_space<vmem>>, vector<1x1x128xf32>
    %235 = vector.shape_cast %234 : vector<1x1x128xf32> to vector<1x128xf32>
    %236 = arith.addf %233, %235 : vector<1x128xf32>
    %c6_i32 = arith.constant 6 : i32
    %237 = arith.addi %6, %c6_i32 : i32
    %238 = arith.sitofp %237 : i32 to f32
    %239 = vector.broadcast %238 : f32 to vector<1x1xf32>
    %240 = arith.cmpf olt, %239, %5 : vector<1x1xf32>
    %241 = vector.shape_cast %240 : vector<1x1xi1> to vector<1x1xi1>
    %242 = vector.broadcast %241 : vector<1x1xi1> to vector<1x128xi1>
    %243 = arith.select %242, %236, %215 : vector<1x128xi1>, vector<1x128xf32>
    %c1_i32_78 = arith.constant 1 : i32
    %244 = tpu.dynamic_rotate %243 by %c1_i32_78 dim 1 : vector<1x128xf32>, i32 -> vector<1x128xf32>
    %cst_79 = arith.constant -1.000000e+30 : f32
    %245 = vector.broadcast %cst_79 : f32 to vector<1x128xf32>
    %246 = arith.select %38, %244, %245 : vector<1x128xi1>, vector<1x128xf32>
    %c2_i32_80 = arith.constant 2 : i32
    %247 = tpu.dynamic_rotate %243 by %c2_i32_80 dim 1 : vector<1x128xf32>, i32 -> vector<1x128xf32>
    %cst_81 = arith.constant -1.000000e+30 : f32
    %248 = vector.broadcast %cst_81 : f32 to vector<1x128xf32>
    %249 = arith.select %35, %247, %248 : vector<1x128xi1>, vector<1x128xf32>
    %250 = arith.maximumf %243, %246 : vector<1x128xf32>
    %251 = arith.maximumf %250, %249 : vector<1x128xf32>
    %252 = arith.subf %243, %251 : vector<1x128xf32>
    %253 = math.exp %252 : vector<1x128xf32>
    %254 = arith.subf %246, %251 : vector<1x128xf32>
    %255 = math.exp %254 : vector<1x128xf32>
    %256 = arith.addf %253, %255 : vector<1x128xf32>
    %257 = arith.subf %249, %251 : vector<1x128xf32>
    %258 = math.exp %257 : vector<1x128xf32>
    %259 = arith.addf %256, %258 : vector<1x128xf32>
    %260 = math.log %259 : vector<1x128xf32>
    %261 = arith.addf %251, %260 : vector<1x128xf32>
    %c0_82 = arith.constant 0 : index
    %c7 = arith.constant 7 : index
    %c0_83 = arith.constant 0 : index
    %262 = vector.load %arg12[%c0_82, %c7, %c0_83] : memref<1x32x128xf32, #tpu.memory_space<vmem>>, vector<1x1x128xf32>
    %263 = vector.shape_cast %262 : vector<1x1x128xf32> to vector<1x128xf32>
    %264 = arith.addf %261, %263 : vector<1x128xf32>
    %c7_i32 = arith.constant 7 : i32
    %265 = arith.addi %6, %c7_i32 : i32
    %266 = arith.sitofp %265 : i32 to f32
    %267 = vector.broadcast %266 : f32 to vector<1x1xf32>
    %268 = arith.cmpf olt, %267, %5 : vector<1x1xf32>
    %269 = vector.shape_cast %268 : vector<1x1xi1> to vector<1x1xi1>
    %270 = vector.broadcast %269 : vector<1x1xi1> to vector<1x128xi1>
    %271 = arith.select %270, %264, %243 : vector<1x128xi1>, vector<1x128xf32>
    %c1_i32_84 = arith.constant 1 : i32
    %272 = tpu.dynamic_rotate %271 by %c1_i32_84 dim 1 : vector<1x128xf32>, i32 -> vector<1x128xf32>
    %cst_85 = arith.constant -1.000000e+30 : f32
    %273 = vector.broadcast %cst_85 : f32 to vector<1x128xf32>
    %274 = arith.select %38, %272, %273 : vector<1x128xi1>, vector<1x128xf32>
    %c2_i32_86 = arith.constant 2 : i32
    %275 = tpu.dynamic_rotate %271 by %c2_i32_86 dim 1 : vector<1x128xf32>, i32 -> vector<1x128xf32>
    %cst_87 = arith.constant -1.000000e+30 : f32
    %276 = vector.broadcast %cst_87 : f32 to vector<1x128xf32>
    %277 = arith.select %35, %275, %276 : vector<1x128xi1>, vector<1x128xf32>
    %278 = arith.maximumf %271, %274 : vector<1x128xf32>
    %279 = arith.maximumf %278, %277 : vector<1x128xf32>
    %280 = arith.subf %271, %279 : vector<1x128xf32>
    %281 = math.exp %280 : vector<1x128xf32>
    %282 = arith.subf %274, %279 : vector<1x128xf32>
    %283 = math.exp %282 : vector<1x128xf32>
    %284 = arith.addf %281, %283 : vector<1x128xf32>
    %285 = arith.subf %277, %279 : vector<1x128xf32>
    %286 = math.exp %285 : vector<1x128xf32>
    %287 = arith.addf %284, %286 : vector<1x128xf32>
    %288 = math.log %287 : vector<1x128xf32>
    %289 = arith.addf %279, %288 : vector<1x128xf32>
    %c0_88 = arith.constant 0 : index
    %c8 = arith.constant 8 : index
    %c0_89 = arith.constant 0 : index
    %290 = vector.load %arg12[%c0_88, %c8, %c0_89] : memref<1x32x128xf32, #tpu.memory_space<vmem>>, vector<1x1x128xf32>
    %291 = vector.shape_cast %290 : vector<1x1x128xf32> to vector<1x128xf32>
    %292 = arith.addf %289, %291 : vector<1x128xf32>
    %c8_i32 = arith.constant 8 : i32
    %293 = arith.addi %6, %c8_i32 : i32
    %294 = arith.sitofp %293 : i32 to f32
    %295 = vector.broadcast %294 : f32 to vector<1x1xf32>
    %296 = arith.cmpf olt, %295, %5 : vector<1x1xf32>
    %297 = vector.shape_cast %296 : vector<1x1xi1> to vector<1x1xi1>
    %298 = vector.broadcast %297 : vector<1x1xi1> to vector<1x128xi1>
    %299 = arith.select %298, %292, %271 : vector<1x128xi1>, vector<1x128xf32>
    %c1_i32_90 = arith.constant 1 : i32
    %300 = tpu.dynamic_rotate %299 by %c1_i32_90 dim 1 : vector<1x128xf32>, i32 -> vector<1x128xf32>
    %cst_91 = arith.constant -1.000000e+30 : f32
    %301 = vector.broadcast %cst_91 : f32 to vector<1x128xf32>
    %302 = arith.select %38, %300, %301 : vector<1x128xi1>, vector<1x128xf32>
    %c2_i32_92 = arith.constant 2 : i32
    %303 = tpu.dynamic_rotate %299 by %c2_i32_92 dim 1 : vector<1x128xf32>, i32 -> vector<1x128xf32>
    %cst_93 = arith.constant -1.000000e+30 : f32
    %304 = vector.broadcast %cst_93 : f32 to vector<1x128xf32>
    %305 = arith.select %35, %303, %304 : vector<1x128xi1>, vector<1x128xf32>
    %306 = arith.maximumf %299, %302 : vector<1x128xf32>
    %307 = arith.maximumf %306, %305 : vector<1x128xf32>
    %308 = arith.subf %299, %307 : vector<1x128xf32>
    %309 = math.exp %308 : vector<1x128xf32>
    %310 = arith.subf %302, %307 : vector<1x128xf32>
    %311 = math.exp %310 : vector<1x128xf32>
    %312 = arith.addf %309, %311 : vector<1x128xf32>
    %313 = arith.subf %305, %307 : vector<1x128xf32>
    %314 = math.exp %313 : vector<1x128xf32>
    %315 = arith.addf %312, %314 : vector<1x128xf32>
    %316 = math.log %315 : vector<1x128xf32>
    %317 = arith.addf %307, %316 : vector<1x128xf32>
    %c0_94 = arith.constant 0 : index
    %c9 = arith.constant 9 : index
    %c0_95 = arith.constant 0 : index
    %318 = vector.load %arg12[%c0_94, %c9, %c0_95] : memref<1x32x128xf32, #tpu.memory_space<vmem>>, vector<1x1x128xf32>
    %319 = vector.shape_cast %318 : vector<1x1x128xf32> to vector<1x128xf32>
    %320 = arith.addf %317, %319 : vector<1x128xf32>
    %c9_i32 = arith.constant 9 : i32
    %321 = arith.addi %6, %c9_i32 : i32
    %322 = arith.sitofp %321 : i32 to f32
    %323 = vector.broadcast %322 : f32 to vector<1x1xf32>
    %324 = arith.cmpf olt, %323, %5 : vector<1x1xf32>
    %325 = vector.shape_cast %324 : vector<1x1xi1> to vector<1x1xi1>
    %326 = vector.broadcast %325 : vector<1x1xi1> to vector<1x128xi1>
    %327 = arith.select %326, %320, %299 : vector<1x128xi1>, vector<1x128xf32>
    %c1_i32_96 = arith.constant 1 : i32
    %328 = tpu.dynamic_rotate %327 by %c1_i32_96 dim 1 : vector<1x128xf32>, i32 -> vector<1x128xf32>
    %cst_97 = arith.constant -1.000000e+30 : f32
    %329 = vector.broadcast %cst_97 : f32 to vector<1x128xf32>
    %330 = arith.select %38, %328, %329 : vector<1x128xi1>, vector<1x128xf32>
    %c2_i32_98 = arith.constant 2 : i32
    %331 = tpu.dynamic_rotate %327 by %c2_i32_98 dim 1 : vector<1x128xf32>, i32 -> vector<1x128xf32>
    %cst_99 = arith.constant -1.000000e+30 : f32
    %332 = vector.broadcast %cst_99 : f32 to vector<1x128xf32>
    %333 = arith.select %35, %331, %332 : vector<1x128xi1>, vector<1x128xf32>
    %334 = arith.maximumf %327, %330 : vector<1x128xf32>
    %335 = arith.maximumf %334, %333 : vector<1x128xf32>
    %336 = arith.subf %327, %335 : vector<1x128xf32>
    %337 = math.exp %336 : vector<1x128xf32>
    %338 = arith.subf %330, %335 : vector<1x128xf32>
    %339 = math.exp %338 : vector<1x128xf32>
    %340 = arith.addf %337, %339 : vector<1x128xf32>
    %341 = arith.subf %333, %335 : vector<1x128xf32>
    %342 = math.exp %341 : vector<1x128xf32>
    %343 = arith.addf %340, %342 : vector<1x128xf32>
    %344 = math.log %343 : vector<1x128xf32>
    %345 = arith.addf %335, %344 : vector<1x128xf32>
    %c0_100 = arith.constant 0 : index
    %c10 = arith.constant 10 : index
    %c0_101 = arith.constant 0 : index
    %346 = vector.load %arg12[%c0_100, %c10, %c0_101] : memref<1x32x128xf32, #tpu.memory_space<vmem>>, vector<1x1x128xf32>
    %347 = vector.shape_cast %346 : vector<1x1x128xf32> to vector<1x128xf32>
    %348 = arith.addf %345, %347 : vector<1x128xf32>
    %c10_i32 = arith.constant 10 : i32
    %349 = arith.addi %6, %c10_i32 : i32
    %350 = arith.sitofp %349 : i32 to f32
    %351 = vector.broadcast %350 : f32 to vector<1x1xf32>
    %352 = arith.cmpf olt, %351, %5 : vector<1x1xf32>
    %353 = vector.shape_cast %352 : vector<1x1xi1> to vector<1x1xi1>
    %354 = vector.broadcast %353 : vector<1x1xi1> to vector<1x128xi1>
    %355 = arith.select %354, %348, %327 : vector<1x128xi1>, vector<1x128xf32>
    %c1_i32_102 = arith.constant 1 : i32
    %356 = tpu.dynamic_rotate %355 by %c1_i32_102 dim 1 : vector<1x128xf32>, i32 -> vector<1x128xf32>
    %cst_103 = arith.constant -1.000000e+30 : f32
    %357 = vector.broadcast %cst_103 : f32 to vector<1x128xf32>
    %358 = arith.select %38, %356, %357 : vector<1x128xi1>, vector<1x128xf32>
    %c2_i32_104 = arith.constant 2 : i32
    %359 = tpu.dynamic_rotate %355 by %c2_i32_104 dim 1 : vector<1x128xf32>, i32 -> vector<1x128xf32>
    %cst_105 = arith.constant -1.000000e+30 : f32
    %360 = vector.broadcast %cst_105 : f32 to vector<1x128xf32>
    %361 = arith.select %35, %359, %360 : vector<1x128xi1>, vector<1x128xf32>
    %362 = arith.maximumf %355, %358 : vector<1x128xf32>
    %363 = arith.maximumf %362, %361 : vector<1x128xf32>
    %364 = arith.subf %355, %363 : vector<1x128xf32>
    %365 = math.exp %364 : vector<1x128xf32>
    %366 = arith.subf %358, %363 : vector<1x128xf32>
    %367 = math.exp %366 : vector<1x128xf32>
    %368 = arith.addf %365, %367 : vector<1x128xf32>
    %369 = arith.subf %361, %363 : vector<1x128xf32>
    %370 = math.exp %369 : vector<1x128xf32>
    %371 = arith.addf %368, %370 : vector<1x128xf32>
    %372 = math.log %371 : vector<1x128xf32>
    %373 = arith.addf %363, %372 : vector<1x128xf32>
    %c0_106 = arith.constant 0 : index
    %c11 = arith.constant 11 : index
    %c0_107 = arith.constant 0 : index
    %374 = vector.load %arg12[%c0_106, %c11, %c0_107] : memref<1x32x128xf32, #tpu.memory_space<vmem>>, vector<1x1x128xf32>
    %375 = vector.shape_cast %374 : vector<1x1x128xf32> to vector<1x128xf32>
    %376 = arith.addf %373, %375 : vector<1x128xf32>
    %c11_i32 = arith.constant 11 : i32
    %377 = arith.addi %6, %c11_i32 : i32
    %378 = arith.sitofp %377 : i32 to f32
    %379 = vector.broadcast %378 : f32 to vector<1x1xf32>
    %380 = arith.cmpf olt, %379, %5 : vector<1x1xf32>
    %381 = vector.shape_cast %380 : vector<1x1xi1> to vector<1x1xi1>
    %382 = vector.broadcast %381 : vector<1x1xi1> to vector<1x128xi1>
    %383 = arith.select %382, %376, %355 : vector<1x128xi1>, vector<1x128xf32>
    %c1_i32_108 = arith.constant 1 : i32
    %384 = tpu.dynamic_rotate %383 by %c1_i32_108 dim 1 : vector<1x128xf32>, i32 -> vector<1x128xf32>
    %cst_109 = arith.constant -1.000000e+30 : f32
    %385 = vector.broadcast %cst_109 : f32 to vector<1x128xf32>
    %386 = arith.select %38, %384, %385 : vector<1x128xi1>, vector<1x128xf32>
    %c2_i32_110 = arith.constant 2 : i32
    %387 = tpu.dynamic_rotate %383 by %c2_i32_110 dim 1 : vector<1x128xf32>, i32 -> vector<1x128xf32>
    %cst_111 = arith.constant -1.000000e+30 : f32
    %388 = vector.broadcast %cst_111 : f32 to vector<1x128xf32>
    %389 = arith.select %35, %387, %388 : vector<1x128xi1>, vector<1x128xf32>
    %390 = arith.maximumf %383, %386 : vector<1x128xf32>
    %391 = arith.maximumf %390, %389 : vector<1x128xf32>
    %392 = arith.subf %383, %391 : vector<1x128xf32>
    %393 = math.exp %392 : vector<1x128xf32>
    %394 = arith.subf %386, %391 : vector<1x128xf32>
    %395 = math.exp %394 : vector<1x128xf32>
    %396 = arith.addf %393, %395 : vector<1x128xf32>
    %397 = arith.subf %389, %391 : vector<1x128xf32>
    %398 = math.exp %397 : vector<1x128xf32>
    %399 = arith.addf %396, %398 : vector<1x128xf32>
    %400 = math.log %399 : vector<1x128xf32>
    %401 = arith.addf %391, %400 : vector<1x128xf32>
    %c0_112 = arith.constant 0 : index
    %c12 = arith.constant 12 : index
    %c0_113 = arith.constant 0 : index
    %402 = vector.load %arg12[%c0_112, %c12, %c0_113] : memref<1x32x128xf32, #tpu.memory_space<vmem>>, vector<1x1x128xf32>
    %403 = vector.shape_cast %402 : vector<1x1x128xf32> to vector<1x128xf32>
    %404 = arith.addf %401, %403 : vector<1x128xf32>
    %c12_i32 = arith.constant 12 : i32
    %405 = arith.addi %6, %c12_i32 : i32
    %406 = arith.sitofp %405 : i32 to f32
    %407 = vector.broadcast %406 : f32 to vector<1x1xf32>
    %408 = arith.cmpf olt, %407, %5 : vector<1x1xf32>
    %409 = vector.shape_cast %408 : vector<1x1xi1> to vector<1x1xi1>
    %410 = vector.broadcast %409 : vector<1x1xi1> to vector<1x128xi1>
    %411 = arith.select %410, %404, %383 : vector<1x128xi1>, vector<1x128xf32>
    %c1_i32_114 = arith.constant 1 : i32
    %412 = tpu.dynamic_rotate %411 by %c1_i32_114 dim 1 : vector<1x128xf32>, i32 -> vector<1x128xf32>
    %cst_115 = arith.constant -1.000000e+30 : f32
    %413 = vector.broadcast %cst_115 : f32 to vector<1x128xf32>
    %414 = arith.select %38, %412, %413 : vector<1x128xi1>, vector<1x128xf32>
    %c2_i32_116 = arith.constant 2 : i32
    %415 = tpu.dynamic_rotate %411 by %c2_i32_116 dim 1 : vector<1x128xf32>, i32 -> vector<1x128xf32>
    %cst_117 = arith.constant -1.000000e+30 : f32
    %416 = vector.broadcast %cst_117 : f32 to vector<1x128xf32>
    %417 = arith.select %35, %415, %416 : vector<1x128xi1>, vector<1x128xf32>
    %418 = arith.maximumf %411, %414 : vector<1x128xf32>
    %419 = arith.maximumf %418, %417 : vector<1x128xf32>
    %420 = arith.subf %411, %419 : vector<1x128xf32>
    %421 = math.exp %420 : vector<1x128xf32>
    %422 = arith.subf %414, %419 : vector<1x128xf32>
    %423 = math.exp %422 : vector<1x128xf32>
    %424 = arith.addf %421, %423 : vector<1x128xf32>
    %425 = arith.subf %417, %419 : vector<1x128xf32>
    %426 = math.exp %425 : vector<1x128xf32>
    %427 = arith.addf %424, %426 : vector<1x128xf32>
    %428 = math.log %427 : vector<1x128xf32>
    %429 = arith.addf %419, %428 : vector<1x128xf32>
    %c0_118 = arith.constant 0 : index
    %c13 = arith.constant 13 : index
    %c0_119 = arith.constant 0 : index
    %430 = vector.load %arg12[%c0_118, %c13, %c0_119] : memref<1x32x128xf32, #tpu.memory_space<vmem>>, vector<1x1x128xf32>
    %431 = vector.shape_cast %430 : vector<1x1x128xf32> to vector<1x128xf32>
    %432 = arith.addf %429, %431 : vector<1x128xf32>
    %c13_i32 = arith.constant 13 : i32
    %433 = arith.addi %6, %c13_i32 : i32
    %434 = arith.sitofp %433 : i32 to f32
    %435 = vector.broadcast %434 : f32 to vector<1x1xf32>
    %436 = arith.cmpf olt, %435, %5 : vector<1x1xf32>
    %437 = vector.shape_cast %436 : vector<1x1xi1> to vector<1x1xi1>
    %438 = vector.broadcast %437 : vector<1x1xi1> to vector<1x128xi1>
    %439 = arith.select %438, %432, %411 : vector<1x128xi1>, vector<1x128xf32>
    %c1_i32_120 = arith.constant 1 : i32
    %440 = tpu.dynamic_rotate %439 by %c1_i32_120 dim 1 : vector<1x128xf32>, i32 -> vector<1x128xf32>
    %cst_121 = arith.constant -1.000000e+30 : f32
    %441 = vector.broadcast %cst_121 : f32 to vector<1x128xf32>
    %442 = arith.select %38, %440, %441 : vector<1x128xi1>, vector<1x128xf32>
    %c2_i32_122 = arith.constant 2 : i32
    %443 = tpu.dynamic_rotate %439 by %c2_i32_122 dim 1 : vector<1x128xf32>, i32 -> vector<1x128xf32>
    %cst_123 = arith.constant -1.000000e+30 : f32
    %444 = vector.broadcast %cst_123 : f32 to vector<1x128xf32>
    %445 = arith.select %35, %443, %444 : vector<1x128xi1>, vector<1x128xf32>
    %446 = arith.maximumf %439, %442 : vector<1x128xf32>
    %447 = arith.maximumf %446, %445 : vector<1x128xf32>
    %448 = arith.subf %439, %447 : vector<1x128xf32>
    %449 = math.exp %448 : vector<1x128xf32>
    %450 = arith.subf %442, %447 : vector<1x128xf32>
    %451 = math.exp %450 : vector<1x128xf32>
    %452 = arith.addf %449, %451 : vector<1x128xf32>
    %453 = arith.subf %445, %447 : vector<1x128xf32>
    %454 = math.exp %453 : vector<1x128xf32>
    %455 = arith.addf %452, %454 : vector<1x128xf32>
    %456 = math.log %455 : vector<1x128xf32>
    %457 = arith.addf %447, %456 : vector<1x128xf32>
    %c0_124 = arith.constant 0 : index
    %c14 = arith.constant 14 : index
    %c0_125 = arith.constant 0 : index
    %458 = vector.load %arg12[%c0_124, %c14, %c0_125] : memref<1x32x128xf32, #tpu.memory_space<vmem>>, vector<1x1x128xf32>
    %459 = vector.shape_cast %458 : vector<1x1x128xf32> to vector<1x128xf32>
    %460 = arith.addf %457, %459 : vector<1x128xf32>
    %c14_i32 = arith.constant 14 : i32
    %461 = arith.addi %6, %c14_i32 : i32
    %462 = arith.sitofp %461 : i32 to f32
    %463 = vector.broadcast %462 : f32 to vector<1x1xf32>
    %464 = arith.cmpf olt, %463, %5 : vector<1x1xf32>
    %465 = vector.shape_cast %464 : vector<1x1xi1> to vector<1x1xi1>
    %466 = vector.broadcast %465 : vector<1x1xi1> to vector<1x128xi1>
    %467 = arith.select %466, %460, %439 : vector<1x128xi1>, vector<1x128xf32>
    %c1_i32_126 = arith.constant 1 : i32
    %468 = tpu.dynamic_rotate %467 by %c1_i32_126 dim 1 : vector<1x128xf32>, i32 -> vector<1x128xf32>
    %cst_127 = arith.constant -1.000000e+30 : f32
    %469 = vector.broadcast %cst_127 : f32 to vector<1x128xf32>
    %470 = arith.select %38, %468, %469 : vector<1x128xi1>, vector<1x128xf32>
    %c2_i32_128 = arith.constant 2 : i32
    %471 = tpu.dynamic_rotate %467 by %c2_i32_128 dim 1 : vector<1x128xf32>, i32 -> vector<1x128xf32>
    %cst_129 = arith.constant -1.000000e+30 : f32
    %472 = vector.broadcast %cst_129 : f32 to vector<1x128xf32>
    %473 = arith.select %35, %471, %472 : vector<1x128xi1>, vector<1x128xf32>
    %474 = arith.maximumf %467, %470 : vector<1x128xf32>
    %475 = arith.maximumf %474, %473 : vector<1x128xf32>
    %476 = arith.subf %467, %475 : vector<1x128xf32>
    %477 = math.exp %476 : vector<1x128xf32>
    %478 = arith.subf %470, %475 : vector<1x128xf32>
    %479 = math.exp %478 : vector<1x128xf32>
    %480 = arith.addf %477, %479 : vector<1x128xf32>
    %481 = arith.subf %473, %475 : vector<1x128xf32>
    %482 = math.exp %481 : vector<1x128xf32>
    %483 = arith.addf %480, %482 : vector<1x128xf32>
    %484 = math.log %483 : vector<1x128xf32>
    %485 = arith.addf %475, %484 : vector<1x128xf32>
    %c0_130 = arith.constant 0 : index
    %c15 = arith.constant 15 : index
    %c0_131 = arith.constant 0 : index
    %486 = vector.load %arg12[%c0_130, %c15, %c0_131] : memref<1x32x128xf32, #tpu.memory_space<vmem>>, vector<1x1x128xf32>
    %487 = vector.shape_cast %486 : vector<1x1x128xf32> to vector<1x128xf32>
    %488 = arith.addf %485, %487 : vector<1x128xf32>
    %c15_i32 = arith.constant 15 : i32
    %489 = arith.addi %6, %c15_i32 : i32
    %490 = arith.sitofp %489 : i32 to f32
    %491 = vector.broadcast %490 : f32 to vector<1x1xf32>
    %492 = arith.cmpf olt, %491, %5 : vector<1x1xf32>
    %493 = vector.shape_cast %492 : vector<1x1xi1> to vector<1x1xi1>
    %494 = vector.broadcast %493 : vector<1x1xi1> to vector<1x128xi1>
    %495 = arith.select %494, %488, %467 : vector<1x128xi1>, vector<1x128xf32>
    %c1_i32_132 = arith.constant 1 : i32
    %496 = tpu.dynamic_rotate %495 by %c1_i32_132 dim 1 : vector<1x128xf32>, i32 -> vector<1x128xf32>
    %cst_133 = arith.constant -1.000000e+30 : f32
    %497 = vector.broadcast %cst_133 : f32 to vector<1x128xf32>
    %498 = arith.select %38, %496, %497 : vector<1x128xi1>, vector<1x128xf32>
    %c2_i32_134 = arith.constant 2 : i32
    %499 = tpu.dynamic_rotate %495 by %c2_i32_134 dim 1 : vector<1x128xf32>, i32 -> vector<1x128xf32>
    %cst_135 = arith.constant -1.000000e+30 : f32
    %500 = vector.broadcast %cst_135 : f32 to vector<1x128xf32>
    %501 = arith.select %35, %499, %500 : vector<1x128xi1>, vector<1x128xf32>
    %502 = arith.maximumf %495, %498 : vector<1x128xf32>
    %503 = arith.maximumf %502, %501 : vector<1x128xf32>
    %504 = arith.subf %495, %503 : vector<1x128xf32>
    %505 = math.exp %504 : vector<1x128xf32>
    %506 = arith.subf %498, %503 : vector<1x128xf32>
    %507 = math.exp %506 : vector<1x128xf32>
    %508 = arith.addf %505, %507 : vector<1x128xf32>
    %509 = arith.subf %501, %503 : vector<1x128xf32>
    %510 = math.exp %509 : vector<1x128xf32>
    %511 = arith.addf %508, %510 : vector<1x128xf32>
    %512 = math.log %511 : vector<1x128xf32>
    %513 = arith.addf %503, %512 : vector<1x128xf32>
    %c0_136 = arith.constant 0 : index
    %c16 = arith.constant 16 : index
    %c0_137 = arith.constant 0 : index
    %514 = vector.load %arg12[%c0_136, %c16, %c0_137] : memref<1x32x128xf32, #tpu.memory_space<vmem>>, vector<1x1x128xf32>
    %515 = vector.shape_cast %514 : vector<1x1x128xf32> to vector<1x128xf32>
    %516 = arith.addf %513, %515 : vector<1x128xf32>
    %c16_i32 = arith.constant 16 : i32
    %517 = arith.addi %6, %c16_i32 : i32
    %518 = arith.sitofp %517 : i32 to f32
    %519 = vector.broadcast %518 : f32 to vector<1x1xf32>
    %520 = arith.cmpf olt, %519, %5 : vector<1x1xf32>
    %521 = vector.shape_cast %520 : vector<1x1xi1> to vector<1x1xi1>
    %522 = vector.broadcast %521 : vector<1x1xi1> to vector<1x128xi1>
    %523 = arith.select %522, %516, %495 : vector<1x128xi1>, vector<1x128xf32>
    %c1_i32_138 = arith.constant 1 : i32
    %524 = tpu.dynamic_rotate %523 by %c1_i32_138 dim 1 : vector<1x128xf32>, i32 -> vector<1x128xf32>
    %cst_139 = arith.constant -1.000000e+30 : f32
    %525 = vector.broadcast %cst_139 : f32 to vector<1x128xf32>
    %526 = arith.select %38, %524, %525 : vector<1x128xi1>, vector<1x128xf32>
    %c2_i32_140 = arith.constant 2 : i32
    %527 = tpu.dynamic_rotate %523 by %c2_i32_140 dim 1 : vector<1x128xf32>, i32 -> vector<1x128xf32>
    %cst_141 = arith.constant -1.000000e+30 : f32
    %528 = vector.broadcast %cst_141 : f32 to vector<1x128xf32>
    %529 = arith.select %35, %527, %528 : vector<1x128xi1>, vector<1x128xf32>
    %530 = arith.maximumf %523, %526 : vector<1x128xf32>
    %531 = arith.maximumf %530, %529 : vector<1x128xf32>
    %532 = arith.subf %523, %531 : vector<1x128xf32>
    %533 = math.exp %532 : vector<1x128xf32>
    %534 = arith.subf %526, %531 : vector<1x128xf32>
    %535 = math.exp %534 : vector<1x128xf32>
    %536 = arith.addf %533, %535 : vector<1x128xf32>
    %537 = arith.subf %529, %531 : vector<1x128xf32>
    %538 = math.exp %537 : vector<1x128xf32>
    %539 = arith.addf %536, %538 : vector<1x128xf32>
    %540 = math.log %539 : vector<1x128xf32>
    %541 = arith.addf %531, %540 : vector<1x128xf32>
    %c0_142 = arith.constant 0 : index
    %c17 = arith.constant 17 : index
    %c0_143 = arith.constant 0 : index
    %542 = vector.load %arg12[%c0_142, %c17, %c0_143] : memref<1x32x128xf32, #tpu.memory_space<vmem>>, vector<1x1x128xf32>
    %543 = vector.shape_cast %542 : vector<1x1x128xf32> to vector<1x128xf32>
    %544 = arith.addf %541, %543 : vector<1x128xf32>
    %c17_i32 = arith.constant 17 : i32
    %545 = arith.addi %6, %c17_i32 : i32
    %546 = arith.sitofp %545 : i32 to f32
    %547 = vector.broadcast %546 : f32 to vector<1x1xf32>
    %548 = arith.cmpf olt, %547, %5 : vector<1x1xf32>
    %549 = vector.shape_cast %548 : vector<1x1xi1> to vector<1x1xi1>
    %550 = vector.broadcast %549 : vector<1x1xi1> to vector<1x128xi1>
    %551 = arith.select %550, %544, %523 : vector<1x128xi1>, vector<1x128xf32>
    %c1_i32_144 = arith.constant 1 : i32
    %552 = tpu.dynamic_rotate %551 by %c1_i32_144 dim 1 : vector<1x128xf32>, i32 -> vector<1x128xf32>
    %cst_145 = arith.constant -1.000000e+30 : f32
    %553 = vector.broadcast %cst_145 : f32 to vector<1x128xf32>
    %554 = arith.select %38, %552, %553 : vector<1x128xi1>, vector<1x128xf32>
    %c2_i32_146 = arith.constant 2 : i32
    %555 = tpu.dynamic_rotate %551 by %c2_i32_146 dim 1 : vector<1x128xf32>, i32 -> vector<1x128xf32>
    %cst_147 = arith.constant -1.000000e+30 : f32
    %556 = vector.broadcast %cst_147 : f32 to vector<1x128xf32>
    %557 = arith.select %35, %555, %556 : vector<1x128xi1>, vector<1x128xf32>
    %558 = arith.maximumf %551, %554 : vector<1x128xf32>
    %559 = arith.maximumf %558, %557 : vector<1x128xf32>
    %560 = arith.subf %551, %559 : vector<1x128xf32>
    %561 = math.exp %560 : vector<1x128xf32>
    %562 = arith.subf %554, %559 : vector<1x128xf32>
    %563 = math.exp %562 : vector<1x128xf32>
    %564 = arith.addf %561, %563 : vector<1x128xf32>
    %565 = arith.subf %557, %559 : vector<1x128xf32>
    %566 = math.exp %565 : vector<1x128xf32>
    %567 = arith.addf %564, %566 : vector<1x128xf32>
    %568 = math.log %567 : vector<1x128xf32>
    %569 = arith.addf %559, %568 : vector<1x128xf32>
    %c0_148 = arith.constant 0 : index
    %c18 = arith.constant 18 : index
    %c0_149 = arith.constant 0 : index
    %570 = vector.load %arg12[%c0_148, %c18, %c0_149] : memref<1x32x128xf32, #tpu.memory_space<vmem>>, vector<1x1x128xf32>
    %571 = vector.shape_cast %570 : vector<1x1x128xf32> to vector<1x128xf32>
    %572 = arith.addf %569, %571 : vector<1x128xf32>
    %c18_i32 = arith.constant 18 : i32
    %573 = arith.addi %6, %c18_i32 : i32
    %574 = arith.sitofp %573 : i32 to f32
    %575 = vector.broadcast %574 : f32 to vector<1x1xf32>
    %576 = arith.cmpf olt, %575, %5 : vector<1x1xf32>
    %577 = vector.shape_cast %576 : vector<1x1xi1> to vector<1x1xi1>
    %578 = vector.broadcast %577 : vector<1x1xi1> to vector<1x128xi1>
    %579 = arith.select %578, %572, %551 : vector<1x128xi1>, vector<1x128xf32>
    %c1_i32_150 = arith.constant 1 : i32
    %580 = tpu.dynamic_rotate %579 by %c1_i32_150 dim 1 : vector<1x128xf32>, i32 -> vector<1x128xf32>
    %cst_151 = arith.constant -1.000000e+30 : f32
    %581 = vector.broadcast %cst_151 : f32 to vector<1x128xf32>
    %582 = arith.select %38, %580, %581 : vector<1x128xi1>, vector<1x128xf32>
    %c2_i32_152 = arith.constant 2 : i32
    %583 = tpu.dynamic_rotate %579 by %c2_i32_152 dim 1 : vector<1x128xf32>, i32 -> vector<1x128xf32>
    %cst_153 = arith.constant -1.000000e+30 : f32
    %584 = vector.broadcast %cst_153 : f32 to vector<1x128xf32>
    %585 = arith.select %35, %583, %584 : vector<1x128xi1>, vector<1x128xf32>
    %586 = arith.maximumf %579, %582 : vector<1x128xf32>
    %587 = arith.maximumf %586, %585 : vector<1x128xf32>
    %588 = arith.subf %579, %587 : vector<1x128xf32>
    %589 = math.exp %588 : vector<1x128xf32>
    %590 = arith.subf %582, %587 : vector<1x128xf32>
    %591 = math.exp %590 : vector<1x128xf32>
    %592 = arith.addf %589, %591 : vector<1x128xf32>
    %593 = arith.subf %585, %587 : vector<1x128xf32>
    %594 = math.exp %593 : vector<1x128xf32>
    %595 = arith.addf %592, %594 : vector<1x128xf32>
    %596 = math.log %595 : vector<1x128xf32>
    %597 = arith.addf %587, %596 : vector<1x128xf32>
    %c0_154 = arith.constant 0 : index
    %c19 = arith.constant 19 : index
    %c0_155 = arith.constant 0 : index
    %598 = vector.load %arg12[%c0_154, %c19, %c0_155] : memref<1x32x128xf32, #tpu.memory_space<vmem>>, vector<1x1x128xf32>
    %599 = vector.shape_cast %598 : vector<1x1x128xf32> to vector<1x128xf32>
    %600 = arith.addf %597, %599 : vector<1x128xf32>
    %c19_i32 = arith.constant 19 : i32
    %601 = arith.addi %6, %c19_i32 : i32
    %602 = arith.sitofp %601 : i32 to f32
    %603 = vector.broadcast %602 : f32 to vector<1x1xf32>
    %604 = arith.cmpf olt, %603, %5 : vector<1x1xf32>
    %605 = vector.shape_cast %604 : vector<1x1xi1> to vector<1x1xi1>
    %606 = vector.broadcast %605 : vector<1x1xi1> to vector<1x128xi1>
    %607 = arith.select %606, %600, %579 : vector<1x128xi1>, vector<1x128xf32>
    %c1_i32_156 = arith.constant 1 : i32
    %608 = tpu.dynamic_rotate %607 by %c1_i32_156 dim 1 : vector<1x128xf32>, i32 -> vector<1x128xf32>
    %cst_157 = arith.constant -1.000000e+30 : f32
    %609 = vector.broadcast %cst_157 : f32 to vector<1x128xf32>
    %610 = arith.select %38, %608, %609 : vector<1x128xi1>, vector<1x128xf32>
    %c2_i32_158 = arith.constant 2 : i32
    %611 = tpu.dynamic_rotate %607 by %c2_i32_158 dim 1 : vector<1x128xf32>, i32 -> vector<1x128xf32>
    %cst_159 = arith.constant -1.000000e+30 : f32
    %612 = vector.broadcast %cst_159 : f32 to vector<1x128xf32>
    %613 = arith.select %35, %611, %612 : vector<1x128xi1>, vector<1x128xf32>
    %614 = arith.maximumf %607, %610 : vector<1x128xf32>
    %615 = arith.maximumf %614, %613 : vector<1x128xf32>
    %616 = arith.subf %607, %615 : vector<1x128xf32>
    %617 = math.exp %616 : vector<1x128xf32>
    %618 = arith.subf %610, %615 : vector<1x128xf32>
    %619 = math.exp %618 : vector<1x128xf32>
    %620 = arith.addf %617, %619 : vector<1x128xf32>
    %621 = arith.subf %613, %615 : vector<1x128xf32>
    %622 = math.exp %621 : vector<1x128xf32>
    %623 = arith.addf %620, %622 : vector<1x128xf32>
    %624 = math.log %623 : vector<1x128xf32>
    %625 = arith.addf %615, %624 : vector<1x128xf32>
    %c0_160 = arith.constant 0 : index
    %c20 = arith.constant 20 : index
    %c0_161 = arith.constant 0 : index
    %626 = vector.load %arg12[%c0_160, %c20, %c0_161] : memref<1x32x128xf32, #tpu.memory_space<vmem>>, vector<1x1x128xf32>
    %627 = vector.shape_cast %626 : vector<1x1x128xf32> to vector<1x128xf32>
    %628 = arith.addf %625, %627 : vector<1x128xf32>
    %c20_i32 = arith.constant 20 : i32
    %629 = arith.addi %6, %c20_i32 : i32
    %630 = arith.sitofp %629 : i32 to f32
    %631 = vector.broadcast %630 : f32 to vector<1x1xf32>
    %632 = arith.cmpf olt, %631, %5 : vector<1x1xf32>
    %633 = vector.shape_cast %632 : vector<1x1xi1> to vector<1x1xi1>
    %634 = vector.broadcast %633 : vector<1x1xi1> to vector<1x128xi1>
    %635 = arith.select %634, %628, %607 : vector<1x128xi1>, vector<1x128xf32>
    %c1_i32_162 = arith.constant 1 : i32
    %636 = tpu.dynamic_rotate %635 by %c1_i32_162 dim 1 : vector<1x128xf32>, i32 -> vector<1x128xf32>
    %cst_163 = arith.constant -1.000000e+30 : f32
    %637 = vector.broadcast %cst_163 : f32 to vector<1x128xf32>
    %638 = arith.select %38, %636, %637 : vector<1x128xi1>, vector<1x128xf32>
    %c2_i32_164 = arith.constant 2 : i32
    %639 = tpu.dynamic_rotate %635 by %c2_i32_164 dim 1 : vector<1x128xf32>, i32 -> vector<1x128xf32>
    %cst_165 = arith.constant -1.000000e+30 : f32
    %640 = vector.broadcast %cst_165 : f32 to vector<1x128xf32>
    %641 = arith.select %35, %639, %640 : vector<1x128xi1>, vector<1x128xf32>
    %642 = arith.maximumf %635, %638 : vector<1x128xf32>
    %643 = arith.maximumf %642, %641 : vector<1x128xf32>
    %644 = arith.subf %635, %643 : vector<1x128xf32>
    %645 = math.exp %644 : vector<1x128xf32>
    %646 = arith.subf %638, %643 : vector<1x128xf32>
    %647 = math.exp %646 : vector<1x128xf32>
    %648 = arith.addf %645, %647 : vector<1x128xf32>
    %649 = arith.subf %641, %643 : vector<1x128xf32>
    %650 = math.exp %649 : vector<1x128xf32>
    %651 = arith.addf %648, %650 : vector<1x128xf32>
    %652 = math.log %651 : vector<1x128xf32>
    %653 = arith.addf %643, %652 : vector<1x128xf32>
    %c0_166 = arith.constant 0 : index
    %c21 = arith.constant 21 : index
    %c0_167 = arith.constant 0 : index
    %654 = vector.load %arg12[%c0_166, %c21, %c0_167] : memref<1x32x128xf32, #tpu.memory_space<vmem>>, vector<1x1x128xf32>
    %655 = vector.shape_cast %654 : vector<1x1x128xf32> to vector<1x128xf32>
    %656 = arith.addf %653, %655 : vector<1x128xf32>
    %c21_i32 = arith.constant 21 : i32
    %657 = arith.addi %6, %c21_i32 : i32
    %658 = arith.sitofp %657 : i32 to f32
    %659 = vector.broadcast %658 : f32 to vector<1x1xf32>
    %660 = arith.cmpf olt, %659, %5 : vector<1x1xf32>
    %661 = vector.shape_cast %660 : vector<1x1xi1> to vector<1x1xi1>
    %662 = vector.broadcast %661 : vector<1x1xi1> to vector<1x128xi1>
    %663 = arith.select %662, %656, %635 : vector<1x128xi1>, vector<1x128xf32>
    %c1_i32_168 = arith.constant 1 : i32
    %664 = tpu.dynamic_rotate %663 by %c1_i32_168 dim 1 : vector<1x128xf32>, i32 -> vector<1x128xf32>
    %cst_169 = arith.constant -1.000000e+30 : f32
    %665 = vector.broadcast %cst_169 : f32 to vector<1x128xf32>
    %666 = arith.select %38, %664, %665 : vector<1x128xi1>, vector<1x128xf32>
    %c2_i32_170 = arith.constant 2 : i32
    %667 = tpu.dynamic_rotate %663 by %c2_i32_170 dim 1 : vector<1x128xf32>, i32 -> vector<1x128xf32>
    %cst_171 = arith.constant -1.000000e+30 : f32
    %668 = vector.broadcast %cst_171 : f32 to vector<1x128xf32>
    %669 = arith.select %35, %667, %668 : vector<1x128xi1>, vector<1x128xf32>
    %670 = arith.maximumf %663, %666 : vector<1x128xf32>
    %671 = arith.maximumf %670, %669 : vector<1x128xf32>
    %672 = arith.subf %663, %671 : vector<1x128xf32>
    %673 = math.exp %672 : vector<1x128xf32>
    %674 = arith.subf %666, %671 : vector<1x128xf32>
    %675 = math.exp %674 : vector<1x128xf32>
    %676 = arith.addf %673, %675 : vector<1x128xf32>
    %677 = arith.subf %669, %671 : vector<1x128xf32>
    %678 = math.exp %677 : vector<1x128xf32>
    %679 = arith.addf %676, %678 : vector<1x128xf32>
    %680 = math.log %679 : vector<1x128xf32>
    %681 = arith.addf %671, %680 : vector<1x128xf32>
    %c0_172 = arith.constant 0 : index
    %c22 = arith.constant 22 : index
    %c0_173 = arith.constant 0 : index
    %682 = vector.load %arg12[%c0_172, %c22, %c0_173] : memref<1x32x128xf32, #tpu.memory_space<vmem>>, vector<1x1x128xf32>
    %683 = vector.shape_cast %682 : vector<1x1x128xf32> to vector<1x128xf32>
    %684 = arith.addf %681, %683 : vector<1x128xf32>
    %c22_i32 = arith.constant 22 : i32
    %685 = arith.addi %6, %c22_i32 : i32
    %686 = arith.sitofp %685 : i32 to f32
    %687 = vector.broadcast %686 : f32 to vector<1x1xf32>
    %688 = arith.cmpf olt, %687, %5 : vector<1x1xf32>
    %689 = vector.shape_cast %688 : vector<1x1xi1> to vector<1x1xi1>
    %690 = vector.broadcast %689 : vector<1x1xi1> to vector<1x128xi1>
    %691 = arith.select %690, %684, %663 : vector<1x128xi1>, vector<1x128xf32>
    %c1_i32_174 = arith.constant 1 : i32
    %692 = tpu.dynamic_rotate %691 by %c1_i32_174 dim 1 : vector<1x128xf32>, i32 -> vector<1x128xf32>
    %cst_175 = arith.constant -1.000000e+30 : f32
    %693 = vector.broadcast %cst_175 : f32 to vector<1x128xf32>
    %694 = arith.select %38, %692, %693 : vector<1x128xi1>, vector<1x128xf32>
    %c2_i32_176 = arith.constant 2 : i32
    %695 = tpu.dynamic_rotate %691 by %c2_i32_176 dim 1 : vector<1x128xf32>, i32 -> vector<1x128xf32>
    %cst_177 = arith.constant -1.000000e+30 : f32
    %696 = vector.broadcast %cst_177 : f32 to vector<1x128xf32>
    %697 = arith.select %35, %695, %696 : vector<1x128xi1>, vector<1x128xf32>
    %698 = arith.maximumf %691, %694 : vector<1x128xf32>
    %699 = arith.maximumf %698, %697 : vector<1x128xf32>
    %700 = arith.subf %691, %699 : vector<1x128xf32>
    %701 = math.exp %700 : vector<1x128xf32>
    %702 = arith.subf %694, %699 : vector<1x128xf32>
    %703 = math.exp %702 : vector<1x128xf32>
    %704 = arith.addf %701, %703 : vector<1x128xf32>
    %705 = arith.subf %697, %699 : vector<1x128xf32>
    %706 = math.exp %705 : vector<1x128xf32>
    %707 = arith.addf %704, %706 : vector<1x128xf32>
    %708 = math.log %707 : vector<1x128xf32>
    %709 = arith.addf %699, %708 : vector<1x128xf32>
    %c0_178 = arith.constant 0 : index
    %c23 = arith.constant 23 : index
    %c0_179 = arith.constant 0 : index
    %710 = vector.load %arg12[%c0_178, %c23, %c0_179] : memref<1x32x128xf32, #tpu.memory_space<vmem>>, vector<1x1x128xf32>
    %711 = vector.shape_cast %710 : vector<1x1x128xf32> to vector<1x128xf32>
    %712 = arith.addf %709, %711 : vector<1x128xf32>
    %c23_i32 = arith.constant 23 : i32
    %713 = arith.addi %6, %c23_i32 : i32
    %714 = arith.sitofp %713 : i32 to f32
    %715 = vector.broadcast %714 : f32 to vector<1x1xf32>
    %716 = arith.cmpf olt, %715, %5 : vector<1x1xf32>
    %717 = vector.shape_cast %716 : vector<1x1xi1> to vector<1x1xi1>
    %718 = vector.broadcast %717 : vector<1x1xi1> to vector<1x128xi1>
    %719 = arith.select %718, %712, %691 : vector<1x128xi1>, vector<1x128xf32>
    %c1_i32_180 = arith.constant 1 : i32
    %720 = tpu.dynamic_rotate %719 by %c1_i32_180 dim 1 : vector<1x128xf32>, i32 -> vector<1x128xf32>
    %cst_181 = arith.constant -1.000000e+30 : f32
    %721 = vector.broadcast %cst_181 : f32 to vector<1x128xf32>
    %722 = arith.select %38, %720, %721 : vector<1x128xi1>, vector<1x128xf32>
    %c2_i32_182 = arith.constant 2 : i32
    %723 = tpu.dynamic_rotate %719 by %c2_i32_182 dim 1 : vector<1x128xf32>, i32 -> vector<1x128xf32>
    %cst_183 = arith.constant -1.000000e+30 : f32
    %724 = vector.broadcast %cst_183 : f32 to vector<1x128xf32>
    %725 = arith.select %35, %723, %724 : vector<1x128xi1>, vector<1x128xf32>
    %726 = arith.maximumf %719, %722 : vector<1x128xf32>
    %727 = arith.maximumf %726, %725 : vector<1x128xf32>
    %728 = arith.subf %719, %727 : vector<1x128xf32>
    %729 = math.exp %728 : vector<1x128xf32>
    %730 = arith.subf %722, %727 : vector<1x128xf32>
    %731 = math.exp %730 : vector<1x128xf32>
    %732 = arith.addf %729, %731 : vector<1x128xf32>
    %733 = arith.subf %725, %727 : vector<1x128xf32>
    %734 = math.exp %733 : vector<1x128xf32>
    %735 = arith.addf %732, %734 : vector<1x128xf32>
    %736 = math.log %735 : vector<1x128xf32>
    %737 = arith.addf %727, %736 : vector<1x128xf32>
    %c0_184 = arith.constant 0 : index
    %c24 = arith.constant 24 : index
    %c0_185 = arith.constant 0 : index
    %738 = vector.load %arg12[%c0_184, %c24, %c0_185] : memref<1x32x128xf32, #tpu.memory_space<vmem>>, vector<1x1x128xf32>
    %739 = vector.shape_cast %738 : vector<1x1x128xf32> to vector<1x128xf32>
    %740 = arith.addf %737, %739 : vector<1x128xf32>
    %c24_i32 = arith.constant 24 : i32
    %741 = arith.addi %6, %c24_i32 : i32
    %742 = arith.sitofp %741 : i32 to f32
    %743 = vector.broadcast %742 : f32 to vector<1x1xf32>
    %744 = arith.cmpf olt, %743, %5 : vector<1x1xf32>
    %745 = vector.shape_cast %744 : vector<1x1xi1> to vector<1x1xi1>
    %746 = vector.broadcast %745 : vector<1x1xi1> to vector<1x128xi1>
    %747 = arith.select %746, %740, %719 : vector<1x128xi1>, vector<1x128xf32>
    %c1_i32_186 = arith.constant 1 : i32
    %748 = tpu.dynamic_rotate %747 by %c1_i32_186 dim 1 : vector<1x128xf32>, i32 -> vector<1x128xf32>
    %cst_187 = arith.constant -1.000000e+30 : f32
    %749 = vector.broadcast %cst_187 : f32 to vector<1x128xf32>
    %750 = arith.select %38, %748, %749 : vector<1x128xi1>, vector<1x128xf32>
    %c2_i32_188 = arith.constant 2 : i32
    %751 = tpu.dynamic_rotate %747 by %c2_i32_188 dim 1 : vector<1x128xf32>, i32 -> vector<1x128xf32>
    %cst_189 = arith.constant -1.000000e+30 : f32
    %752 = vector.broadcast %cst_189 : f32 to vector<1x128xf32>
    %753 = arith.select %35, %751, %752 : vector<1x128xi1>, vector<1x128xf32>
    %754 = arith.maximumf %747, %750 : vector<1x128xf32>
    %755 = arith.maximumf %754, %753 : vector<1x128xf32>
    %756 = arith.subf %747, %755 : vector<1x128xf32>
    %757 = math.exp %756 : vector<1x128xf32>
    %758 = arith.subf %750, %755 : vector<1x128xf32>
    %759 = math.exp %758 : vector<1x128xf32>
    %760 = arith.addf %757, %759 : vector<1x128xf32>
    %761 = arith.subf %753, %755 : vector<1x128xf32>
    %762 = math.exp %761 : vector<1x128xf32>
    %763 = arith.addf %760, %762 : vector<1x128xf32>
    %764 = math.log %763 : vector<1x128xf32>
    %765 = arith.addf %755, %764 : vector<1x128xf32>
    %c0_190 = arith.constant 0 : index
    %c25 = arith.constant 25 : index
    %c0_191 = arith.constant 0 : index
    %766 = vector.load %arg12[%c0_190, %c25, %c0_191] : memref<1x32x128xf32, #tpu.memory_space<vmem>>, vector<1x1x128xf32>
    %767 = vector.shape_cast %766 : vector<1x1x128xf32> to vector<1x128xf32>
    %768 = arith.addf %765, %767 : vector<1x128xf32>
    %c25_i32 = arith.constant 25 : i32
    %769 = arith.addi %6, %c25_i32 : i32
    %770 = arith.sitofp %769 : i32 to f32
    %771 = vector.broadcast %770 : f32 to vector<1x1xf32>
    %772 = arith.cmpf olt, %771, %5 : vector<1x1xf32>
    %773 = vector.shape_cast %772 : vector<1x1xi1> to vector<1x1xi1>
    %774 = vector.broadcast %773 : vector<1x1xi1> to vector<1x128xi1>
    %775 = arith.select %774, %768, %747 : vector<1x128xi1>, vector<1x128xf32>
    %c1_i32_192 = arith.constant 1 : i32
    %776 = tpu.dynamic_rotate %775 by %c1_i32_192 dim 1 : vector<1x128xf32>, i32 -> vector<1x128xf32>
    %cst_193 = arith.constant -1.000000e+30 : f32
    %777 = vector.broadcast %cst_193 : f32 to vector<1x128xf32>
    %778 = arith.select %38, %776, %777 : vector<1x128xi1>, vector<1x128xf32>
    %c2_i32_194 = arith.constant 2 : i32
    %779 = tpu.dynamic_rotate %775 by %c2_i32_194 dim 1 : vector<1x128xf32>, i32 -> vector<1x128xf32>
    %cst_195 = arith.constant -1.000000e+30 : f32
    %780 = vector.broadcast %cst_195 : f32 to vector<1x128xf32>
    %781 = arith.select %35, %779, %780 : vector<1x128xi1>, vector<1x128xf32>
    %782 = arith.maximumf %775, %778 : vector<1x128xf32>
    %783 = arith.maximumf %782, %781 : vector<1x128xf32>
    %784 = arith.subf %775, %783 : vector<1x128xf32>
    %785 = math.exp %784 : vector<1x128xf32>
    %786 = arith.subf %778, %783 : vector<1x128xf32>
    %787 = math.exp %786 : vector<1x128xf32>
    %788 = arith.addf %785, %787 : vector<1x128xf32>
    %789 = arith.subf %781, %783 : vector<1x128xf32>
    %790 = math.exp %789 : vector<1x128xf32>
    %791 = arith.addf %788, %790 : vector<1x128xf32>
    %792 = math.log %791 : vector<1x128xf32>
    %793 = arith.addf %783, %792 : vector<1x128xf32>
    %c0_196 = arith.constant 0 : index
    %c26 = arith.constant 26 : index
    %c0_197 = arith.constant 0 : index
    %794 = vector.load %arg12[%c0_196, %c26, %c0_197] : memref<1x32x128xf32, #tpu.memory_space<vmem>>, vector<1x1x128xf32>
    %795 = vector.shape_cast %794 : vector<1x1x128xf32> to vector<1x128xf32>
    %796 = arith.addf %793, %795 : vector<1x128xf32>
    %c26_i32 = arith.constant 26 : i32
    %797 = arith.addi %6, %c26_i32 : i32
    %798 = arith.sitofp %797 : i32 to f32
    %799 = vector.broadcast %798 : f32 to vector<1x1xf32>
    %800 = arith.cmpf olt, %799, %5 : vector<1x1xf32>
    %801 = vector.shape_cast %800 : vector<1x1xi1> to vector<1x1xi1>
    %802 = vector.broadcast %801 : vector<1x1xi1> to vector<1x128xi1>
    %803 = arith.select %802, %796, %775 : vector<1x128xi1>, vector<1x128xf32>
    %c1_i32_198 = arith.constant 1 : i32
    %804 = tpu.dynamic_rotate %803 by %c1_i32_198 dim 1 : vector<1x128xf32>, i32 -> vector<1x128xf32>
    %cst_199 = arith.constant -1.000000e+30 : f32
    %805 = vector.broadcast %cst_199 : f32 to vector<1x128xf32>
    %806 = arith.select %38, %804, %805 : vector<1x128xi1>, vector<1x128xf32>
    %c2_i32_200 = arith.constant 2 : i32
    %807 = tpu.dynamic_rotate %803 by %c2_i32_200 dim 1 : vector<1x128xf32>, i32 -> vector<1x128xf32>
    %cst_201 = arith.constant -1.000000e+30 : f32
    %808 = vector.broadcast %cst_201 : f32 to vector<1x128xf32>
    %809 = arith.select %35, %807, %808 : vector<1x128xi1>, vector<1x128xf32>
    %810 = arith.maximumf %803, %806 : vector<1x128xf32>
    %811 = arith.maximumf %810, %809 : vector<1x128xf32>
    %812 = arith.subf %803, %811 : vector<1x128xf32>
    %813 = math.exp %812 : vector<1x128xf32>
    %814 = arith.subf %806, %811 : vector<1x128xf32>
    %815 = math.exp %814 : vector<1x128xf32>
    %816 = arith.addf %813, %815 : vector<1x128xf32>
    %817 = arith.subf %809, %811 : vector<1x128xf32>
    %818 = math.exp %817 : vector<1x128xf32>
    %819 = arith.addf %816, %818 : vector<1x128xf32>
    %820 = math.log %819 : vector<1x128xf32>
    %821 = arith.addf %811, %820 : vector<1x128xf32>
    %c0_202 = arith.constant 0 : index
    %c27 = arith.constant 27 : index
    %c0_203 = arith.constant 0 : index
    %822 = vector.load %arg12[%c0_202, %c27, %c0_203] : memref<1x32x128xf32, #tpu.memory_space<vmem>>, vector<1x1x128xf32>
    %823 = vector.shape_cast %822 : vector<1x1x128xf32> to vector<1x128xf32>
    %824 = arith.addf %821, %823 : vector<1x128xf32>
    %c27_i32 = arith.constant 27 : i32
    %825 = arith.addi %6, %c27_i32 : i32
    %826 = arith.sitofp %825 : i32 to f32
    %827 = vector.broadcast %826 : f32 to vector<1x1xf32>
    %828 = arith.cmpf olt, %827, %5 : vector<1x1xf32>
    %829 = vector.shape_cast %828 : vector<1x1xi1> to vector<1x1xi1>
    %830 = vector.broadcast %829 : vector<1x1xi1> to vector<1x128xi1>
    %831 = arith.select %830, %824, %803 : vector<1x128xi1>, vector<1x128xf32>
    %c1_i32_204 = arith.constant 1 : i32
    %832 = tpu.dynamic_rotate %831 by %c1_i32_204 dim 1 : vector<1x128xf32>, i32 -> vector<1x128xf32>
    %cst_205 = arith.constant -1.000000e+30 : f32
    %833 = vector.broadcast %cst_205 : f32 to vector<1x128xf32>
    %834 = arith.select %38, %832, %833 : vector<1x128xi1>, vector<1x128xf32>
    %c2_i32_206 = arith.constant 2 : i32
    %835 = tpu.dynamic_rotate %831 by %c2_i32_206 dim 1 : vector<1x128xf32>, i32 -> vector<1x128xf32>
    %cst_207 = arith.constant -1.000000e+30 : f32
    %836 = vector.broadcast %cst_207 : f32 to vector<1x128xf32>
    %837 = arith.select %35, %835, %836 : vector<1x128xi1>, vector<1x128xf32>
    %838 = arith.maximumf %831, %834 : vector<1x128xf32>
    %839 = arith.maximumf %838, %837 : vector<1x128xf32>
    %840 = arith.subf %831, %839 : vector<1x128xf32>
    %841 = math.exp %840 : vector<1x128xf32>
    %842 = arith.subf %834, %839 : vector<1x128xf32>
    %843 = math.exp %842 : vector<1x128xf32>
    %844 = arith.addf %841, %843 : vector<1x128xf32>
    %845 = arith.subf %837, %839 : vector<1x128xf32>
    %846 = math.exp %845 : vector<1x128xf32>
    %847 = arith.addf %844, %846 : vector<1x128xf32>
    %848 = math.log %847 : vector<1x128xf32>
    %849 = arith.addf %839, %848 : vector<1x128xf32>
    %c0_208 = arith.constant 0 : index
    %c28 = arith.constant 28 : index
    %c0_209 = arith.constant 0 : index
    %850 = vector.load %arg12[%c0_208, %c28, %c0_209] : memref<1x32x128xf32, #tpu.memory_space<vmem>>, vector<1x1x128xf32>
    %851 = vector.shape_cast %850 : vector<1x1x128xf32> to vector<1x128xf32>
    %852 = arith.addf %849, %851 : vector<1x128xf32>
    %c28_i32 = arith.constant 28 : i32
    %853 = arith.addi %6, %c28_i32 : i32
    %854 = arith.sitofp %853 : i32 to f32
    %855 = vector.broadcast %854 : f32 to vector<1x1xf32>
    %856 = arith.cmpf olt, %855, %5 : vector<1x1xf32>
    %857 = vector.shape_cast %856 : vector<1x1xi1> to vector<1x1xi1>
    %858 = vector.broadcast %857 : vector<1x1xi1> to vector<1x128xi1>
    %859 = arith.select %858, %852, %831 : vector<1x128xi1>, vector<1x128xf32>
    %c1_i32_210 = arith.constant 1 : i32
    %860 = tpu.dynamic_rotate %859 by %c1_i32_210 dim 1 : vector<1x128xf32>, i32 -> vector<1x128xf32>
    %cst_211 = arith.constant -1.000000e+30 : f32
    %861 = vector.broadcast %cst_211 : f32 to vector<1x128xf32>
    %862 = arith.select %38, %860, %861 : vector<1x128xi1>, vector<1x128xf32>
    %c2_i32_212 = arith.constant 2 : i32
    %863 = tpu.dynamic_rotate %859 by %c2_i32_212 dim 1 : vector<1x128xf32>, i32 -> vector<1x128xf32>
    %cst_213 = arith.constant -1.000000e+30 : f32
    %864 = vector.broadcast %cst_213 : f32 to vector<1x128xf32>
    %865 = arith.select %35, %863, %864 : vector<1x128xi1>, vector<1x128xf32>
    %866 = arith.maximumf %859, %862 : vector<1x128xf32>
    %867 = arith.maximumf %866, %865 : vector<1x128xf32>
    %868 = arith.subf %859, %867 : vector<1x128xf32>
    %869 = math.exp %868 : vector<1x128xf32>
    %870 = arith.subf %862, %867 : vector<1x128xf32>
    %871 = math.exp %870 : vector<1x128xf32>
    %872 = arith.addf %869, %871 : vector<1x128xf32>
    %873 = arith.subf %865, %867 : vector<1x128xf32>
    %874 = math.exp %873 : vector<1x128xf32>
    %875 = arith.addf %872, %874 : vector<1x128xf32>
    %876 = math.log %875 : vector<1x128xf32>
    %877 = arith.addf %867, %876 : vector<1x128xf32>
    %c0_214 = arith.constant 0 : index
    %c29 = arith.constant 29 : index
    %c0_215 = arith.constant 0 : index
    %878 = vector.load %arg12[%c0_214, %c29, %c0_215] : memref<1x32x128xf32, #tpu.memory_space<vmem>>, vector<1x1x128xf32>
    %879 = vector.shape_cast %878 : vector<1x1x128xf32> to vector<1x128xf32>
    %880 = arith.addf %877, %879 : vector<1x128xf32>
    %c29_i32 = arith.constant 29 : i32
    %881 = arith.addi %6, %c29_i32 : i32
    %882 = arith.sitofp %881 : i32 to f32
    %883 = vector.broadcast %882 : f32 to vector<1x1xf32>
    %884 = arith.cmpf olt, %883, %5 : vector<1x1xf32>
    %885 = vector.shape_cast %884 : vector<1x1xi1> to vector<1x1xi1>
    %886 = vector.broadcast %885 : vector<1x1xi1> to vector<1x128xi1>
    %887 = arith.select %886, %880, %859 : vector<1x128xi1>, vector<1x128xf32>
    %c1_i32_216 = arith.constant 1 : i32
    %888 = tpu.dynamic_rotate %887 by %c1_i32_216 dim 1 : vector<1x128xf32>, i32 -> vector<1x128xf32>
    %cst_217 = arith.constant -1.000000e+30 : f32
    %889 = vector.broadcast %cst_217 : f32 to vector<1x128xf32>
    %890 = arith.select %38, %888, %889 : vector<1x128xi1>, vector<1x128xf32>
    %c2_i32_218 = arith.constant 2 : i32
    %891 = tpu.dynamic_rotate %887 by %c2_i32_218 dim 1 : vector<1x128xf32>, i32 -> vector<1x128xf32>
    %cst_219 = arith.constant -1.000000e+30 : f32
    %892 = vector.broadcast %cst_219 : f32 to vector<1x128xf32>
    %893 = arith.select %35, %891, %892 : vector<1x128xi1>, vector<1x128xf32>
    %894 = arith.maximumf %887, %890 : vector<1x128xf32>
    %895 = arith.maximumf %894, %893 : vector<1x128xf32>
    %896 = arith.subf %887, %895 : vector<1x128xf32>
    %897 = math.exp %896 : vector<1x128xf32>
    %898 = arith.subf %890, %895 : vector<1x128xf32>
    %899 = math.exp %898 : vector<1x128xf32>
    %900 = arith.addf %897, %899 : vector<1x128xf32>
    %901 = arith.subf %893, %895 : vector<1x128xf32>
    %902 = math.exp %901 : vector<1x128xf32>
    %903 = arith.addf %900, %902 : vector<1x128xf32>
    %904 = math.log %903 : vector<1x128xf32>
    %905 = arith.addf %895, %904 : vector<1x128xf32>
    %c0_220 = arith.constant 0 : index
    %c30 = arith.constant 30 : index
    %c0_221 = arith.constant 0 : index
    %906 = vector.load %arg12[%c0_220, %c30, %c0_221] : memref<1x32x128xf32, #tpu.memory_space<vmem>>, vector<1x1x128xf32>
    %907 = vector.shape_cast %906 : vector<1x1x128xf32> to vector<1x128xf32>
    %908 = arith.addf %905, %907 : vector<1x128xf32>
    %c30_i32 = arith.constant 30 : i32
    %909 = arith.addi %6, %c30_i32 : i32
    %910 = arith.sitofp %909 : i32 to f32
    %911 = vector.broadcast %910 : f32 to vector<1x1xf32>
    %912 = arith.cmpf olt, %911, %5 : vector<1x1xf32>
    %913 = vector.shape_cast %912 : vector<1x1xi1> to vector<1x1xi1>
    %914 = vector.broadcast %913 : vector<1x1xi1> to vector<1x128xi1>
    %915 = arith.select %914, %908, %887 : vector<1x128xi1>, vector<1x128xf32>
    %c1_i32_222 = arith.constant 1 : i32
    %916 = tpu.dynamic_rotate %915 by %c1_i32_222 dim 1 : vector<1x128xf32>, i32 -> vector<1x128xf32>
    %cst_223 = arith.constant -1.000000e+30 : f32
    %917 = vector.broadcast %cst_223 : f32 to vector<1x128xf32>
    %918 = arith.select %38, %916, %917 : vector<1x128xi1>, vector<1x128xf32>
    %c2_i32_224 = arith.constant 2 : i32
    %919 = tpu.dynamic_rotate %915 by %c2_i32_224 dim 1 : vector<1x128xf32>, i32 -> vector<1x128xf32>
    %cst_225 = arith.constant -1.000000e+30 : f32
    %920 = vector.broadcast %cst_225 : f32 to vector<1x128xf32>
    %921 = arith.select %35, %919, %920 : vector<1x128xi1>, vector<1x128xf32>
    %922 = arith.maximumf %915, %918 : vector<1x128xf32>
    %923 = arith.maximumf %922, %921 : vector<1x128xf32>
    %924 = arith.subf %915, %923 : vector<1x128xf32>
    %925 = math.exp %924 : vector<1x128xf32>
    %926 = arith.subf %918, %923 : vector<1x128xf32>
    %927 = math.exp %926 : vector<1x128xf32>
    %928 = arith.addf %925, %927 : vector<1x128xf32>
    %929 = arith.subf %921, %923 : vector<1x128xf32>
    %930 = math.exp %929 : vector<1x128xf32>
    %931 = arith.addf %928, %930 : vector<1x128xf32>
    %932 = math.log %931 : vector<1x128xf32>
    %933 = arith.addf %923, %932 : vector<1x128xf32>
    %c0_226 = arith.constant 0 : index
    %c31 = arith.constant 31 : index
    %c0_227 = arith.constant 0 : index
    %934 = vector.load %arg12[%c0_226, %c31, %c0_227] : memref<1x32x128xf32, #tpu.memory_space<vmem>>, vector<1x1x128xf32>
    %935 = vector.shape_cast %934 : vector<1x1x128xf32> to vector<1x128xf32>
    %936 = arith.addf %933, %935 : vector<1x128xf32>
    %c31_i32 = arith.constant 31 : i32
    %937 = arith.addi %6, %c31_i32 : i32
    %938 = arith.sitofp %937 : i32 to f32
    %939 = vector.broadcast %938 : f32 to vector<1x1xf32>
    %940 = arith.cmpf olt, %939, %5 : vector<1x1xf32>
    %941 = vector.shape_cast %940 : vector<1x1xi1> to vector<1x1xi1>
    %942 = vector.broadcast %941 : vector<1x1xi1> to vector<1x128xi1>
    %943 = arith.select %942, %936, %915 : vector<1x128xi1>, vector<1x128xf32>
    %c0_228 = arith.constant 0 : index
    %c0_229 = arith.constant 0 : index
    %944 = vector.load %arg11[%c0_228, %c0_229] : memref<1x128xf32, #tpu.memory_space<vmem>>, vector<1x128xf32>
    tpu.vector_store %arg11[%c0_228, %c0_229], %943 {strides = array<i32>} : memref<1x128xf32, #tpu.memory_space<vmem>>, vector<1x128xf32>,
    %c1_i32_230 = arith.constant 1 : i32
    %945 = arith.cmpi eq, %arg1, %c1_i32_230 : i32
    %946 = arith.extui %945 : i1 to i32
    %c0_i32_231 = arith.constant 0 : i32
    %947 = arith.cmpi ne, %946, %c0_i32_231 : i32
    scf.if %947 {
      %c0_232 = arith.constant 0 : index
      %c0_233 = arith.constant 0 : index
      %c0_234 = arith.constant 0 : index
      %948 = vector.load %arg6[%c0_232, %c0_233, %c0_234] : memref<1x1x128xf32, #tpu.memory_space<vmem>>, vector<1x1x128xf32>
      %949 = vector.shape_cast %948 : vector<1x1x128xf32> to vector<1x128xf32>
      %cst_235 = arith.constant 0.000000e+00 : f32
      %950 = vector.broadcast %cst_235 : f32 to vector<1x128xf32>
      %951 = arith.cmpf ogt, %949, %950 : vector<1x128xf32>
      %cst_236 = arith.constant -1.000000e+30 : f32
      %952 = vector.broadcast %cst_236 : f32 to vector<1x128xf32>
      %953 = arith.select %951, %943, %952 : vector<1x128xi1>, vector<1x128xf32>
      %cst_237 = arith.constant dense<0xFF800000> : vector<1xf32>
      %954 = vector.multi_reduction <maximumf>, %953, %cst_237 [1] : vector<1x128xf32> to vector<1xf32>
      %955 = vector.shape_cast %954 : vector<1xf32> to vector<1x1xf32>
      %956 = vector.broadcast %955 : vector<1x1xf32> to vector<1x128xf32>
      %957 = arith.subf %953, %956 : vector<1x128xf32>
      %958 = math.exp %957 : vector<1x128xf32>
      %959 = arith.mulf %958, %949 : vector<1x128xf32>
      %cst_238 = arith.constant dense<0.000000e+00> : vector<1xf32>
      %960 = vector.multi_reduction <add>, %959, %cst_238 [1] : vector<1x128xf32> to vector<1xf32>
      %961 = vector.shape_cast %960 : vector<1xf32> to vector<1x1xf32>
      %962 = math.log %961 : vector<1x1xf32>
      %963 = arith.addf %955, %962 : vector<1x1xf32>
      %964 = vector.shape_cast %963 : vector<1x1xf32> to vector<1x1x1xf32>
      %cst_239 = arith.constant 0.000000e+00 : f32
      %965 = vector.broadcast %cst_239 : f32 to vector<1x1x1xf32>
      %966 = arith.subf %965, %964 : vector<1x1x1xf32>
      %967 = vector.shape_cast %966 : vector<1x1x1xf32> to vector<1x1x1xf32>
      %968 = vector.broadcast %967 : vector<1x1x1xf32> to vector<1x1x128xf32>
      %c0_240 = arith.constant 0 : index
      %c0_241 = arith.constant 0 : index
      %c0_242 = arith.constant 0 : index
      %969 = vector.load %arg8[%c0_240, %c0_241, %c0_242] : memref<1x1x128xf32, #tpu.memory_space<vmem>>, vector<1x1x128xf32>
      tpu.vector_store %arg8[%c0_240, %c0_241, %c0_242], %968 {strides = array<i32>} : memref<1x1x128xf32, #tpu.memory_space<vmem>>, vector<1x1x128xf32>,
    } else {
    }
    return
  }
  func.func @transform_0(%arg0: i32, %arg1: i32) -> (i32, i32, i32) {
    %c0_i32 = arith.constant 0 : i32
    %c0_i32_0 = arith.constant 0 : i32
    return %arg0, %arg1, %c0_i32 : i32, i32, i32
  }
  func.func @transform_1(%arg0: i32, %arg1: i32) -> (i32, i32, i32) {
    %c0_i32 = arith.constant 0 : i32
    %c0_i32_0 = arith.constant 0 : i32
    %c0_i32_1 = arith.constant 0 : i32
    return %arg0, %c0_i32, %c0_i32_0 : i32, i32, i32
  }
  func.func @transform_2(%arg0: i32, %arg1: i32) -> (i32, i32, i32) {
    %c0_i32 = arith.constant 0 : i32
    %c0_i32_0 = arith.constant 0 : i32
    %c0_i32_1 = arith.constant 0 : i32
    return %arg0, %c0_i32, %c0_i32_0 : i32, i32, i32
  }
  func.func @transform_3(%arg0: i32, %arg1: i32) -> (i32, i32, i32) {
    %c0_i32 = arith.constant 0 : i32
    %c0_i32_0 = arith.constant 0 : i32
    %c0_i32_1 = arith.constant 0 : i32
    return %arg0, %c0_i32, %c0_i32_0 : i32, i32, i32
  }
  func.func @transform_4(%arg0: i32, %arg1: i32) -> (i32, i32, i32) {
    %c0_i32 = arith.constant 0 : i32
    %c0_i32_0 = arith.constant 0 : i32
    %c0_i32_1 = arith.constant 0 : i32
    return %arg0, %c0_i32, %c0_i32_0 : i32, i32, i32
  }
  func.func @transform_5(%arg0: i32, %arg1: i32) -> (i32, i32, i32) {
    %c0_i32 = arith.constant 0 : i32
    %c0_i32_0 = arith.constant 0 : i32
    %c0_i32_1 = arith.constant 0 : i32
    return %arg0, %c0_i32, %c0_i32_0 : i32, i32, i32
  }
  func.func @transform_6(%arg0: i32, %arg1: i32) -> (i32, i32, i32) {
    %c0_i32 = arith.constant 0 : i32
    %c0_i32_0 = arith.constant 0 : i32
    %c0_i32_1 = arith.constant 0 : i32
    return %arg0, %c0_i32, %c0_i32_0 : i32, i32, i32
  }
  func.func @transform_7(%arg0: i32, %arg1: i32) -> (i32, i32, i32) {
    %c0_i32 = arith.constant 0 : i32
    %c0_i32_0 = arith.constant 0 : i32
    %c0_i32_1 = arith.constant 0 : i32
    return %arg0, %c0_i32, %c0_i32_0 : i32, i32, i32
  }
}

</mosaic_0001>

<bundles_post_ra>
// kernel: tpu_custom_call.1
= control target key start
LH: loop header
LB: loop body
LE: loop exit
PB: predicated region body
PF: predicated region fallthrough
CT: control target
= control target key end

     0   :  { %s3650_s0 = inlined_call_operand.hbm [shape: f32[2,64,128], index: 0, kind: input, shape index: {}]   ;;  %s3651_s1 = inlined_call_operand.hbm [shape: s32[2,1,128], index: 1, kind: input, shape index: {}]   ;;  %s3652_s2 = inlined_call_operand.vmem [shape: f32[2,1,128], index: 2, kind: input, shape index: {}]   ;;  %s3653_s3 = inlined_call_operand.vmem [shape: f32[2,1,128], index: 3, kind: input, shape index: {}]   ;;  %s3654_s4 = inlined_call_operand.vmem [shape: f32[2,1,128], index: 4, kind: input, shape index: {}]   ;;  %s3655_s5 = inlined_call_operand.vmem [shape: f32[2,1,128], index: 5, kind: input, shape index: {}]   ;;  %s3656_s6 = inlined_call_operand.hbm [shape: f32[2,1,128], index: 6, kind: output, shape index: {0}]   ;;  %s3657_s7 = inlined_call_operand.hbm [shape: f32[2,1,128], index: 7, kind: output, shape index: {1}]  }
   0x1   :  { %3666 = sst [smem:[#allocation23_spill]] %s3650_s0 }
   0x2   :  { %3667 = sst [smem:[#allocation24_spill]] %s3651_s1 }
   0x3   :  { %3668 = sst [smem:[#allocation25_spill]] %s3654_s4 }
   0x4   :  { %3669 = sst [smem:[#allocation26_spill]] %s3655_s5 }
   0x5   :  { %3670 = sst [smem:[#allocation27_spill]] %s3656_s6 }
   0x6   :  { %3671 = sst [smem:[#allocation28_spill]] %s3657_s7 }
   0x7   :  { %13 = vsyncpa [#allocation6], 0 }
   0x8   :  { %15 = vsyncpa [#allocation6 + $0x1], 0 }
   0x9   :  { %16 = vsyncpa [#allocation9], 0 }
   0xa   :  { %18 = vsyncpa [#allocation9 + $0x1], 0 }
   0xb   :  { %19 = vsyncpa [#allocation7], 0 }
   0xc   :  { %21 = vsyncpa [#allocation7 + $0x1], 0 }
   0xd   :  { %22 = vsyncpa [#allocation12], 0 }
   0xe   :  { %24 = vsyncpa [#allocation12 + $0x1], 0  ;;  %s2949_s24 = smov 0   ;;  %s2951_s25 = smov 0  }
   0xf   :  { %s2953_s26 = smov 0   ;;  %s2955_s27 = smov 0  }
  0x10   :  { %s2957_s28 = smov 0   ;;  %s2959_s29 = smov 0  }
  0x11   :  { %s2961_s30 = smov 0   ;;  %s2963_s8 = smov 0  }
  0x12   :  { %s2965_s9 = smov 0   ;;  %s2967_s10 = smov 0  }
  0x13   :  { %s2969_s11 = smov 0  }
  0x14 LB: > { %3672 = sst [smem:[#allocation17_spill]] %s2874_s29  ;;  %s39_s12 = sadd.s32 1, %s2886_s9  ;;  %s2894_s11 = sphi %s2969_s11, %s30_s11   ;;  %s2890_s10 = sphi %s2967_s10, %s3701_s10   ;;  %s2886_s9 = sphi %s2965_s9, %s3700_s9   ;;  %s2882_s8 = sphi %s2963_s8, %s3699_s8   ;;  %s2878_s30 = sphi %s2961_s30, %s3698_s30   ;;  %s2874_s29 = sphi %s2959_s29, %s3697_s29   ;;  %s2870_s28 = sphi %s2957_s28, %s3706_s28   ;;  %s2866_s27 = sphi %s2955_s27, %s3705_s27   ;;  %s2862_s26 = sphi %s2953_s26, %s3704_s26   ;;  %s2858_s25 = sphi %s2951_s25, %s3703_s25   ;;  %s2854_s24 = sphi %s2949_s24, %s3702_s24  }
  0x15   : > { %3673 = sst [smem:[#allocation18_spill]] %s2886_s9  ;;  %s42_s13 = sadd.s32 1, %s2890_s10 }
  0x16   : > { %3674 = sst [smem:[#allocation19_spill]] %s2890_s10  ;;  %p40_p0 = scmp.ge.s32.totalorder %s39_s12, 2 }
  0x17   : > { %s51_s14 = sadd.s32 1, %s2874_s29  ;;  %p58_p1 = scmp.ne.s32.totalorder %s2874_s29, %s2870_s28 }
  0x18   : > { %p59_p2 = scmp.eq.s32.totalorder %s2894_s11, 0  ;;  %s3708_s12 = smov (%p40_p0, %s39_s12), 0 }
  0x19   : > { %3675 = sst [smem:[#allocation20_spill]] %s3708_s12  ;;  %s3710_s13 = smov (!%p40_p0, %s42_s13), %s2890_s10 }
  0x1a   : > { %s47_s15 = ssub.s32 %s2886_s9, %s3708_s12  ;;  %p3017_p3 = por %p59_p2, %p58_p1 }
  0x1b   : > { %p44_p4 = scmp.ge.s32.totalorder %s3710_s13, 2  ;;  %p64_p5 = scmp.ne.s32.totalorder %s2870_s28, %s2866_s27 }
  0x1c   : > { %p2303_p6 = scmp.lt.s32.totalorder %s2894_s11, 4  ;;  %s270_s17 = sand.u32 1, %s2874_s29  }
  0x1d   : > { %s3712_s13 = smov (%p44_p4, %s3710_s13), 0  ;;  %s2156_s18 = sshll.u32 %s2886_s9, 2 }
  0x1e   : > { %3677 = sst [smem:[#allocation21_spill]] %s3712_s13  ;;  %s3030_s19 = ssub.s32 %s2890_s10, %s3712_s13 }
  0x1f   : > { %s48_s20 = sor.u32 %s47_s15, %s3030_s19  ;;  %s2155_s21 = sshll.u32 %s270_s17, 5 }
  0x20   : > { %p49_p7 = scmp.eq.s32.totalorder %s48_s20, 0  ;;  %s2157_s22 = sshll.u32 %s2890_s10, 3 }
  0x21   : > { %s274_s23 = scalar_lea.vmem [#allocation5], %s2155_s21  ;;  %s280_s6 = sadd.s32 %s2157_s22, %s2156_s18 }
  0x22   : > { %s283_s12 = sshll.u32 %s274_s23, 4  ;;  %s2158_s5 = sshll.u32 %s280_s6, 7  ;;  %s284_s12 = int_to_ptr.vmem [resolvable:$true] %s283_s12 }
  0x23   : > { %s3035_s7 = scalar_select %p49_p7, %s2874_s29, %s51_s14  }
  0x24   : > { %p3041_p8 = pnand %p2303_p6, %p3017_p3  ;;  %s3680_s0 = sld [smem:[#allocation23_spill]] }
  0x25   : > { %3678 = sst [smem:[#allocation22_spill]] %s3035_s7  ;;  %s271_s20 = scalar_lea.sflag [#allocation6], %s270_s17 }
  0x26   : > { %p2686_p9 = pneg %p3041_p8  ;;  %s2697_s21 = scalar_lea.vmem %s284_s12, 512 }
  0x27   : > { %p2698_p10 = scmp.ne.s32.totalorder %s284_s12, %s2697_s21  ;;  %s2896_s14 = smov [#allocation5]  }
  0x28   : > { %s2702_s6 = sshll.u32 %s2896_s14, 4  ;;  %s2703_s6 = int_to_ptr.vmem [resolvable:$false] %s2702_s6 }
  0x29   : > { %p2700_p11 = pnand %p2698_p10, %p2686_p9  ;;  %s2704_s16 = scalar_lea.vmem %s2703_s6, 1024 }
  0x2a   : > { %s282_s15 = scalar_lea.hbm %s3680_s0, %s2158_s5  ;;  %p2705_p13 = scmp.lt.s32.totalorder %s284_s12, %s2703_s6 }
  0x2b   : > { %p2701_p12 = pneg %p2700_p11  ;;  %p2706_p0 = scmp.lt.s32.totalorder %s2704_s16, %s2697_s21 }
  0x2d   : > { %p2707_p1 = por %p2706_p0, %p2705_p13 }
  0x2f   : > { %p2708_p3 = pnand %p2707_p1, %p2701_p12 }
  0x31   : > { %2711 = shalt.err (!%p2708_p3)
}
  0x32   : > { %s2897_s18 = smov 128   ;;  %s2898_s5 = smov 8  }
  0x33   : > { %2292 = dma.hbm_to_vmem [thread:$0]  (!%p3041_p8), %s282_s15, 512, %s284_s12, %s271_s20, %s2897_s18, %s2897_s18, %s2898_s5  }
  0x34   : > { %p2160_p4 = scmp.ge.s32.totalorder %s2894_s11, 1  ;;  %p332_p7 = scmp.lt.s32.totalorder %s2894_s11, 5 }
  0x35   : > { %s2151_s13 = sadd.s32 4294967295, %s2894_s11   ;;  %s2152_s17 = sadd.s32 4294967294, %s2894_s11  }
  0x36   : > { %p3054_p9 = pnand %p2160_p4, %p332_p7  ;;  %p65_p10 = scmp.eq.s32.totalorder %s2151_s13, 0 }
  0x37   : > { %p75_p11 = scmp.eq.s32.totalorder %s3030_s19, 0  ;;  %s77_s22 = sadd.s32 1, %s2862_s26 }
  0x38   : > { %p3065_p12 = por %p65_p10, %p64_p5  ;;  %p84_p8 = scmp.ne.s32.totalorder %s2862_s26, %s2858_s25 }
  0x39   : > { %s3072_s4 = scalar_select %p75_p11, %s2862_s26, %s77_s22  }
  0x3a   : > { %p3076_p13 = por %p84_p8, %p59_p2  ;;  %p90_p0 = scmp.ne.s32.totalorder %s2858_s25, %s2854_s24 }
  0x3b   : > { %p218_p1 = scmp.eq.s32.totalorder %s2151_s13, 3  ;;  %p224_p3 = scmp.eq.s32.totalorder %s2152_s17, 3 }
  0x3c   : > { %p3082_p4 = por %p90_p0, %p65_p10  ;;  %s293_s27 = sand.u32 1, %s2862_s26  }
  0x3d   : > { %p3087_p5 = por %p218_p1, %p84_p8  ;;  %p3091_p7 = por %p224_p3, %p90_p0 }
  0x3e   : > { %s2159_s21 = sshll.u32 %s2890_s10, 4  ;;  %s296_s14 = scalar_lea.vmem [#allocation8], %s293_s27 }
  0x3f   : > { %s3685_s15 = scalar_select %p3087_p5, 1, 0 }
  0x40   : > { %s3686_s20 = scalar_select %p3091_p7, 1, 0 }
  0x41   : > { %s303_s6 = sshll.u32 %s296_s14, 4  ;;  %s3687_s1 = sld [smem:[#allocation24_spill]]  ;;  %s304_s6 = int_to_ptr.vmem [resolvable:$true] %s303_s6 }
  0x42   : > { %p3103_p2 = pnand %p2303_p6, %p3076_p13  ;;  %s294_s17 = scalar_lea.sflag [#allocation9], %s293_s27 }
  0x43   : > { %s2725_s22 = scalar_lea.vmem %s304_s6, 16  ;;  %s2899_s14 = smov [#allocation8]  }
  0x44   : > { %p2714_p10 = pneg %p3103_p2  ;;  %p2726_p11 = scmp.ne.s32.totalorder %s304_s6, %s2725_s22 }
  0x45   : > { %s2730_s0 = sshll.u32 %s2899_s14, 4  ;;  %s2731_s0 = int_to_ptr.vmem [resolvable:$false] %s2730_s0 }
  0x46   : > { %p2728_p8 = pnand %p2726_p11, %p2714_p10  ;;  %s2732_s16 = scalar_lea.vmem %s2731_s0, 32 }
  0x47   : > { %s301_s5 = scalar_lea.hbm %s3687_s1, %s2159_s21  ;;  %p2733_p1 = scmp.lt.s32.totalorder %s304_s6, %s2731_s0 }
  0x48   : > { %p2729_p0 = pneg %p2728_p8  ;;  %p2734_p3 = scmp.lt.s32.totalorder %s2732_s16, %s2725_s22 }
  0x4a   : > { %p2735_p7 = por %p2734_p3, %p2733_p1 }
  0x4c   : > { %p2736_p5 = pnand %p2735_p7, %p2729_p0 }
  0x4e   : > { %2739 = shalt.err (!%p2736_p5)
}
  0x4f   : > { %2295 = dma.hbm_to_vmem [thread:$0]  (!%p3103_p2), %s301_s5, 16, %s304_s6, %s294_s17  }
  0x50   : > { %336 = sbr.rel (%p3054_p9) target bundleno = 5824 (0x16c0), region = 44  ;;  %s338_s12 = sand.u32 (!%p3054_p9), 1, %s2870_s28  }
  0x51   : > { %s2161_s27 = sshll.u32 (!%p3054_p9), %s338_s12, 5  ;;  %s339_s21 = scalar_lea.sflag (!%p3054_p9), [#allocation6], %s338_s12 }
  0x52   : > { %s3114_s18 = scalar_lea.vmem (!%p3054_p9), [#allocation5], %s2161_s27 }
  0x55   : > { %2837 = dma.done.wait (%p3065_p12), %s339_s21, 512  }
  0x56   : > { %2839 = vsyncadd (%p3065_p12), %s339_s21, 4294966784  ;;  %s3121_s0 = sand.u32 1, %s2858_s25  }
  0x57   : > { %s348_s9 = scalar_lea.sflag [#allocation9], %s3121_s0  ;;  %s350_s6 = scalar_lea.vmem [#allocation8], %s3121_s0 }
  0x58   : > { %2841 = dma.done.wait (%p3082_p4), %s348_s9, 16  }
  0x59   : > { %2843 = vsyncadd (%p3082_p4), %s348_s9, 4294967280  ;;  %p401_p6 = scmp.lt.s32.totalorder %s2882_s8, 1  ;;  %p413_p9 = scmp.eq.s32.totalorder %s2878_s30, 0 }
  0x5a   : > { %s3689_s27 = sld [smem:[#allocation25_spill]]  ;;  %s3155_s29 = scalar_lea.vmem [#allocation10], %s3121_s0 }
  0x5b   : > { %s3132_s23 = scalar_select %p401_p6, %s2882_s8, 1 }
  0x5c   : > { %s3690_s10 = sld [smem:[#allocation26_spill]]  ;;  %s3158_s5 = scalar_lea.vmem [#allocation11], %s3121_s0 }
  0x5d   : > { %s3138_s17 = scalar_lea.vmem %s3652_s2, %s3132_s23  ;;  %s406_s14 = scalar_lea.vmem %s3653_s3, %s3132_s23 }
  0x5e   : > { %p2162_p12 = scmp.ne.s32.totalorder %s2878_s30, 0 }
  0x60   : > { %s409_s21 = scalar_lea.vmem %s3689_s27, %s3132_s23  ;;  %416 = sbr.rel (%p2162_p12) target bundleno = 119 (0x77), region = 56 }
  0x62   : > { %s3152_s7 = scalar_lea.vmem %s3690_s10, %s3132_s23 }
  0x65   : > { %v421_v0 = vlaneseq  ;;  %v2900_v1 = vmov -1e+30   ;;  %v2901_v2 = vmov 0.0   ;;  %v2163_v3 = vld [vmem:[%s350_s6] ss:$0 sm:$0xff] }
  0x66   : > { %417 = vst [vmem:[#allocation3] sm:$0x1] %v2900_v1  ;;  %418 = vst [vmem:[%s3158_s5] sm:$0x1] %v2901_v2 }
  0x67   : > { %419 = vst [vmem:[%s3155_s29] sm:$0x1] %v2901_v2  ;;  %v422_v4 = vshrl.u32 %v421_v0, 7 }
  0x69   : > { %vm442_vm0 = vcmp.eq.s32.totalorder %v2163_v3, %v422_v4  ;;  %v423_v5 = vadd.s32 8, %v422_v4  ;;  %v424_v6 = vadd.s32 16, %v422_v4  ;;  %v425_v7 = vadd.s32 24, %v422_v4 }
  0x6a   : > { %v2164_v8 = vsel %vm442_vm0, 1.0, %v2901_v2  ;;  %v426_v9 = vadd.s32 32, %v422_v4  ;;  %v427_v10 = vadd.s32 40, %v422_v4  ;;  %v428_v11 = vadd.s32 48, %v422_v4 }
  0x6b   : > { %490 = vst [vmem:[#allocation2 + $0x30] sm:$0xff] %v2164_v8  ;;  %vm443_vm1 = vcmp.eq.s32.totalorder %v2163_v3, %v423_v5  ;;  %vm444_vm2 = vcmp.eq.s32.totalorder %v2163_v3, %v424_v6  ;;  %vm445_vm3 = vcmp.eq.s32.totalorder %v2163_v3, %v425_v7  ;;  %v429_v12 = vadd.s32 56, %v422_v4 }
  0x6c   : > { %v2165_v13 = vsel %vm443_vm1, 1.0, %v2901_v2  ;;  %v2166_v14 = vsel %vm444_vm2, 1.0, %v2901_v2  ;;  %v2167_v15 = vsel %vm445_vm3, 1.0, %v2901_v2  ;;  %vm446_vm4 = vcmp.eq.s32.totalorder %v2163_v3, %v426_v9 }
  0x6d   : > { %491 = vst [vmem:[#allocation2] sm:$0xff] %v2165_v13  ;;  %492 = vst [vmem:[#allocation2 + $0x58] sm:$0xff] %v2166_v14  ;;  %v2168_v16 = vsel %vm446_vm4, 1.0, %v2901_v2  ;;  %vm447_vm5 = vcmp.eq.s32.totalorder %v2163_v3, %v427_v10  ;;  %vm448_vm6 = vcmp.eq.s32.totalorder %v2163_v3, %v428_v11  ;;  %vm449_vm7 = vcmp.eq.s32.totalorder %v2163_v3, %v429_v12 }
  0x6e   : > { %493 = vst [vmem:[#allocation2 + $0x18] sm:$0xff] %v2167_v15  ;;  %494 = vst [vmem:[#allocation2 + $0x50] sm:$0xff] %v2168_v16  ;;  %v2169_v17 = vsel %vm447_vm5, 1.0, %v2901_v2  ;;  %v2170_v18 = vsel %vm448_vm6, 1.0, %v2901_v2  ;;  %v2171_v19 = vsel %vm449_vm7, 1.0, %v2901_v2  ;;  %v430_v20 = vadd.s32 64, %v422_v4 }
  0x6f   : > { %495 = vst [vmem:[#allocation2 + $0x68] sm:$0xff] %v2169_v17  ;;  %496 = vst [vmem:[#allocation2 + $0x8] sm:$0xff] %v2170_v18  ;;  %v431_v21 = vadd.s32 72, %v422_v4  ;;  %v432_v22 = vadd.s32 80, %v422_v4  ;;  %v433_v23 = vadd.s32 88, %v422_v4  ;;  %v434_v24 = vadd.s32 96, %v422_v4 }
  0x70   : > { %497 = vst [vmem:[#allocation2 + $0x48] sm:$0xff] %v2171_v19  ;;  %vm450_vm8 = vcmp.eq.s32.totalorder %v2163_v3, %v430_v20  ;;  %v435_v25 = vadd.s32 104, %v422_v4  ;;  %v436_v26 = vadd.s32 112, %v422_v4  ;;  %v437_v27 = vadd.s32 120, %v422_v4 }
  0x71   : > { %v2172_v28 = vsel %vm450_vm8, 1.0, %v2901_v2  ;;  %vm451_vm9 = vcmp.eq.s32.totalorder %v2163_v3, %v431_v21  ;;  %vm452_vm10 = vcmp.eq.s32.totalorder %v2163_v3, %v432_v22  ;;  %vm453_vm11 = vcmp.eq.s32.totalorder %v2163_v3, %v433_v23 }
  0x72   : > { %498 = vst [vmem:[#allocation2 + $0x40] sm:$0xff] %v2172_v28  ;;  %v2173_v29 = vsel %vm451_vm9, 1.0, %v2901_v2  ;;  %v2174_v30 = vsel %vm452_vm10, 1.0, %v2901_v2  ;;  %v2175_v31 = vsel %vm453_vm11, 1.0, %v2901_v2  ;;  %vm454_vm12 = vcmp.eq.s32.totalorder %v2163_v3, %v434_v24 }
  0x73   : > { %499 = vst [vmem:[#allocation2 + $0x20] sm:$0xff] %v2173_v29  ;;  %500 = vst [vmem:[#allocation2 + $0x10] sm:$0xff] %v2174_v30  ;;  %v2176_v32 = vsel %vm454_vm12, 1.0, %v2901_v2  ;;  %vm455_vm13 = vcmp.eq.s32.totalorder %v2163_v3, %v435_v25  ;;  %vm456_vm14 = vcmp.eq.s32.totalorder %v2163_v3, %v436_v26  ;;  %vm457_vm15 = vcmp.eq.s32.totalorder %v2163_v3, %v437_v27 }
  0x74   : > { %501 = vst [vmem:[#allocation2 + $0x38] sm:$0xff] %v2175_v31  ;;  %502 = vst [vmem:[#allocation2 + $0x60] sm:$0xff] %v2176_v32  ;;  %v2177_v33 = vsel %vm455_vm13, 1.0, %v2901_v2  ;;  %v2178_v34 = vsel %vm456_vm14, 1.0, %v2901_v2  ;;  %v2179_v35 = vsel %vm457_vm15, 1.0, %v2901_v2 }
  0x75   : > { %503 = vst [vmem:[#allocation2 + $0x70] sm:$0xff] %v2177_v33  ;;  %504 = vst [vmem:[#allocation2 + $0x78] sm:$0xff] %v2178_v34 }
  0x76   : > { %505 = vst [vmem:[#allocation2 + $0x28] sm:$0xff] %v2179_v35 }
  0x77 PF: > { %v2902_v38 = vmov 0   ;;  %s3183_s1 = sshll.u32 %s2878_s30, 5  ;;  %v506_v41 = vld [vmem:[%s3114_s18] sm:$0xff]  ;;  %v3188_v44 = vld [vmem:[#allocation3] sm:$0x1]  ;;  %s2903_s6 = smov 1   ;;  %v512_v59 = vlaneseq }
  0x78   : > { %2402 = vset.pattern.permute.xlu1 %v2902_v38  ;;  %s742_s10 = scvt.s32.f32 %s3183_s1  ;;  %2403 = vset.pattern.permute.xlu0 %v2902_v38  ;;  %v3193_v45 = vld [vmem:[%s3152_s7] sm:$0x1]  ;;  %s2904_s13 = smov 2   ;;  %v596_v50 = vld [vmem:[#allocation2 + $0x48] sm:$0xff]  ;;  %v593_v53 = vld [vmem:[#allocation2 + $0x50] sm:$0xff] }
  0x79   : > { %2243 = vmatprep.mubr.f32.mxu0 %v506_v41  ;;  %713 = vrot.lane.b32.xlu0 %v3188_v44, %s2903_s6  ;;  %v597_v49 = vld [vmem:[#allocation2 + $0x40] sm:$0xff]  ;;  %v595_v51 = vld [vmem:[#allocation2 + $0x8] sm:$0xff]  ;;  %v592_v54 = vld [vmem:[#allocation2 + $0x18] sm:$0xff]  ;;  %v3200_v60 = vand.u32 127, %v512_v59  ;;  %v3218_v18 = vshrl.u32 %v512_v59, 7  ;;  %s779_s16 = sadd.s32 1, %s3183_s1 }
  0x7a   : > { %v743_v42 = vstv %s742_s10  ;;  %v599_v46 = vld [vmem:[#allocation2 + $0x10] sm:$0xff]  ;;  %v598_v48 = vld [vmem:[#allocation2 + $0x20] sm:$0xff]  ;;  %v594_v52 = vld [vmem:[#allocation2 + $0x68] sm:$0xff]  ;;  %s780_s12 = scvt.s32.f32 %s779_s16  ;;  %v2905_v27 = vmov -1e+30   ;;  %s817_s27 = sadd.s32 2, %s3183_s1 }
  0x7b   : > { %v601_v40 = vld [vmem:[#allocation2 + $0x60] sm:$0xff]  ;;  %v600_v43 = vld [vmem:[#allocation2 + $0x38] sm:$0xff]  ;;  %vm744_vm0 = vcmp.lt.f32.partialorder %v743_v42, %v3193_v45  ;;  %v589_v57 = vld [vmem:[#allocation2 + $0x30] sm:$0xff]  ;;  %vm709_vm1 = vcmp.ge.s32.totalorder %v3200_v60, 1  ;;  %v3223_v22 = vsub.s32 0, %v3218_v18  ;;  %vm710_vm3 = vcmp.lt.s32.totalorder %v3200_v60, 2  ;;  %s818_s9 = scvt.s32.f32 %s817_s27 }
  0x7c   : > { %v603_v37 = vld [vmem:[#allocation2 + $0x78] sm:$0xff]  ;;  %v602_v39 = vld [vmem:[#allocation2 + $0x70] sm:$0xff]  ;;  %v745_v47 = vsel %vm744_vm0, 1, %v2902_v38  ;;  %v590_v56 = vld [vmem:[#allocation2] sm:$0xff]  ;;  %v711_v28 = vsel %vm710_vm3, 0.0, %v2905_v27  ;;  %v781_v31 = vstv %s780_s12  ;;  %s855_s10 = sadd.s32 3, %s3183_s1 }
  0x7d   : > { %v604_v36 = vld [vmem:[#allocation2 + $0x28] sm:$0xff]  ;;  %747 = vperm.xlu1 %2402, %v745_v47   ;;  %716 = vrot.lane.b32.xlu0 %v3188_v44, %s2904_s13  ;;  %v591_v55 = vld [vmem:[#allocation2 + $0x58] sm:$0xff]  ;;  %v3208_v62 = vld [vmem:[%s406_s14] sm:$0x1]  ;;  %s738_s14 = scalar_select %p413_p9, 1, 0  ;;  %vm782_vm6 = vcmp.lt.f32.partialorder %v781_v31, %v3193_v45 }
  0x7e   : > { %2211 = vmatprep.subr.mxu0 %v604_v36  ;;  %2249 = vmatprep.subr.mxu1 %v604_v36  ;;  %v507_v58 = vld [vmem:[%s3114_s18 + $0x8] sm:$0xff]  ;;  %vm706_vm2 = vcmp.gt.f32.partialorder %v3208_v62, 0.0  ;;  %v2185_v15 = vld [vmem:[%s3138_s17] ss:$0 sm:$0xff]  ;;  %s856_s19 = scvt.s32.f32 %s855_s10  ;;  %s893_s22 = sadd.s32 4, %s3183_s1 }
  0x7f   : > { %2212 = vmatpush3.msra.mxu0 %v604_v36  ;;  %2265 = vmatpush3.msra.mxu1 %v604_v36  ;;  %v739_v25 = vstv %s738_s14  ;;  %v783_v36 = vsel %vm782_vm6, 1, %v2902_v38  ;;  %s894_s14 = scvt.s32.f32 %s893_s22  ;;  %s931_s16 = sadd.s32 5, %s3183_s1 }
  0x80   : > { %2213 = vmatprep.subr.mxu0 %v603_v37  ;;  %2250 = vmatprep.subr.mxu1 %v603_v37  ;;  %vm740_vm4 = vcmp.eq.s32.totalorder %v739_v25, 1  ;;  %s932_s12 = scvt.s32.f32 %s931_s16  ;;  %s969_s27 = sadd.s32 6, %s3183_s1 }
  0x81   : > { %2214 = vmatpush3.msra.mxu0 %v603_v37  ;;  %2266 = vmatpush3.msra.mxu1 %v603_v37  ;;  %s1007_s10 = sadd.s32 7, %s3183_s1  ;;  %s1045_s22 = sadd.s32 8, %s3183_s1 }
  0x82   : > { %2215 = vmatprep.subr.mxu0 %v602_v39  ;;  %2251 = vmatprep.subr.mxu1 %v602_v39  ;;  %s1083_s16 = sadd.s32 9, %s3183_s1  ;;  %p2186_p13 = scmp.ne.s32.totalorder %s2878_s30, 1 }
  0x83   : > { %2216 = vmatpush3.msra.mxu0 %v602_v39  ;;  %2267 = vmatpush3.msra.mxu1 %v602_v39 }
  0x84   : > { %2217 = vmatprep.subr.mxu0 %v601_v40  ;;  %2252 = vmatprep.subr.mxu1 %v601_v40 }
  0x85   : > { %2218 = vmatpush3.msra.mxu0 %v601_v40  ;;  %2268 = vmatpush3.msra.mxu1 %v601_v40 }
  0x86   : > { %2219 = vmatprep.subr.mxu0 %v600_v43  ;;  %2253 = vmatprep.subr.mxu1 %v600_v43 }
  0x87   : > { %2220 = vmatpush3.msra.mxu0 %v600_v43  ;;  %2269 = vmatpush3.msra.mxu1 %v600_v43 }
  0x88   : > { %2221 = vmatprep.subr.mxu0 %v599_v46  ;;  %2254 = vmatprep.subr.mxu1 %v599_v46 }
  0x89   : > { %2222 = vmatpush3.msra.mxu0 %v599_v46  ;;  %2270 = vmatpush3.msra.mxu1 %v599_v46 }
  0x8a   : > { %2223 = vmatprep.subr.mxu0 %v598_v48  ;;  %2255 = vmatprep.subr.mxu1 %v598_v48 }
  0x8b   : > { %2224 = vmatpush3.msra.mxu0 %v598_v48  ;;  %2271 = vmatpush3.msra.mxu1 %v598_v48 }
  0x8c   : > { %2225 = vmatprep.subr.mxu0 %v597_v49  ;;  %2256 = vmatprep.subr.mxu1 %v597_v49 }
  0x8d   : > { %2226 = vmatpush3.msra.mxu0 %v597_v49  ;;  %2272 = vmatpush3.msra.mxu1 %v597_v49 }
  0x8e   : > { %2227 = vmatprep.subr.mxu0 %v596_v50  ;;  %2257 = vmatprep.subr.mxu1 %v596_v50 }
  0x8f   : > { %2228 = vmatpush3.msra.mxu0 %v596_v50  ;;  %2273 = vmatpush3.msra.mxu1 %v596_v50 }
  0x90   : > { %2229 = vmatprep.subr.mxu0 %v595_v51  ;;  %2258 = vmatprep.subr.mxu1 %v595_v51 }
  0x91   : > { %2230 = vmatpush3.msra.mxu0 %v595_v51  ;;  %2274 = vmatpush3.msra.mxu1 %v595_v51 }
  0x92   : > { %2231 = vmatprep.subr.mxu0 %v594_v52  ;;  %2259 = vmatprep.subr.mxu1 %v594_v52 }
  0x93   : > { %2232 = vmatpush3.msra.mxu0 %v594_v52  ;;  %2275 = vmatpush3.msra.mxu1 %v594_v52 }
  0x94   : > { %2233 = vmatprep.subr.mxu0 %v593_v53  ;;  %2260 = vmatprep.subr.mxu1 %v593_v53 }
  0x95   : > { %2234 = vmatpush3.msra.mxu0 %v593_v53  ;;  %2276 = vmatpush3.msra.mxu1 %v593_v53 }
  0x96   : > { %2235 = vmatprep.subr.mxu0 %v592_v54  ;;  %2261 = vmatprep.subr.mxu1 %v592_v54 }
  0x97   : > { %2236 = vmatpush3.msra.mxu0 %v592_v54  ;;  %2277 = vmatpush3.msra.mxu1 %v592_v54 }
  0x98   : > { %2237 = vmatprep.subr.mxu0 %v591_v55  ;;  %2262 = vmatprep.subr.mxu1 %v591_v55 }
  0x99   : > { %2238 = vmatpush3.msra.mxu0 %v591_v55  ;;  %2278 = vmatpush3.msra.mxu1 %v591_v55 }
  0x9a   : > { %2239 = vmatprep.subr.mxu0 %v590_v56  ;;  %2263 = vmatprep.subr.mxu1 %v590_v56 }
  0x9b   : > { %2240 = vmatpush3.msra.mxu0 %v590_v56  ;;  %2279 = vmatpush3.msra.mxu1 %v590_v56 }
  0x9c   : > { %2241 = vmatprep.subr.mxu0 %v589_v57  ;;  %2264 = vmatprep.subr.mxu1 %v589_v57 }
  0x9d   : > { %2242 = vmatpush3.msra.mxu0 %v589_v57  ;;  %2280 = vmatpush3.msra.mxu1 %v589_v57 }
  0x9e   : > { %2244 = vmatmul.mubr.f32.vlgmr.msra.gmra.mxu0 %v507_v58 }
  0xeb   : > { %v714_v61 = vpop.permute.xlu0 %713 }
  0xec   : > { %v715_v63 = vsel %vm709_vm1, %v714_v61, -1e+30 }
  0xed   : > { %v719_v1 = vmax.f32 %v3188_v44, %v715_v63 }
  0xef   : > { %v717_v0 = vpop.permute.xlu0 %716 }
  0xf0   : > { %v718_v2 = vsel %vm706_vm2, %v717_v0, -1e+30 }
  0xf1   : > { %v720_v3 = vmax.f32 %v719_v1, %v718_v2 }
  0xf3   : > { %v721_v4 = vsub.f32 %v3188_v44, %v720_v3  ;;  %v724_v5 = vsub.f32 %v715_v63, %v720_v3  ;;  %v728_v8 = vsub.f32 %v718_v2, %v720_v3  ;;  %v819_v63 = vstv %s818_s9  ;;  %s970_s9 = scvt.s32.f32 %s969_s27  ;;  %s1121_s27 = sadd.s32 10, %s3183_s1 }
  0xf4   : > { %vm820_vm8 = vcmp.lt.f32.partialorder %v819_v63, %v3193_v45 }
  0xf5   : > { %v722_v6 = vmul.f32 1.442695, %v721_v4  ;;  %v725_v7 = vmul.f32 1.442695, %v724_v5  ;;  %v729_v9 = vmul.f32 1.442695, %v728_v8 }
  0xf6   : > { %v821_v4 = vsel %vm820_vm8, 1, %v2902_v38 }
  0xf7   : > { %2409 = vpow2.f32 %v722_v6 }
  0xf8   : > { %2411 = vpow2.f32 %v725_v7  ;;  %v748_v23 = vpop.permute.xlu1 %747 }
  0xf9   : > { %2413 = vpow2.f32 %v729_v9  ;;  %v752_v26 = vrot.slane %v748_v23, %v3223_v22 }
  0xfb   : > { %vm753_vm5 = vcmp.eq.s32.totalorder %v752_v26, 1 }
 0x104   : > { %v2410_v10 = vpop.eup %2409 }
 0x105   : > { %v2412_v11 = vpop.eup %2411 }
 0x106   : > { %v727_v12 = vadd.f32 %v2412_v11, %v2410_v10  ;;  %v2414_v13 = vpop.eup %2413 }
 0x108   : > { %v731_v14 = vadd.f32 %v2414_v13, %v727_v12 }
 0x10a   : > { %2415 = vlog2.f32 %v731_v14 }
 0x117   : > { %v2416_v21 = vpop.eup %2415 }
 0x118   : > { %v733_v24 = vmul.f32 0.6931472, %v2416_v21 }
 0x11a   : > { %v734_v29 = vadd.f32 %v733_v24, %v720_v3  ;;  %v857_v3 = vstv %s856_s19  ;;  %s1008_s19 = scvt.s32.f32 %s1007_s10  ;;  %s1159_s10 = sadd.s32 11, %s3183_s1 }
 0x11b   : > { %vm858_vm9 = vcmp.lt.f32.partialorder %v857_v3, %v3193_v45 }
 0x11c   : > { %v859_v5 = vsel %vm858_vm9, 1, %v2902_v38 }
 0x15e   : > { %v2245_v16 = vpop.f32.mrf.mxu0 }
 0x15f   : > { %v698_v17 = vsub.f32 %v2245_v16, %v2185_v15 }
 0x160   : > { %v671_v19 = vpop.f32.mrf.mxu0 }
 0x161   : > { %702 = vst [vmem:[#allocation4 + $0x8] sm:$0xff] %v698_v17  ;;  %v697_v20 = vsub.f32 %v671_v19, %v2185_v15 }
 0x163   : > { %701 = vst [vmem:[#allocation4] sm:$0xff] %v697_v20 }
 0x16a   : > { %v735_v30 = vld [vmem:[#allocation4] sm:$0x1]  ;;  %v777_v0 = vld [vmem:[#allocation4 + $0x1] sm:$0x1] }
 0x16b   : > { %v736_v32 = vadd.f32 %v735_v30, %v734_v29  ;;  %v737_v33 = vadd.f32 %v735_v30, %v711_v28  ;;  %v815_v30 = vld [vmem:[#allocation4 + $0x2] sm:$0x1] }
 0x16d   : > { %v741_v34 = vsel %vm740_vm4, %v737_v33, %v736_v32 }
 0x16e   : > { %v754_v35 = vsel %vm753_vm5, %v741_v34, %v3188_v44 }
 0x16f   : > { %758 = vrot.lane.b32.xlu0 %v754_v35, %s2904_s13  ;;  %755 = vrot.lane.b32.xlu1 %v754_v35, %s2903_s6 }
 0x173   : > { %785 = vperm.xlu1 %2402, %v783_v36  }
 0x1e1   : > { %v759_v37 = vpop.permute.xlu0 %758  ;;  %v756_v39 = vpop.permute.xlu1 %755 }
 0x1e2   : > { %v757_v40 = vsel %vm709_vm1, %v756_v39, -1e+30  ;;  %v760_v42 = vsel %vm706_vm2, %v759_v37, -1e+30 }
 0x1e3   : > { %v761_v41 = vmax.f32 %v754_v35, %v757_v40 }
 0x1e5   : > { %v762_v43 = vmax.f32 %v761_v41, %v760_v42 }
 0x1e7   : > { %v763_v46 = vsub.f32 %v754_v35, %v762_v43  ;;  %v766_v44 = vsub.f32 %v757_v40, %v762_v43  ;;  %v770_v47 = vsub.f32 %v760_v42, %v762_v43 }
 0x1e9   : > { %v764_v48 = vmul.f32 1.442695, %v763_v46  ;;  %v767_v49 = vmul.f32 1.442695, %v766_v44  ;;  %v771_v50 = vmul.f32 1.442695, %v770_v47 }
 0x1eb   : > { %2417 = vpow2.f32 %v764_v48 }
 0x1ec   : > { %2419 = vpow2.f32 %v767_v49 }
 0x1ed   : > { %2421 = vpow2.f32 %v771_v50 }
 0x1ee   : > { %v786_v56 = vpop.permute.xlu1 %785 }
 0x1ef   : > { %v790_v59 = vrot.slane %v786_v56, %v3223_v22 }
 0x1f1   : > { %vm791_vm7 = vcmp.eq.s32.totalorder %v790_v59, 1 }
 0x1f8   : > { %v2418_v51 = vpop.eup %2417 }
 0x1f9   : > { %v2420_v52 = vpop.eup %2419 }
 0x1fa   : > { %v769_v53 = vadd.f32 %v2420_v52, %v2418_v51  ;;  %v2422_v54 = vpop.eup %2421 }
 0x1fc   : > { %v773_v55 = vadd.f32 %v2422_v54, %v769_v53 }
 0x1fe   : > { %2423 = vlog2.f32 %v773_v55 }
 0x20b   : > { %v2424_v57 = vpop.eup %2423 }
 0x20c   : > { %v775_v58 = vmul.f32 0.6931472, %v2424_v57  ;;  %v895_v57 = vstv %s894_s14  ;;  %s1046_s14 = scvt.s32.f32 %s1045_s22  ;;  %s1197_s22 = sadd.s32 12, %s3183_s1 }
 0x20d   : > { %vm896_vm12 = vcmp.lt.f32.partialorder %v895_v57, %v3193_v45 }
 0x20e   : > { %v776_v61 = vadd.f32 %v775_v58, %v762_v43  ;;  %v853_v58 = vld [vmem:[#allocation4 + $0x3] sm:$0x1]  ;;  %v897_v63 = vsel %vm896_vm12, 1, %v2902_v38 }
 0x210   : > { %v778_v1 = vadd.f32 %v777_v0, %v776_v61 }
 0x212   : > { %v792_v2 = vsel %vm791_vm7, %v778_v1, %v754_v35 }
 0x213   : > { %796 = vrot.lane.b32.xlu1 %v792_v2, %s2904_s13  ;;  %793 = vrot.lane.b32.xlu0 %v792_v2, %s2903_s6 }
 0x217   : > { %823 = vperm.xlu0 %2403, %v821_v4  }
 0x21b   : > { %861 = vperm.xlu0 %2403, %v859_v5  }
 0x285   : > { %v797_v6 = vpop.permute.xlu1 %796  ;;  %v794_v7 = vpop.permute.xlu0 %793 }
 0x286   : > { %v795_v8 = vsel %vm709_vm1, %v794_v7, -1e+30  ;;  %v798_v10 = vsel %vm706_vm2, %v797_v6, -1e+30 }
 0x287   : > { %v799_v9 = vmax.f32 %v792_v2, %v795_v8 }
 0x289   : > { %v800_v11 = vmax.f32 %v799_v9, %v798_v10 }
 0x28b   : > { %v801_v12 = vsub.f32 %v792_v2, %v800_v11  ;;  %v804_v13 = vsub.f32 %v795_v8, %v800_v11  ;;  %v808_v14 = vsub.f32 %v798_v10, %v800_v11 }
 0x28d   : > { %v802_v15 = vmul.f32 1.442695, %v801_v12  ;;  %v805_v16 = vmul.f32 1.442695, %v804_v13  ;;  %v809_v17 = vmul.f32 1.442695, %v808_v14 }
 0x28f   : > { %2425 = vpow2.f32 %v802_v15 }
 0x290   : > { %2427 = vpow2.f32 %v805_v16 }
 0x291   : > { %2429 = vpow2.f32 %v809_v17 }
 0x292   : > { %v824_v25 = vpop.permute.xlu0 %823 }
 0x293   : > { %v828_v27 = vrot.slane %v824_v25, %v3223_v22  ;;  %v891_v25 = vld [vmem:[#allocation4 + $0x4] sm:$0x1] }
 0x295   : > { %vm829_vm10 = vcmp.eq.s32.totalorder %v828_v27, 1 }
 0x296   : > { %v862_v52 = vpop.permute.xlu0 %861 }
 0x297   : > { %v866_v55 = vrot.slane %v862_v52, %v3223_v22 }
 0x299   : > { %vm867_vm11 = vcmp.eq.s32.totalorder %v866_v55, 1 }
 0x29c   : > { %v2426_v19 = vpop.eup %2425 }
 0x29d   : > { %v2428_v20 = vpop.eup %2427 }
 0x29e   : > { %v807_v21 = vadd.f32 %v2428_v20, %v2426_v19  ;;  %v2430_v23 = vpop.eup %2429 }
 0x2a0   : > { %v811_v24 = vadd.f32 %v2430_v23, %v807_v21 }
 0x2a2   : > { %2431 = vlog2.f32 %v811_v24  ;;  %v933_v24 = vstv %s932_s12  ;;  %s1084_s12 = scvt.s32.f32 %s1083_s16  ;;  %s1235_s16 = sadd.s32 13, %s3183_s1 }
 0x2a3   : > { %vm934_vm14 = vcmp.lt.f32.partialorder %v933_v24, %v3193_v45 }
 0x2af   : > { %v2432_v26 = vpop.eup %2431 }
 0x2b0   : > { %v813_v28 = vmul.f32 0.6931472, %v2432_v26 }
 0x2b2   : > { %v814_v29 = vadd.f32 %v813_v28, %v800_v11  ;;  %v935_v28 = vsel %vm934_vm14, 1, %v2902_v38 }
 0x2b4   : > { %v816_v31 = vadd.f32 %v815_v30, %v814_v29 }
 0x2b6   : > { %v830_v32 = vsel %vm829_vm10, %v816_v31, %v792_v2 }
 0x2b7   : > { %831 = vrot.lane.b32.xlu1 %v830_v32, %s2903_s6 }
 0x2bb   : > { %834 = vrot.lane.b32.xlu1 %v830_v32, %s2904_s13 }
 0x329   : > { %v832_v33 = vpop.permute.xlu1 %831 }
 0x32a   : > { %v833_v34 = vsel %vm709_vm1, %v832_v33, -1e+30 }
 0x32b   : > { %v837_v35 = vmax.f32 %v830_v32, %v833_v34 }
 0x32d   : > { %v835_v36 = vpop.permute.xlu1 %834 }
 0x32e   : > { %v836_v37 = vsel %vm706_vm2, %v835_v36, -1e+30 }
 0x32f   : > { %v838_v39 = vmax.f32 %v837_v35, %v836_v37 }
 0x331   : > { %v839_v40 = vsub.f32 %v830_v32, %v838_v39  ;;  %v842_v41 = vsub.f32 %v833_v34, %v838_v39  ;;  %v846_v42 = vsub.f32 %v836_v37, %v838_v39 }
 0x333   : > { %v840_v43 = vmul.f32 1.442695, %v839_v40  ;;  %v843_v46 = vmul.f32 1.442695, %v842_v41  ;;  %v847_v44 = vmul.f32 1.442695, %v846_v42 }
 0x335   : > { %2433 = vpow2.f32 %v840_v43 }
 0x336   : > { %2435 = vpow2.f32 %v843_v46 }
 0x337   : > { %2437 = vpow2.f32 %v847_v44 }
 0x342   : > { %v2434_v47 = vpop.eup %2433 }
 0x343   : > { %v2436_v48 = vpop.eup %2435 }
 0x344   : > { %v845_v49 = vadd.f32 %v2436_v48, %v2434_v47  ;;  %v2438_v50 = vpop.eup %2437 }
 0x346   : > { %v849_v51 = vadd.f32 %v2438_v50, %v845_v49 }
 0x348   : > { %2439 = vlog2.f32 %v849_v51 }
 0x355   : > { %v2440_v53 = vpop.eup %2439 }
 0x356   : > { %v851_v54 = vmul.f32 0.6931472, %v2440_v53  ;;  %v971_v53 = vstv %s970_s9  ;;  %s1122_s9 = scvt.s32.f32 %s1121_s27  ;;  %s1273_s27 = sadd.s32 14, %s3183_s1 }
 0x357   : > { %vm972_vm0 = vcmp.lt.f32.partialorder %v971_v53, %v3193_v45 }
 0x358   : > { %v852_v56 = vadd.f32 %v851_v54, %v838_v39  ;;  %v929_v54 = vld [vmem:[#allocation4 + $0x5] sm:$0x1]  ;;  %v973_v57 = vsel %vm972_vm0, 1, %v2902_v38 }
 0x35a   : > { %v854_v59 = vadd.f32 %v853_v58, %v852_v56 }
 0x35c   : > { %v868_v61 = vsel %vm867_vm11, %v854_v59, %v830_v32 }
 0x35d   : > { %872 = vrot.lane.b32.xlu0 %v868_v61, %s2904_s13  ;;  %869 = vrot.lane.b32.xlu1 %v868_v61, %s2903_s6 }
 0x361   : > { %899 = vperm.xlu1 %2402, %v897_v63  }
 0x3cf   : > { %v873_v0 = vpop.permute.xlu0 %872  ;;  %v870_v1 = vpop.permute.xlu1 %869 }
 0x3d0   : > { %v871_v2 = vsel %vm709_vm1, %v870_v1, -1e+30  ;;  %v874_v4 = vsel %vm706_vm2, %v873_v0, -1e+30 }
 0x3d1   : > { %v875_v3 = vmax.f32 %v868_v61, %v871_v2 }
 0x3d3   : > { %v876_v5 = vmax.f32 %v875_v3, %v874_v4 }
 0x3d5   : > { %v877_v6 = vsub.f32 %v868_v61, %v876_v5  ;;  %v880_v7 = vsub.f32 %v871_v2, %v876_v5  ;;  %v884_v8 = vsub.f32 %v874_v4, %v876_v5 }
 0x3d7   : > { %v878_v9 = vmul.f32 1.442695, %v877_v6  ;;  %v881_v10 = vmul.f32 1.442695, %v880_v7  ;;  %v885_v11 = vmul.f32 1.442695, %v884_v8 }
 0x3d9   : > { %2441 = vpow2.f32 %v878_v9 }
 0x3da   : > { %2443 = vpow2.f32 %v881_v10 }
 0x3db   : > { %2445 = vpow2.f32 %v885_v11 }
 0x3dc   : > { %v900_v17 = vpop.permute.xlu1 %899 }
 0x3dd   : > { %v904_v21 = vrot.slane %v900_v17, %v3223_v22 }
 0x3df   : > { %vm905_vm13 = vcmp.eq.s32.totalorder %v904_v21, 1 }
 0x3e6   : > { %v2442_v12 = vpop.eup %2441 }
 0x3e7   : > { %v2444_v13 = vpop.eup %2443 }
 0x3e8   : > { %v883_v14 = vadd.f32 %v2444_v13, %v2442_v12  ;;  %v2446_v15 = vpop.eup %2445 }
 0x3ea   : > { %v887_v16 = vadd.f32 %v2446_v15, %v883_v14 }
 0x3ec   : > { %2447 = vlog2.f32 %v887_v16 }
 0x3f9   : > { %v2448_v19 = vpop.eup %2447 }
 0x3fa   : > { %v889_v20 = vmul.f32 0.6931472, %v2448_v19  ;;  %v1009_v19 = vstv %s1008_s19  ;;  %s1160_s19 = scvt.s32.f32 %s1159_s10  ;;  %s1311_s10 = sadd.s32 15, %s3183_s1 }
 0x3fb   : > { %vm1010_vm4 = vcmp.lt.f32.partialorder %v1009_v19, %v3193_v45 }
 0x3fc   : > { %v890_v23 = vadd.f32 %v889_v20, %v876_v5  ;;  %v967_v20 = vld [vmem:[#allocation4 + $0x6] sm:$0x1]  ;;  %v1011_v24 = vsel %vm1010_vm4, 1, %v2902_v38 }
 0x3fe   : > { %v892_v26 = vadd.f32 %v891_v25, %v890_v23 }
 0x400   : > { %v906_v27 = vsel %vm905_vm13, %v892_v26, %v868_v61 }
 0x401   : > { %910 = vrot.lane.b32.xlu1 %v906_v27, %s2904_s13  ;;  %907 = vrot.lane.b32.xlu0 %v906_v27, %s2903_s6 }
 0x405   : > { %937 = vperm.xlu0 %2403, %v935_v28  }
 0x473   : > { %v911_v29 = vpop.permute.xlu1 %910  ;;  %v908_v30 = vpop.permute.xlu0 %907 }
 0x474   : > { %v909_v31 = vsel %vm709_vm1, %v908_v30, -1e+30  ;;  %v912_v33 = vsel %vm706_vm2, %v911_v29, -1e+30 }
 0x475   : > { %v913_v32 = vmax.f32 %v906_v27, %v909_v31 }
 0x477   : > { %v914_v34 = vmax.f32 %v913_v32, %v912_v33 }
 0x479   : > { %v915_v35 = vsub.f32 %v906_v27, %v914_v34  ;;  %v918_v36 = vsub.f32 %v909_v31, %v914_v34  ;;  %v922_v37 = vsub.f32 %v912_v33, %v914_v34 }
 0x47b   : > { %v916_v39 = vmul.f32 1.442695, %v915_v35  ;;  %v919_v40 = vmul.f32 1.442695, %v918_v36  ;;  %v923_v41 = vmul.f32 1.442695, %v922_v37 }
 0x47d   : > { %2449 = vpow2.f32 %v916_v39 }
 0x47e   : > { %2451 = vpow2.f32 %v919_v40 }
 0x47f   : > { %2453 = vpow2.f32 %v923_v41 }
 0x480   : > { %v938_v48 = vpop.permute.xlu0 %937 }
 0x481   : > { %v942_v51 = vrot.slane %v938_v48, %v3223_v22 }
 0x483   : > { %vm943_vm15 = vcmp.eq.s32.totalorder %v942_v51, 1 }
 0x48a   : > { %v2450_v42 = vpop.eup %2449 }
 0x48b   : > { %v2452_v43 = vpop.eup %2451 }
 0x48c   : > { %v921_v46 = vadd.f32 %v2452_v43, %v2450_v42  ;;  %v2454_v44 = vpop.eup %2453 }
 0x48e   : > { %v925_v47 = vadd.f32 %v2454_v44, %v921_v46 }
 0x490   : > { %2455 = vlog2.f32 %v925_v47 }
 0x49d   : > { %v2456_v49 = vpop.eup %2455 }
 0x49e   : > { %v927_v50 = vmul.f32 0.6931472, %v2456_v49  ;;  %v1047_v49 = vstv %s1046_s14  ;;  %s1198_s14 = scvt.s32.f32 %s1197_s22  ;;  %s1349_s22 = sadd.s32 16, %s3183_s1 }
 0x49f   : > { %vm1048_vm6 = vcmp.lt.f32.partialorder %v1047_v49, %v3193_v45 }
 0x4a0   : > { %v928_v52 = vadd.f32 %v927_v50, %v914_v34  ;;  %v1005_v50 = vld [vmem:[#allocation4 + $0x7] sm:$0x1]  ;;  %v1049_v53 = vsel %vm1048_vm6, 1, %v2902_v38 }
 0x4a2   : > { %v930_v55 = vadd.f32 %v929_v54, %v928_v52 }
 0x4a4   : > { %v944_v56 = vsel %vm943_vm15, %v930_v55, %v906_v27 }
 0x4a5   : > { %948 = vrot.lane.b32.xlu0 %v944_v56, %s2904_s13  ;;  %945 = vrot.lane.b32.xlu1 %v944_v56, %s2903_s6 }
 0x4a9   : > { %975 = vperm.xlu1 %2402, %v973_v57  }
 0x517   : > { %v949_v58 = vpop.permute.xlu0 %948  ;;  %v946_v59 = vpop.permute.xlu1 %945 }
 0x518   : > { %v947_v61 = vsel %vm709_vm1, %v946_v59, -1e+30  ;;  %v950_v0 = vsel %vm706_vm2, %v949_v58, -1e+30 }
 0x519   : > { %v951_v63 = vmax.f32 %v944_v56, %v947_v61 }
 0x51b   : > { %v952_v1 = vmax.f32 %v951_v63, %v950_v0 }
 0x51d   : > { %v953_v2 = vsub.f32 %v944_v56, %v952_v1  ;;  %v956_v3 = vsub.f32 %v947_v61, %v952_v1  ;;  %v960_v4 = vsub.f32 %v950_v0, %v952_v1 }
 0x51f   : > { %v954_v5 = vmul.f32 1.442695, %v953_v2  ;;  %v957_v6 = vmul.f32 1.442695, %v956_v3  ;;  %v961_v7 = vmul.f32 1.442695, %v960_v4 }
 0x521   : > { %2457 = vpow2.f32 %v954_v5 }
 0x522   : > { %2459 = vpow2.f32 %v957_v6 }
 0x523   : > { %2461 = vpow2.f32 %v961_v7 }
 0x524   : > { %v976_v13 = vpop.permute.xlu1 %975 }
 0x525   : > { %v980_v16 = vrot.slane %v976_v13, %v3223_v22 }
 0x527   : > { %vm981_vm3 = vcmp.eq.s32.totalorder %v980_v16, 1 }
 0x52e   : > { %v2458_v8 = vpop.eup %2457 }
 0x52f   : > { %v2460_v9 = vpop.eup %2459 }
 0x530   : > { %v959_v10 = vadd.f32 %v2460_v9, %v2458_v8  ;;  %v2462_v11 = vpop.eup %2461 }
 0x532   : > { %v963_v12 = vadd.f32 %v2462_v11, %v959_v10 }
 0x534   : > { %2463 = vlog2.f32 %v963_v12 }
 0x541   : > { %v2464_v14 = vpop.eup %2463 }
 0x542   : > { %v965_v15 = vmul.f32 0.6931472, %v2464_v14  ;;  %v1085_v14 = vstv %s1084_s12  ;;  %s1236_s12 = scvt.s32.f32 %s1235_s16 }
 0x543   : > { %vm1086_vm8 = vcmp.lt.f32.partialorder %v1085_v14, %v3193_v45 }
 0x544   : > { %v966_v17 = vadd.f32 %v965_v15, %v952_v1  ;;  %v1043_v15 = vld [vmem:[#allocation4 + $0x8] sm:$0x1]  ;;  %v1087_v19 = vsel %vm1086_vm8, 1, %v2902_v38 }
 0x546   : > { %v968_v21 = vadd.f32 %v967_v20, %v966_v17 }
 0x548   : > { %v982_v23 = vsel %vm981_vm3, %v968_v21, %v944_v56 }
 0x549   : > { %986 = vrot.lane.b32.xlu1 %v982_v23, %s2904_s13  ;;  %983 = vrot.lane.b32.xlu0 %v982_v23, %s2903_s6 }
 0x54d   : > { %1013 = vperm.xlu0 %2403, %v1011_v24  }
 0x5bb   : > { %v987_v25 = vpop.permute.xlu1 %986  ;;  %v984_v26 = vpop.permute.xlu0 %983 }
 0x5bc   : > { %v985_v27 = vsel %vm709_vm1, %v984_v26, -1e+30  ;;  %v988_v29 = vsel %vm706_vm2, %v987_v25, -1e+30 }
 0x5bd   : > { %v989_v28 = vmax.f32 %v982_v23, %v985_v27 }
 0x5bf   : > { %v990_v30 = vmax.f32 %v989_v28, %v988_v29 }
 0x5c1   : > { %v991_v31 = vsub.f32 %v982_v23, %v990_v30  ;;  %v994_v32 = vsub.f32 %v985_v27, %v990_v30  ;;  %v998_v33 = vsub.f32 %v988_v29, %v990_v30 }
 0x5c3   : > { %v992_v34 = vmul.f32 1.442695, %v991_v31  ;;  %v995_v35 = vmul.f32 1.442695, %v994_v32  ;;  %v999_v36 = vmul.f32 1.442695, %v998_v33 }
 0x5c5   : > { %2465 = vpow2.f32 %v992_v34 }
 0x5c6   : > { %2467 = vpow2.f32 %v995_v35 }
 0x5c7   : > { %2469 = vpow2.f32 %v999_v36 }
 0x5c8   : > { %v1014_v43 = vpop.permute.xlu0 %1013 }
 0x5c9   : > { %v1018_v47 = vrot.slane %v1014_v43, %v3223_v22 }
 0x5cb   : > { %vm1019_vm5 = vcmp.eq.s32.totalorder %v1018_v47, 1 }
 0x5d2   : > { %v2466_v37 = vpop.eup %2465 }
 0x5d3   : > { %v2468_v39 = vpop.eup %2467 }
 0x5d4   : > { %v997_v40 = vadd.f32 %v2468_v39, %v2466_v37  ;;  %v2470_v41 = vpop.eup %2469 }
 0x5d6   : > { %v1001_v42 = vadd.f32 %v2470_v41, %v997_v40 }
 0x5d8   : > { %2471 = vlog2.f32 %v1001_v42 }
 0x5e5   : > { %v2472_v46 = vpop.eup %2471 }
 0x5e6   : > { %v1003_v44 = vmul.f32 0.6931472, %v2472_v46  ;;  %v1123_v46 = vstv %s1122_s9  ;;  %s1274_s9 = scvt.s32.f32 %s1273_s27 }
 0x5e7   : > { %vm1124_vm10 = vcmp.lt.f32.partialorder %v1123_v46, %v3193_v45 }
 0x5e8   : > { %v1004_v48 = vadd.f32 %v1003_v44, %v990_v30  ;;  %v1081_v44 = vld [vmem:[#allocation4 + $0x9] sm:$0x1]  ;;  %v1125_v49 = vsel %vm1124_vm10, 1, %v2902_v38 }
 0x5ea   : > { %v1006_v51 = vadd.f32 %v1005_v50, %v1004_v48 }
 0x5ec   : > { %v1020_v52 = vsel %vm1019_vm5, %v1006_v51, %v982_v23 }
 0x5ed   : > { %1024 = vrot.lane.b32.xlu0 %v1020_v52, %s2904_s13  ;;  %1021 = vrot.lane.b32.xlu1 %v1020_v52, %s2903_s6 }
 0x5f1   : > { %1051 = vperm.xlu1 %2402, %v1049_v53  }
 0x65f   : > { %v1025_v54 = vpop.permute.xlu0 %1024  ;;  %v1022_v55 = vpop.permute.xlu1 %1021 }
 0x660   : > { %v1023_v56 = vsel %vm709_vm1, %v1022_v55, -1e+30  ;;  %v1026_v58 = vsel %vm706_vm2, %v1025_v54, -1e+30 }
 0x661   : > { %v1027_v57 = vmax.f32 %v1020_v52, %v1023_v56 }
 0x663   : > { %v1028_v59 = vmax.f32 %v1027_v57, %v1026_v58 }
 0x665   : > { %v1029_v61 = vsub.f32 %v1020_v52, %v1028_v59  ;;  %v1032_v63 = vsub.f32 %v1023_v56, %v1028_v59  ;;  %v1036_v0 = vsub.f32 %v1026_v58, %v1028_v59 }
 0x667   : > { %v1030_v1 = vmul.f32 1.442695, %v1029_v61  ;;  %v1033_v2 = vmul.f32 1.442695, %v1032_v63  ;;  %v1037_v3 = vmul.f32 1.442695, %v1036_v0 }
 0x669   : > { %2473 = vpow2.f32 %v1030_v1 }
 0x66a   : > { %2475 = vpow2.f32 %v1033_v2 }
 0x66b   : > { %2477 = vpow2.f32 %v1037_v3 }
 0x66c   : > { %v1052_v9 = vpop.permute.xlu1 %1051 }
 0x66d   : > { %v1056_v12 = vrot.slane %v1052_v9, %v3223_v22 }
 0x66f   : > { %vm1057_vm7 = vcmp.eq.s32.totalorder %v1056_v12, 1 }
 0x676   : > { %v2474_v4 = vpop.eup %2473 }
 0x677   : > { %v2476_v5 = vpop.eup %2475 }
 0x678   : > { %v1035_v6 = vadd.f32 %v2476_v5, %v2474_v4  ;;  %v2478_v7 = vpop.eup %2477 }
 0x67a   : > { %v1039_v8 = vadd.f32 %v2478_v7, %v1035_v6 }
 0x67c   : > { %2479 = vlog2.f32 %v1039_v8 }
 0x689   : > { %v2480_v10 = vpop.eup %2479 }
 0x68a   : > { %v1041_v11 = vmul.f32 0.6931472, %v2480_v10  ;;  %v1161_v10 = vstv %s1160_s19  ;;  %s1312_s19 = scvt.s32.f32 %s1311_s10 }
 0x68b   : > { %vm1162_vm12 = vcmp.lt.f32.partialorder %v1161_v10, %v3193_v45 }
 0x68c   : > { %v1042_v13 = vadd.f32 %v1041_v11, %v1028_v59  ;;  %v1119_v11 = vld [vmem:[#allocation4 + $0xa] sm:$0x1]  ;;  %v1163_v14 = vsel %vm1162_vm12, 1, %v2902_v38 }
 0x68e   : > { %v1044_v16 = vadd.f32 %v1043_v15, %v1042_v13 }
 0x690   : > { %v1058_v17 = vsel %vm1057_vm7, %v1044_v16, %v1020_v52 }
 0x691   : > { %1062 = vrot.lane.b32.xlu1 %v1058_v17, %s2904_s13  ;;  %1059 = vrot.lane.b32.xlu0 %v1058_v17, %s2903_s6 }
 0x695   : > { %1089 = vperm.xlu0 %2403, %v1087_v19  }
 0x703   : > { %v1063_v20 = vpop.permute.xlu1 %1062  ;;  %v1060_v21 = vpop.permute.xlu0 %1059 }
 0x704   : > { %v1061_v23 = vsel %vm709_vm1, %v1060_v21, -1e+30  ;;  %v1064_v25 = vsel %vm706_vm2, %v1063_v20, -1e+30 }
 0x705   : > { %v1065_v24 = vmax.f32 %v1058_v17, %v1061_v23 }
 0x707   : > { %v1066_v26 = vmax.f32 %v1065_v24, %v1064_v25 }
 0x709   : > { %v1067_v27 = vsub.f32 %v1058_v17, %v1066_v26  ;;  %v1070_v28 = vsub.f32 %v1061_v23, %v1066_v26  ;;  %v1074_v29 = vsub.f32 %v1064_v25, %v1066_v26 }
 0x70b   : > { %v1068_v30 = vmul.f32 1.442695, %v1067_v27  ;;  %v1071_v31 = vmul.f32 1.442695, %v1070_v28  ;;  %v1075_v32 = vmul.f32 1.442695, %v1074_v29 }
 0x70d   : > { %2481 = vpow2.f32 %v1068_v30 }
 0x70e   : > { %2483 = vpow2.f32 %v1071_v31 }
 0x70f   : > { %2485 = vpow2.f32 %v1075_v32 }
 0x710   : > { %v1090_v39 = vpop.permute.xlu0 %1089 }
 0x711   : > { %v1094_v42 = vrot.slane %v1090_v39, %v3223_v22  ;;  %v1199_v39 = vstv %s1198_s14  ;;  %s1350_s14 = scvt.s32.f32 %s1349_s22 }
 0x713   : > { %vm1095_vm9 = vcmp.eq.s32.totalorder %v1094_v42, 1  ;;  %v3340_v42 = vld [vmem:[%s3152_s7] sm:$0x1] }
 0x714   : > { %vm1200_vm14 = vcmp.lt.f32.partialorder %v1199_v39, %v3340_v42 }
 0x715   : > { %v1201_v46 = vsel %vm1200_vm14, 1, %v2902_v38 }
 0x71a   : > { %v2482_v33 = vpop.eup %2481 }
 0x71b   : > { %v2484_v34 = vpop.eup %2483 }
 0x71c   : > { %v1073_v35 = vadd.f32 %v2484_v34, %v2482_v33  ;;  %v2486_v36 = vpop.eup %2485 }
 0x71e   : > { %v1077_v37 = vadd.f32 %v2486_v36, %v1073_v35 }
 0x720   : > { %2487 = vlog2.f32 %v1077_v37 }
 0x72d   : > { %v2488_v40 = vpop.eup %2487 }
 0x72e   : > { %v1079_v41 = vmul.f32 0.6931472, %v2488_v40  ;;  %v1157_v40 = vld [vmem:[#allocation4 + $0xb] sm:$0x1] }
 0x730   : > { %v1080_v43 = vadd.f32 %v1079_v41, %v1066_v26 }
 0x732   : > { %v1082_v47 = vadd.f32 %v1081_v44, %v1080_v43 }
 0x734   : > { %v1096_v48 = vsel %vm1095_vm9, %v1082_v47, %v1058_v17 }
 0x735   : > { %1100 = vrot.lane.b32.xlu0 %v1096_v48, %s2904_s13  ;;  %1097 = vrot.lane.b32.xlu1 %v1096_v48, %s2903_s6 }
 0x739   : > { %1127 = vperm.xlu1 %2402, %v1125_v49  }
 0x7a7   : > { %v1101_v50 = vpop.permute.xlu0 %1100  ;;  %v1098_v51 = vpop.permute.xlu1 %1097 }
 0x7a8   : > { %v1099_v52 = vsel %vm709_vm1, %v1098_v51, -1e+30  ;;  %v1102_v54 = vsel %vm706_vm2, %v1101_v50, -1e+30 }
 0x7a9   : > { %v1103_v53 = vmax.f32 %v1096_v48, %v1099_v52 }
 0x7ab   : > { %v1104_v55 = vmax.f32 %v1103_v53, %v1102_v54 }
 0x7ad   : > { %v1105_v56 = vsub.f32 %v1096_v48, %v1104_v55  ;;  %v1108_v57 = vsub.f32 %v1099_v52, %v1104_v55  ;;  %v1112_v58 = vsub.f32 %v1102_v54, %v1104_v55 }
 0x7af   : > { %v1106_v59 = vmul.f32 1.442695, %v1105_v56  ;;  %v1109_v61 = vmul.f32 1.442695, %v1108_v57  ;;  %v1113_v63 = vmul.f32 1.442695, %v1112_v58 }
 0x7b1   : > { %2489 = vpow2.f32 %v1106_v59 }
 0x7b2   : > { %2491 = vpow2.f32 %v1109_v61 }
 0x7b3   : > { %2493 = vpow2.f32 %v1113_v63 }
 0x7b4   : > { %v1128_v5 = vpop.permute.xlu1 %1127 }
 0x7b5   : > { %v1132_v8 = vrot.slane %v1128_v5, %v3223_v22 }
 0x7b7   : > { %vm1133_vm11 = vcmp.eq.s32.totalorder %v1132_v8, 1 }
 0x7be   : > { %v2490_v0 = vpop.eup %2489 }
 0x7bf   : > { %v2492_v1 = vpop.eup %2491 }
 0x7c0   : > { %v1111_v2 = vadd.f32 %v2492_v1, %v2490_v0  ;;  %v2494_v3 = vpop.eup %2493 }
 0x7c2   : > { %v1115_v4 = vadd.f32 %v2494_v3, %v1111_v2 }
 0x7c4   : > { %2495 = vlog2.f32 %v1115_v4 }
 0x7d1   : > { %v2496_v6 = vpop.eup %2495 }
 0x7d2   : > { %v1117_v7 = vmul.f32 0.6931472, %v2496_v6  ;;  %v1237_v6 = vstv %s1236_s12  ;;  %s1425_s12 = sadd.s32 18, %s3183_s1 }
 0x7d3   : > { %vm1238_vm0 = vcmp.lt.f32.partialorder %v1237_v6, %v3340_v42  ;;  %s1426_s27 = scvt.s32.f32 %s1425_s12 }
 0x7d4   : > { %v1118_v9 = vadd.f32 %v1117_v7, %v1104_v55  ;;  %v1195_v7 = vld [vmem:[#allocation4 + $0xc] sm:$0x1]  ;;  %v1239_v10 = vsel %vm1238_vm0, 1, %v2902_v38 }
 0x7d6   : > { %v1120_v12 = vadd.f32 %v1119_v11, %v1118_v9 }
 0x7d8   : > { %v1134_v13 = vsel %vm1133_vm11, %v1120_v12, %v1096_v48 }
 0x7d9   : > { %1138 = vrot.lane.b32.xlu1 %v1134_v13, %s2904_s13  ;;  %1135 = vrot.lane.b32.xlu0 %v1134_v13, %s2903_s6 }
 0x7dd   : > { %1165 = vperm.xlu0 %2403, %v1163_v14  }
 0x84b   : > { %v1139_v15 = vpop.permute.xlu1 %1138  ;;  %v1136_v16 = vpop.permute.xlu0 %1135 }
 0x84c   : > { %v1137_v17 = vsel %vm709_vm1, %v1136_v16, -1e+30  ;;  %v1140_v20 = vsel %vm706_vm2, %v1139_v15, -1e+30 }
 0x84d   : > { %v1141_v19 = vmax.f32 %v1134_v13, %v1137_v17 }
 0x84f   : > { %v1142_v21 = vmax.f32 %v1141_v19, %v1140_v20 }
 0x851   : > { %v1143_v45 = vsub.f32 %v1134_v13, %v1142_v21  ;;  %v1146_v23 = vsub.f32 %v1137_v17, %v1142_v21  ;;  %v1150_v24 = vsub.f32 %v1140_v20, %v1142_v21 }
 0x853   : > { %v1144_v25 = vmul.f32 1.442695, %v1143_v45  ;;  %v1147_v26 = vmul.f32 1.442695, %v1146_v23  ;;  %v1151_v27 = vmul.f32 1.442695, %v1150_v24 }
 0x855   : > { %2497 = vpow2.f32 %v1144_v25 }
 0x856   : > { %2499 = vpow2.f32 %v1147_v26 }
 0x857   : > { %2501 = vpow2.f32 %v1151_v27 }
 0x858   : > { %v1166_v33 = vpop.permute.xlu0 %1165 }
 0x859   : > { %v1170_v36 = vrot.slane %v1166_v33, %v3223_v22 }
 0x85b   : > { %vm1171_vm13 = vcmp.eq.s32.totalorder %v1170_v36, 1 }
 0x862   : > { %v2498_v28 = vpop.eup %2497 }
 0x863   : > { %v2500_v29 = vpop.eup %2499 }
 0x864   : > { %v1149_v30 = vadd.f32 %v2500_v29, %v2498_v28  ;;  %v2502_v31 = vpop.eup %2501 }
 0x866   : > { %v1153_v32 = vadd.f32 %v2502_v31, %v1149_v30 }
 0x868   : > { %2503 = vlog2.f32 %v1153_v32 }
 0x875   : > { %v2504_v34 = vpop.eup %2503 }
 0x876   : > { %v1155_v35 = vmul.f32 0.6931472, %v2504_v34  ;;  %v1275_v34 = vstv %s1274_s9  ;;  %s1463_s9 = sadd.s32 19, %s3183_s1 }
 0x877   : > { %vm1276_vm4 = vcmp.lt.f32.partialorder %v1275_v34, %v3340_v42  ;;  %s1464_s10 = scvt.s32.f32 %s1463_s9 }
 0x878   : > { %v1156_v37 = vadd.f32 %v1155_v35, %v1142_v21  ;;  %v1233_v35 = vld [vmem:[#allocation4 + $0xd] sm:$0x1]  ;;  %v1277_v39 = vsel %vm1276_vm4, 1, %v2902_v38 }
 0x87a   : > { %v1158_v41 = vadd.f32 %v1157_v40, %v1156_v37 }
 0x87c   : > { %v1172_v43 = vsel %vm1171_vm13, %v1158_v41, %v1134_v13 }
 0x87d   : > { %1176 = vrot.lane.b32.xlu0 %v1172_v43, %s2904_s13  ;;  %1173 = vrot.lane.b32.xlu1 %v1172_v43, %s2903_s6 }
 0x881   : > { %1203 = vperm.xlu1 %2402, %v1201_v46  }
 0x8ef   : > { %v1177_v44 = vpop.permute.xlu0 %1176  ;;  %v1174_v47 = vpop.permute.xlu1 %1173 }
 0x8f0   : > { %v1175_v48 = vsel %vm709_vm1, %v1174_v47, -1e+30  ;;  %v1178_v50 = vsel %vm706_vm2, %v1177_v44, -1e+30 }
 0x8f1   : > { %v1179_v49 = vmax.f32 %v1172_v43, %v1175_v48 }
 0x8f3   : > { %v1180_v51 = vmax.f32 %v1179_v49, %v1178_v50 }
 0x8f5   : > { %v1181_v52 = vsub.f32 %v1172_v43, %v1180_v51  ;;  %v1184_v53 = vsub.f32 %v1175_v48, %v1180_v51  ;;  %v1188_v54 = vsub.f32 %v1178_v50, %v1180_v51 }
 0x8f7   : > { %v1182_v55 = vmul.f32 1.442695, %v1181_v52  ;;  %v1185_v56 = vmul.f32 1.442695, %v1184_v53  ;;  %v1189_v57 = vmul.f32 1.442695, %v1188_v54 }
 0x8f9   : > { %2505 = vpow2.f32 %v1182_v55 }
 0x8fa   : > { %2507 = vpow2.f32 %v1185_v56 }
 0x8fb   : > { %2509 = vpow2.f32 %v1189_v57 }
 0x8fc   : > { %v1204_v1 = vpop.permute.xlu1 %1203 }
 0x8fd   : > { %v1208_v4 = vrot.slane %v1204_v1, %v3223_v22 }
 0x8ff   : > { %vm1209_vm15 = vcmp.eq.s32.totalorder %v1208_v4, 1  ;;  %v1313_v4 = vstv %s1312_s19  ;;  %s1501_s19 = sadd.s32 20, %s3183_s1 }
 0x900   : > { %vm1314_vm6 = vcmp.lt.f32.partialorder %v1313_v4, %v3340_v42  ;;  %s1502_s22 = scvt.s32.f32 %s1501_s19 }
 0x906   : > { %v2506_v58 = vpop.eup %2505 }
 0x907   : > { %v2508_v59 = vpop.eup %2507 }
 0x908   : > { %v1187_v61 = vadd.f32 %v2508_v59, %v2506_v58  ;;  %v2510_v63 = vpop.eup %2509  ;;  %v508_v59 = vld [vmem:[%s3114_s18 + $0x10] sm:$0xff] }
 0x909   : > { %2246 = vmatprep.mubr.f32.mxu1 %v508_v59 }
 0x90a   : > { %v1191_v0 = vadd.f32 %v2510_v63, %v1187_v61  ;;  %v509_v61 = vld [vmem:[%s3114_s18 + $0x18] sm:$0xff] }
 0x90b   : > { %2247 = vmatmul.mubr.f32.vlgmr.msra.gmra.mxu1 %v509_v61 }
 0x90c   : > { %2511 = vlog2.f32 %v1191_v0 }
 0x919   : > { %v2512_v2 = vpop.eup %2511 }
 0x91a   : > { %v1193_v3 = vmul.f32 0.6931472, %v2512_v2 }
 0x91c   : > { %v1194_v5 = vadd.f32 %v1193_v3, %v1180_v51 }
 0x91e   : > { %v1196_v8 = vadd.f32 %v1195_v7, %v1194_v5  ;;  %v1271_v5 = vld [vmem:[#allocation4 + $0xe] sm:$0x1] }
 0x920   : > { %v1210_v9 = vsel %vm1209_vm15, %v1196_v8, %v1172_v43  ;;  %v1315_v8 = vsel %vm1314_vm6, 1, %v2902_v38 }
 0x921   : > { %1214 = vrot.lane.b32.xlu1 %v1210_v9, %s2904_s13  ;;  %1211 = vrot.lane.b32.xlu0 %v1210_v9, %s2903_s6 }
 0x925   : > { %1241 = vperm.xlu0 %2403, %v1239_v10  }
 0x993   : > { %v1215_v11 = vpop.permute.xlu1 %1214  ;;  %v1212_v12 = vpop.permute.xlu0 %1211 }
 0x994   : > { %v1213_v13 = vsel %vm709_vm1, %v1212_v12, -1e+30  ;;  %v1216_v15 = vsel %vm706_vm2, %v1215_v11, -1e+30 }
 0x995   : > { %v1217_v14 = vmax.f32 %v1210_v9, %v1213_v13 }
 0x997   : > { %v1218_v16 = vmax.f32 %v1217_v14, %v1216_v15 }
 0x999   : > { %v1219_v17 = vsub.f32 %v1210_v9, %v1218_v16  ;;  %v1222_v19 = vsub.f32 %v1213_v13, %v1218_v16  ;;  %v1226_v20 = vsub.f32 %v1216_v15, %v1218_v16 }
 0x99b   : > { %v1220_v21 = vmul.f32 1.442695, %v1219_v17  ;;  %v1223_v45 = vmul.f32 1.442695, %v1222_v19  ;;  %v1227_v23 = vmul.f32 1.442695, %v1226_v20 }
 0x99d   : > { %2513 = vpow2.f32 %v1220_v21 }
 0x99e   : > { %2515 = vpow2.f32 %v1223_v45 }
 0x99f   : > { %2517 = vpow2.f32 %v1227_v23 }
 0x9a0   : > { %v1242_v29 = vpop.permute.xlu0 %1241 }
 0x9a1   : > { %v1246_v32 = vrot.slane %v1242_v29, %v3223_v22 }
 0x9a3   : > { %vm1247_vm3 = vcmp.eq.s32.totalorder %v1246_v32, 1  ;;  %v1351_v32 = vstv %s1350_s14  ;;  %s1539_s14 = sadd.s32 21, %s3183_s1 }
 0x9a4   : > { %vm1352_vm8 = vcmp.lt.f32.partialorder %v1351_v32, %v3340_v42 }
 0x9aa   : > { %v2514_v24 = vpop.eup %2513 }
 0x9ab   : > { %v2516_v25 = vpop.eup %2515 }
 0x9ac   : > { %v1225_v26 = vadd.f32 %v2516_v25, %v2514_v24  ;;  %v2518_v27 = vpop.eup %2517 }
 0x9ae   : > { %v1229_v28 = vadd.f32 %v2518_v27, %v1225_v26 }
 0x9b0   : > { %2519 = vlog2.f32 %v1229_v28 }
 0x9bd   : > { %v2520_v30 = vpop.eup %2519 }
 0x9be   : > { %v1231_v31 = vmul.f32 0.6931472, %v2520_v30 }
 0x9c0   : > { %v1232_v33 = vadd.f32 %v1231_v31, %v1218_v16 }
 0x9c2   : > { %v1234_v36 = vadd.f32 %v1233_v35, %v1232_v33  ;;  %v1309_v33 = vld [vmem:[#allocation4 + $0xf] sm:$0x1] }
 0x9c4   : > { %v1248_v37 = vsel %vm1247_vm3, %v1234_v36, %v1210_v9  ;;  %v1353_v36 = vsel %vm1352_vm8, 1, %v2902_v38 }
 0x9c5   : > { %1252 = vrot.lane.b32.xlu0 %v1248_v37, %s2904_s13  ;;  %1249 = vrot.lane.b32.xlu1 %v1248_v37, %s2903_s6 }
 0x9c9   : > { %1279 = vperm.xlu1 %2402, %v1277_v39  }
 0xa37   : > { %v1253_v40 = vpop.permute.xlu0 %1252  ;;  %v1250_v41 = vpop.permute.xlu1 %1249 }
 0xa38   : > { %v1251_v43 = vsel %vm709_vm1, %v1250_v41, -1e+30  ;;  %v1254_v44 = vsel %vm706_vm2, %v1253_v40, -1e+30  ;;  %v2674_v40 = vld [vmem:[%s3138_s17] ss:$0 sm:$0xff] }
 0xa39   : > { %v1255_v46 = vmax.f32 %v1248_v37, %v1251_v43  ;;  %s1387_s17 = sadd.s32 17, %s3183_s1 }
 0xa3a   : > { %s1388_s16 = scvt.s32.f32 %s1387_s17  ;;  %s1540_s17 = scvt.s32.f32 %s1539_s14 }
 0xa3b   : > { %v1256_v47 = vmax.f32 %v1255_v46, %v1254_v44 }
 0xa3d   : > { %v1257_v48 = vsub.f32 %v1248_v37, %v1256_v47  ;;  %v1260_v49 = vsub.f32 %v1251_v43, %v1256_v47  ;;  %v1264_v50 = vsub.f32 %v1254_v44, %v1256_v47 }
 0xa3f   : > { %v1258_v51 = vmul.f32 1.442695, %v1257_v48  ;;  %v1261_v52 = vmul.f32 1.442695, %v1260_v49  ;;  %v1265_v53 = vmul.f32 1.442695, %v1264_v50 }
 0xa41   : > { %2521 = vpow2.f32 %v1258_v51 }
 0xa42   : > { %2523 = vpow2.f32 %v1261_v52 }
 0xa43   : > { %2525 = vpow2.f32 %v1265_v53 }
 0xa44   : > { %v1280_v63 = vpop.permute.xlu1 %1279 }
 0xa45   : > { %v1284_v2 = vrot.slane %v1280_v63, %v3223_v22 }
 0xa47   : > { %vm1285_vm5 = vcmp.eq.s32.totalorder %v1284_v2, 1 }
 0xa4e   : > { %v2522_v54 = vpop.eup %2521 }
 0xa4f   : > { %v2524_v55 = vpop.eup %2523 }
 0xa50   : > { %v1263_v56 = vadd.f32 %v2524_v55, %v2522_v54  ;;  %v2526_v57 = vpop.eup %2525 }
 0xa52   : > { %v1267_v58 = vadd.f32 %v2526_v57, %v1263_v56 }
 0xa54   : > { %2527 = vlog2.f32 %v1267_v58 }
 0xa61   : > { %v2528_v0 = vpop.eup %2527 }
 0xa62   : > { %v1269_v1 = vmul.f32 0.6931472, %v2528_v0 }
 0xa64   : > { %v1270_v3 = vadd.f32 %v1269_v1, %v1256_v47 }
 0xa66   : > { %v1272_v6 = vadd.f32 %v1271_v5, %v1270_v3  ;;  %v1389_v5 = vstv %s1388_s16  ;;  %s1577_s16 = sadd.s32 22, %s3183_s1 }
 0xa67   : > { %vm1390_vm10 = vcmp.lt.f32.partialorder %v1389_v5, %v3340_v42  ;;  %s1578_s12 = scvt.s32.f32 %s1577_s16 }
 0xa68   : > { %v1286_v7 = vsel %vm1285_vm5, %v1272_v6, %v1248_v37  ;;  %v2248_v37 = vpop.f32.mrf.mxu1 }
 0xa69   : > { %1290 = vrot.lane.b32.xlu1 %v1286_v7, %s2904_s13  ;;  %1287 = vrot.lane.b32.xlu0 %v1286_v7, %s2903_s6  ;;  %v700_v41 = vsub.f32 %v2248_v37, %v2674_v40 }
 0xa6a   : > { %v681_v39 = vpop.f32.mrf.mxu1 }
 0xa6b   : > { %v699_v43 = vsub.f32 %v681_v39, %v2674_v40  ;;  %704 = vst [vmem:[#allocation4 + $0x18] sm:$0xff] %v700_v41 }
 0xa6d   : > { %1317 = vperm.xlu0 %2403, %v1315_v8   ;;  %703 = vst [vmem:[#allocation4 + $0x10] sm:$0xff] %v699_v43 }
 0xa74   : > { %v1347_v6 = vld [vmem:[#allocation4 + $0x10] sm:$0x1] }
 0xadb   : > { %v1291_v9 = vpop.permute.xlu1 %1290  ;;  %v1288_v10 = vpop.permute.xlu0 %1287 }
 0xadc   : > { %v1289_v11 = vsel %vm709_vm1, %v1288_v10, -1e+30  ;;  %v1292_v13 = vsel %vm706_vm2, %v1291_v9, -1e+30  ;;  %v1391_v9 = vsel %vm1390_vm10, 1, %v2902_v38 }
 0xadd   : > { %v1293_v12 = vmax.f32 %v1286_v7, %v1289_v11 }
 0xadf   : > { %v1294_v14 = vmax.f32 %v1293_v12, %v1292_v13 }
 0xae1   : > { %v1295_v15 = vsub.f32 %v1286_v7, %v1294_v14  ;;  %v1298_v16 = vsub.f32 %v1289_v11, %v1294_v14  ;;  %v1302_v17 = vsub.f32 %v1292_v13, %v1294_v14 }
 0xae3   : > { %v1296_v19 = vmul.f32 1.442695, %v1295_v15  ;;  %v1299_v20 = vmul.f32 1.442695, %v1298_v16  ;;  %v1303_v21 = vmul.f32 1.442695, %v1302_v17 }
 0xae5   : > { %2529 = vpow2.f32 %v1296_v19 }
 0xae6   : > { %2531 = vpow2.f32 %v1299_v20 }
 0xae7   : > { %2533 = vpow2.f32 %v1303_v21 }
 0xae8   : > { %v1318_v27 = vpop.permute.xlu0 %1317 }
 0xae9   : > { %v1322_v30 = vrot.slane %v1318_v27, %v3223_v22 }
 0xaeb   : > { %vm1323_vm7 = vcmp.eq.s32.totalorder %v1322_v30, 1 }
 0xaf2   : > { %v2530_v45 = vpop.eup %2529 }
 0xaf3   : > { %v2532_v23 = vpop.eup %2531 }
 0xaf4   : > { %v1301_v24 = vadd.f32 %v2532_v23, %v2530_v45  ;;  %v2534_v25 = vpop.eup %2533 }
 0xaf6   : > { %v1305_v26 = vadd.f32 %v2534_v25, %v1301_v24 }
 0xaf8   : > { %2535 = vlog2.f32 %v1305_v26 }
 0xb05   : > { %v2536_v28 = vpop.eup %2535 }
 0xb06   : > { %v1307_v29 = vmul.f32 0.6931472, %v2536_v28 }
 0xb08   : > { %v1308_v31 = vadd.f32 %v1307_v29, %v1294_v14 }
 0xb0a   : > { %v1310_v34 = vadd.f32 %v1309_v33, %v1308_v31  ;;  %v1427_v33 = vstv %s1426_s27  ;;  %s1615_s27 = sadd.s32 23, %s3183_s1 }
 0xb0b   : > { %vm1428_vm12 = vcmp.lt.f32.partialorder %v1427_v33, %v3340_v42  ;;  %s1616_s9 = scvt.s32.f32 %s1615_s27  ;;  %s1805_s27 = sadd.s32 28, %s3183_s1 }
 0xb0c   : > { %v1324_v35 = vsel %vm1323_vm7, %v1310_v34, %v1286_v7  ;;  %v1385_v34 = vld [vmem:[#allocation4 + $0x11] sm:$0x1]  ;;  %v1429_v37 = vsel %vm1428_vm12, 1, %v2902_v38 }
 0xb0d   : > { %1328 = vrot.lane.b32.xlu0 %v1324_v35, %s2904_s13  ;;  %1325 = vrot.lane.b32.xlu1 %v1324_v35, %s2903_s6 }
 0xb11   : > { %1355 = vperm.xlu1 %2402, %v1353_v36  }
 0xb7f   : > { %v1329_v46 = vpop.permute.xlu0 %1328  ;;  %v1326_v44 = vpop.permute.xlu1 %1325 }
 0xb80   : > { %v1327_v47 = vsel %vm709_vm1, %v1326_v44, -1e+30  ;;  %v1330_v49 = vsel %vm706_vm2, %v1329_v46, -1e+30 }
 0xb81   : > { %v1331_v48 = vmax.f32 %v1324_v35, %v1327_v47 }
 0xb83   : > { %v1332_v50 = vmax.f32 %v1331_v48, %v1330_v49 }
 0xb85   : > { %v1333_v51 = vsub.f32 %v1324_v35, %v1332_v50  ;;  %v1336_v52 = vsub.f32 %v1327_v47, %v1332_v50  ;;  %v1340_v53 = vsub.f32 %v1330_v49, %v1332_v50 }
 0xb87   : > { %v1334_v54 = vmul.f32 1.442695, %v1333_v51  ;;  %v1337_v55 = vmul.f32 1.442695, %v1336_v52  ;;  %v1341_v56 = vmul.f32 1.442695, %v1340_v53 }
 0xb89   : > { %2537 = vpow2.f32 %v1334_v54 }
 0xb8a   : > { %2539 = vpow2.f32 %v1337_v55 }
 0xb8b   : > { %2541 = vpow2.f32 %v1341_v56 }
 0xb8c   : > { %v1356_v0 = vpop.permute.xlu1 %1355 }
 0xb8d   : > { %v1360_v3 = vrot.slane %v1356_v0, %v3223_v22 }
 0xb8f   : > { %vm1361_vm9 = vcmp.eq.s32.totalorder %v1360_v3, 1 }
 0xb96   : > { %v2538_v57 = vpop.eup %2537 }
 0xb97   : > { %v2540_v58 = vpop.eup %2539 }
 0xb98   : > { %v1339_v59 = vadd.f32 %v2540_v58, %v2538_v57  ;;  %v2542_v61 = vpop.eup %2541 }
 0xb9a   : > { %v1343_v63 = vadd.f32 %v2542_v61, %v1339_v59 }
 0xb9c   : > { %2543 = vlog2.f32 %v1343_v63 }
 0xba9   : > { %v2544_v1 = vpop.eup %2543 }
 0xbaa   : > { %v1345_v2 = vmul.f32 0.6931472, %v2544_v1  ;;  %v1465_v1 = vstv %s1464_s10  ;;  %s1653_s10 = sadd.s32 24, %s3183_s1 }
 0xbab   : > { %vm1466_vm14 = vcmp.lt.f32.partialorder %v1465_v1, %v3340_v42  ;;  %s1654_s19 = scvt.s32.f32 %s1653_s10  ;;  %s1843_s10 = sadd.s32 29, %s3183_s1 }
 0xbac   : > { %v1346_v4 = vadd.f32 %v1345_v2, %v1332_v50  ;;  %v1423_v2 = vld [vmem:[#allocation4 + $0x12] sm:$0x1]  ;;  %v1467_v5 = vsel %vm1466_vm14, 1, %v2902_v38 }
 0xbae   : > { %v1348_v7 = vadd.f32 %v1347_v6, %v1346_v4 }
 0xbb0   : > { %v1362_v8 = vsel %vm1361_vm9, %v1348_v7, %v1324_v35 }
 0xbb1   : > { %1366 = vrot.lane.b32.xlu1 %v1362_v8, %s2904_s13  ;;  %1363 = vrot.lane.b32.xlu0 %v1362_v8, %s2903_s6 }
 0xbb5   : > { %1393 = vperm.xlu0 %2403, %v1391_v9  }
 0xc23   : > { %v1367_v10 = vpop.permute.xlu1 %1366  ;;  %v1364_v11 = vpop.permute.xlu0 %1363 }
 0xc24   : > { %v1365_v12 = vsel %vm709_vm1, %v1364_v11, -1e+30  ;;  %v1368_v14 = vsel %vm706_vm2, %v1367_v10, -1e+30 }
 0xc25   : > { %v1369_v13 = vmax.f32 %v1362_v8, %v1365_v12 }
 0xc27   : > { %v1370_v15 = vmax.f32 %v1369_v13, %v1368_v14 }
 0xc29   : > { %v1371_v16 = vsub.f32 %v1362_v8, %v1370_v15  ;;  %v1374_v17 = vsub.f32 %v1365_v12, %v1370_v15  ;;  %v1378_v19 = vsub.f32 %v1368_v14, %v1370_v15 }
 0xc2b   : > { %v1372_v20 = vmul.f32 1.442695, %v1371_v16  ;;  %v1375_v21 = vmul.f32 1.442695, %v1374_v17  ;;  %v1379_v45 = vmul.f32 1.442695, %v1378_v19 }
 0xc2d   : > { %2545 = vpow2.f32 %v1372_v20 }
 0xc2e   : > { %2547 = vpow2.f32 %v1375_v21 }
 0xc2f   : > { %2549 = vpow2.f32 %v1379_v45 }
 0xc30   : > { %v1394_v28 = vpop.permute.xlu0 %1393 }
 0xc31   : > { %v1398_v31 = vrot.slane %v1394_v28, %v3223_v22 }
 0xc33   : > { %vm1399_vm11 = vcmp.eq.s32.totalorder %v1398_v31, 1 }
 0xc3a   : > { %v2546_v23 = vpop.eup %2545 }
 0xc3b   : > { %v2548_v24 = vpop.eup %2547 }
 0xc3c   : > { %v1377_v25 = vadd.f32 %v2548_v24, %v2546_v23  ;;  %v2550_v26 = vpop.eup %2549 }
 0xc3e   : > { %v1381_v27 = vadd.f32 %v2550_v26, %v1377_v25 }
 0xc40   : > { %2551 = vlog2.f32 %v1381_v27 }
 0xc4d   : > { %v2552_v29 = vpop.eup %2551 }
 0xc4e   : > { %v1383_v30 = vmul.f32 0.6931472, %v2552_v29  ;;  %v1503_v29 = vstv %s1502_s22  ;;  %s1691_s22 = sadd.s32 25, %s3183_s1 }
 0xc4f   : > { %vm1504_vm0 = vcmp.lt.f32.partialorder %v1503_v29, %v3340_v42  ;;  %s1692_s14 = scvt.s32.f32 %s1691_s22  ;;  %s1881_s22 = sadd.s32 30, %s3183_s1 }
 0xc50   : > { %v1384_v32 = vadd.f32 %v1383_v30, %v1370_v15  ;;  %v1461_v30 = vld [vmem:[#allocation4 + $0x13] sm:$0x1]  ;;  %v1505_v33 = vsel %vm1504_vm0, 1, %v2902_v38 }
 0xc52   : > { %v1386_v35 = vadd.f32 %v1385_v34, %v1384_v32 }
 0xc54   : > { %v1400_v36 = vsel %vm1399_vm11, %v1386_v35, %v1362_v8 }
 0xc55   : > { %1404 = vrot.lane.b32.xlu0 %v1400_v36, %s2904_s13  ;;  %1401 = vrot.lane.b32.xlu1 %v1400_v36, %s2903_s6 }
 0xc59   : > { %1431 = vperm.xlu1 %2402, %v1429_v37  }
 0xcc7   : > { %v1405_v39 = vpop.permute.xlu0 %1404  ;;  %v1402_v40 = vpop.permute.xlu1 %1401 }
 0xcc8   : > { %v1403_v41 = vsel %vm709_vm1, %v1402_v40, -1e+30  ;;  %v1406_v46 = vsel %vm706_vm2, %v1405_v39, -1e+30 }
 0xcc9   : > { %v1407_v43 = vmax.f32 %v1400_v36, %v1403_v41 }
 0xccb   : > { %v1408_v44 = vmax.f32 %v1407_v43, %v1406_v46 }
 0xccd   : > { %v1409_v47 = vsub.f32 %v1400_v36, %v1408_v44  ;;  %v1412_v48 = vsub.f32 %v1403_v41, %v1408_v44  ;;  %v1416_v49 = vsub.f32 %v1406_v46, %v1408_v44 }
 0xccf   : > { %v1410_v50 = vmul.f32 1.442695, %v1409_v47  ;;  %v1413_v51 = vmul.f32 1.442695, %v1412_v48  ;;  %v1417_v52 = vmul.f32 1.442695, %v1416_v49 }
 0xcd1   : > { %2553 = vpow2.f32 %v1410_v50 }
 0xcd2   : > { %2555 = vpow2.f32 %v1413_v51 }
 0xcd3   : > { %2557 = vpow2.f32 %v1417_v52 }
 0xcd4   : > { %v1432_v58 = vpop.permute.xlu1 %1431 }
 0xcd5   : > { %v1436_v63 = vrot.slane %v1432_v58, %v3223_v22 }
 0xcd7   : > { %vm1437_vm13 = vcmp.eq.s32.totalorder %v1436_v63, 1 }
 0xcde   : > { %v2554_v53 = vpop.eup %2553 }
 0xcdf   : > { %v2556_v54 = vpop.eup %2555 }
 0xce0   : > { %v1415_v55 = vadd.f32 %v2556_v54, %v2554_v53  ;;  %v2558_v56 = vpop.eup %2557 }
 0xce2   : > { %v1419_v57 = vadd.f32 %v2558_v56, %v1415_v55 }
 0xce4   : > { %2559 = vlog2.f32 %v1419_v57 }
 0xcf1   : > { %v2560_v59 = vpop.eup %2559 }
 0xcf2   : > { %v1421_v61 = vmul.f32 0.6931472, %v2560_v59  ;;  %v1541_v59 = vstv %s1540_s17  ;;  %s1729_s17 = sadd.s32 26, %s3183_s1 }
 0xcf3   : > { %vm1542_vm4 = vcmp.lt.f32.partialorder %v1541_v59, %v3340_v42  ;;  %s1730_s16 = scvt.s32.f32 %s1729_s17  ;;  %s1919_s17 = sadd.s32 31, %s3183_s1 }
 0xcf4   : > { %v1422_v0 = vadd.f32 %v1421_v61, %v1408_v44  ;;  %v1499_v61 = vld [vmem:[#allocation4 + $0x14] sm:$0x1]  ;;  %v1543_v1 = vsel %vm1542_vm4, 1, %v2902_v38 }
 0xcf6   : > { %v1424_v3 = vadd.f32 %v1423_v2, %v1422_v0 }
 0xcf8   : > { %v1438_v4 = vsel %vm1437_vm13, %v1424_v3, %v1400_v36 }
 0xcf9   : > { %1442 = vrot.lane.b32.xlu1 %v1438_v4, %s2904_s13  ;;  %1439 = vrot.lane.b32.xlu0 %v1438_v4, %s2903_s6 }
 0xcfd   : > { %1469 = vperm.xlu0 %2403, %v1467_v5  }
 0xd6b   : > { %v1443_v6 = vpop.permute.xlu1 %1442  ;;  %v1440_v7 = vpop.permute.xlu0 %1439 }
 0xd6c   : > { %v1441_v8 = vsel %vm709_vm1, %v1440_v7, -1e+30  ;;  %v1444_v10 = vsel %vm706_vm2, %v1443_v6, -1e+30 }
 0xd6d   : > { %v1445_v9 = vmax.f32 %v1438_v4, %v1441_v8 }
 0xd6f   : > { %v1446_v11 = vmax.f32 %v1445_v9, %v1444_v10 }
 0xd71   : > { %v1447_v12 = vsub.f32 %v1438_v4, %v1446_v11  ;;  %v1450_v13 = vsub.f32 %v1441_v8, %v1446_v11  ;;  %v1454_v14 = vsub.f32 %v1444_v10, %v1446_v11 }
 0xd73   : > { %v1448_v15 = vmul.f32 1.442695, %v1447_v12  ;;  %v1451_v16 = vmul.f32 1.442695, %v1450_v13  ;;  %v1455_v17 = vmul.f32 1.442695, %v1454_v14 }
 0xd75   : > { %2561 = vpow2.f32 %v1448_v15 }
 0xd76   : > { %2563 = vpow2.f32 %v1451_v16 }
 0xd77   : > { %2565 = vpow2.f32 %v1455_v17 }
 0xd78   : > { %v1470_v24 = vpop.permute.xlu0 %1469 }
 0xd79   : > { %v1474_v27 = vrot.slane %v1470_v24, %v3223_v22 }
 0xd7b   : > { %vm1475_vm15 = vcmp.eq.s32.totalorder %v1474_v27, 1 }
 0xd82   : > { %v2562_v19 = vpop.eup %2561 }
 0xd83   : > { %v2564_v20 = vpop.eup %2563 }
 0xd84   : > { %v1453_v21 = vadd.f32 %v2564_v20, %v2562_v19  ;;  %v2566_v45 = vpop.eup %2565 }
 0xd86   : > { %v1457_v23 = vadd.f32 %v2566_v45, %v1453_v21 }
 0xd88   : > { %2567 = vlog2.f32 %v1457_v23 }
 0xd95   : > { %v2568_v25 = vpop.eup %2567 }
 0xd96   : > { %v1459_v26 = vmul.f32 0.6931472, %v2568_v25  ;;  %v1579_v25 = vstv %s1578_s12 }
 0xd97   : > { %vm1580_vm6 = vcmp.lt.f32.partialorder %v1579_v25, %v3340_v42 }
 0xd98   : > { %v1460_v28 = vadd.f32 %v1459_v26, %v1446_v11  ;;  %v1537_v26 = vld [vmem:[#allocation4 + $0x15] sm:$0x1]  ;;  %v1581_v29 = vsel %vm1580_vm6, 1, %v2902_v38 }
 0xd9a   : > { %v1462_v31 = vadd.f32 %v1461_v30, %v1460_v28 }
 0xd9c   : > { %v1476_v32 = vsel %vm1475_vm15, %v1462_v31, %v1438_v4 }
 0xd9d   : > { %1480 = vrot.lane.b32.xlu0 %v1476_v32, %s2904_s13  ;;  %1477 = vrot.lane.b32.xlu1 %v1476_v32, %s2903_s6 }
 0xda1   : > { %1507 = vperm.xlu1 %2402, %v1505_v33  }
 0xe0f   : > { %v1481_v34 = vpop.permute.xlu0 %1480  ;;  %v1478_v35 = vpop.permute.xlu1 %1477 }
 0xe10   : > { %v1479_v36 = vsel %vm709_vm1, %v1478_v35, -1e+30  ;;  %v1482_v39 = vsel %vm706_vm2, %v1481_v34, -1e+30 }
 0xe11   : > { %v1483_v37 = vmax.f32 %v1476_v32, %v1479_v36 }
 0xe13   : > { %v1484_v40 = vmax.f32 %v1483_v37, %v1482_v39 }
 0xe15   : > { %v1485_v41 = vsub.f32 %v1476_v32, %v1484_v40  ;;  %v1488_v43 = vsub.f32 %v1479_v36, %v1484_v40  ;;  %v1492_v46 = vsub.f32 %v1482_v39, %v1484_v40 }
 0xe17   : > { %v1486_v44 = vmul.f32 1.442695, %v1485_v41  ;;  %v1489_v47 = vmul.f32 1.442695, %v1488_v43  ;;  %v1493_v48 = vmul.f32 1.442695, %v1492_v46 }
 0xe19   : > { %2569 = vpow2.f32 %v1486_v44 }
 0xe1a   : > { %2571 = vpow2.f32 %v1489_v47 }
 0xe1b   : > { %2573 = vpow2.f32 %v1493_v48 }
 0xe1c   : > { %v1508_v54 = vpop.permute.xlu1 %1507 }
 0xe1d   : > { %v1512_v57 = vrot.slane %v1508_v54, %v3223_v22 }
 0xe1f   : > { %vm1513_vm3 = vcmp.eq.s32.totalorder %v1512_v57, 1 }
 0xe26   : > { %v2570_v49 = vpop.eup %2569 }
 0xe27   : > { %v2572_v50 = vpop.eup %2571 }
 0xe28   : > { %v1491_v51 = vadd.f32 %v2572_v50, %v2570_v49  ;;  %v2574_v52 = vpop.eup %2573 }
 0xe2a   : > { %v1495_v53 = vadd.f32 %v2574_v52, %v1491_v51 }
 0xe2c   : > { %2575 = vlog2.f32 %v1495_v53 }
 0xe39   : > { %v2576_v55 = vpop.eup %2575 }
 0xe3a   : > { %v1497_v56 = vmul.f32 0.6931472, %v2576_v55  ;;  %v1617_v55 = vstv %s1616_s9  ;;  %s1806_s9 = scvt.s32.f32 %s1805_s27 }
 0xe3b   : > { %vm1618_vm8 = vcmp.lt.f32.partialorder %v1617_v55, %v3340_v42 }
 0xe3c   : > { %v1498_v58 = vadd.f32 %v1497_v56, %v1484_v40  ;;  %v1575_v56 = vld [vmem:[#allocation4 + $0x16] sm:$0x1]  ;;  %v1619_v59 = vsel %vm1618_vm8, 1, %v2902_v38 }
 0xe3e   : > { %v1500_v63 = vadd.f32 %v1499_v61, %v1498_v58 }
 0xe40   : > { %v1514_v0 = vsel %vm1513_vm3, %v1500_v63, %v1476_v32 }
 0xe41   : > { %1518 = vrot.lane.b32.xlu1 %v1514_v0, %s2904_s13  ;;  %1515 = vrot.lane.b32.xlu0 %v1514_v0, %s2903_s6 }
 0xe45   : > { %1545 = vperm.xlu0 %2403, %v1543_v1  }
 0xeb3   : > { %v1519_v2 = vpop.permute.xlu1 %1518  ;;  %v1516_v3 = vpop.permute.xlu0 %1515 }
 0xeb4   : > { %v1517_v4 = vsel %vm709_vm1, %v1516_v3, -1e+30  ;;  %v1520_v6 = vsel %vm706_vm2, %v1519_v2, -1e+30 }
 0xeb5   : > { %v1521_v5 = vmax.f32 %v1514_v0, %v1517_v4 }
 0xeb7   : > { %v1522_v7 = vmax.f32 %v1521_v5, %v1520_v6 }
 0xeb9   : > { %v1523_v8 = vsub.f32 %v1514_v0, %v1522_v7  ;;  %v1526_v9 = vsub.f32 %v1517_v4, %v1522_v7  ;;  %v1530_v10 = vsub.f32 %v1520_v6, %v1522_v7 }
 0xebb   : > { %v1524_v11 = vmul.f32 1.442695, %v1523_v8  ;;  %v1527_v12 = vmul.f32 1.442695, %v1526_v9  ;;  %v1531_v13 = vmul.f32 1.442695, %v1530_v10 }
 0xebd   : > { %2577 = vpow2.f32 %v1524_v11 }
 0xebe   : > { %2579 = vpow2.f32 %v1527_v12 }
 0xebf   : > { %2581 = vpow2.f32 %v1531_v13 }
 0xec0   : > { %v1546_v20 = vpop.permute.xlu0 %1545 }
 0xec1   : > { %v1550_v23 = vrot.slane %v1546_v20, %v3223_v22 }
 0xec3   : > { %vm1551_vm5 = vcmp.eq.s32.totalorder %v1550_v23, 1 }
 0xeca   : > { %v2578_v14 = vpop.eup %2577 }
 0xecb   : > { %v2580_v15 = vpop.eup %2579 }
 0xecc   : > { %v1529_v16 = vadd.f32 %v2580_v15, %v2578_v14  ;;  %v2582_v17 = vpop.eup %2581 }
 0xece   : > { %v1533_v19 = vadd.f32 %v2582_v17, %v1529_v16 }
 0xed0   : > { %2583 = vlog2.f32 %v1533_v19 }
 0xedd   : > { %v2584_v21 = vpop.eup %2583 }
 0xede   : > { %v1535_v45 = vmul.f32 0.6931472, %v2584_v21  ;;  %v1655_v21 = vstv %s1654_s19  ;;  %s1844_s19 = scvt.s32.f32 %s1843_s10 }
 0xedf   : > { %vm1656_vm10 = vcmp.lt.f32.partialorder %v1655_v21, %v3340_v42 }
 0xee0   : > { %v1536_v24 = vadd.f32 %v1535_v45, %v1522_v7  ;;  %v1613_v45 = vld [vmem:[#allocation4 + $0x17] sm:$0x1]  ;;  %v1657_v25 = vsel %vm1656_vm10, 1, %v2902_v38 }
 0xee2   : > { %v1538_v27 = vadd.f32 %v1537_v26, %v1536_v24 }
 0xee4   : > { %v1552_v28 = vsel %vm1551_vm5, %v1538_v27, %v1514_v0 }
 0xee5   : > { %1556 = vrot.lane.b32.xlu0 %v1552_v28, %s2904_s13  ;;  %1553 = vrot.lane.b32.xlu1 %v1552_v28, %s2903_s6 }
 0xee9   : > { %1583 = vperm.xlu1 %2402, %v1581_v29  }
 0xf57   : > { %v1557_v30 = vpop.permute.xlu0 %1556  ;;  %v1554_v31 = vpop.permute.xlu1 %1553 }
 0xf58   : > { %v1555_v32 = vsel %vm709_vm1, %v1554_v31, -1e+30  ;;  %v1558_v34 = vsel %vm706_vm2, %v1557_v30, -1e+30 }
 0xf59   : > { %v1559_v33 = vmax.f32 %v1552_v28, %v1555_v32 }
 0xf5b   : > { %v1560_v35 = vmax.f32 %v1559_v33, %v1558_v34 }
 0xf5d   : > { %v1561_v36 = vsub.f32 %v1552_v28, %v1560_v35  ;;  %v1564_v37 = vsub.f32 %v1555_v32, %v1560_v35  ;;  %v1568_v39 = vsub.f32 %v1558_v34, %v1560_v35 }
 0xf5f   : > { %v1562_v40 = vmul.f32 1.442695, %v1561_v36  ;;  %v1565_v41 = vmul.f32 1.442695, %v1564_v37  ;;  %v1569_v43 = vmul.f32 1.442695, %v1568_v39 }
 0xf61   : > { %2585 = vpow2.f32 %v1562_v40 }
 0xf62   : > { %2587 = vpow2.f32 %v1565_v41 }
 0xf63   : > { %2589 = vpow2.f32 %v1569_v43 }
 0xf64   : > { %v1584_v50 = vpop.permute.xlu1 %1583 }
 0xf65   : > { %v1588_v53 = vrot.slane %v1584_v50, %v3223_v22 }
 0xf67   : > { %vm1589_vm7 = vcmp.eq.s32.totalorder %v1588_v53, 1 }
 0xf6e   : > { %v2586_v46 = vpop.eup %2585 }
 0xf6f   : > { %v2588_v44 = vpop.eup %2587 }
 0xf70   : > { %v1567_v47 = vadd.f32 %v2588_v44, %v2586_v46  ;;  %v2590_v48 = vpop.eup %2589 }
 0xf72   : > { %v1571_v49 = vadd.f32 %v2590_v48, %v1567_v47 }
 0xf74   : > { %2591 = vlog2.f32 %v1571_v49 }
 0xf81   : > { %v2592_v51 = vpop.eup %2591 }
 0xf82   : > { %v1573_v52 = vmul.f32 0.6931472, %v2592_v51  ;;  %v1693_v51 = vstv %s1692_s14  ;;  %s1882_s14 = scvt.s32.f32 %s1881_s22 }
 0xf83   : > { %vm1694_vm12 = vcmp.lt.f32.partialorder %v1693_v51, %v3340_v42 }
 0xf84   : > { %v1574_v54 = vadd.f32 %v1573_v52, %v1560_v35  ;;  %v1651_v52 = vld [vmem:[#allocation4 + $0x18] sm:$0x1]  ;;  %v1695_v55 = vsel %vm1694_vm12, 1, %v2902_v38 }
 0xf86   : > { %v1576_v57 = vadd.f32 %v1575_v56, %v1574_v54 }
 0xf88   : > { %v1590_v58 = vsel %vm1589_vm7, %v1576_v57, %v1552_v28 }
 0xf89   : > { %1594 = vrot.lane.b32.xlu1 %v1590_v58, %s2904_s13  ;;  %1591 = vrot.lane.b32.xlu0 %v1590_v58, %s2903_s6 }
 0xf8d   : > { %1621 = vperm.xlu0 %2403, %v1619_v59  }
 0xffb   : > { %v1595_v61 = vpop.permute.xlu1 %1594  ;;  %v1592_v63 = vpop.permute.xlu0 %1591 }
 0xffc   : > { %v1593_v0 = vsel %vm709_vm1, %v1592_v63, -1e+30  ;;  %v1596_v2 = vsel %vm706_vm2, %v1595_v61, -1e+30 }
 0xffd   : > { %v1597_v1 = vmax.f32 %v1590_v58, %v1593_v0 }
 0xfff   : > { %v1598_v3 = vmax.f32 %v1597_v1, %v1596_v2 }
0x1001   : > { %v1599_v4 = vsub.f32 %v1590_v58, %v1598_v3  ;;  %v1602_v5 = vsub.f32 %v1593_v0, %v1598_v3  ;;  %v1606_v6 = vsub.f32 %v1596_v2, %v1598_v3 }
0x1003   : > { %v1600_v7 = vmul.f32 1.442695, %v1599_v4  ;;  %v1603_v8 = vmul.f32 1.442695, %v1602_v5  ;;  %v1607_v9 = vmul.f32 1.442695, %v1606_v6 }
0x1005   : > { %2593 = vpow2.f32 %v1600_v7 }
0x1006   : > { %2595 = vpow2.f32 %v1603_v8 }
0x1007   : > { %2597 = vpow2.f32 %v1607_v9 }
0x1008   : > { %v1622_v15 = vpop.permute.xlu0 %1621 }
0x1009   : > { %v1626_v19 = vrot.slane %v1622_v15, %v3223_v22  ;;  %v1731_v15 = vstv %s1730_s16  ;;  %s1920_s16 = scvt.s32.f32 %s1919_s17 }
0x100b   : > { %vm1627_vm9 = vcmp.eq.s32.totalorder %v1626_v19, 1  ;;  %v3486_v19 = vld [vmem:[%s3152_s7] sm:$0x1]  ;;  %s1767_s7 = sadd.s32 27, %s3183_s1 }
0x100c   : > { %vm1732_vm14 = vcmp.lt.f32.partialorder %v1731_v15, %v3486_v19  ;;  %s1768_s12 = scvt.s32.f32 %s1767_s7 }
0x100d   : > { %v1733_v21 = vsel %vm1732_vm14, 1, %v2902_v38 }
0x1012   : > { %v2594_v10 = vpop.eup %2593 }
0x1013   : > { %v2596_v11 = vpop.eup %2595 }
0x1014   : > { %v1605_v12 = vadd.f32 %v2596_v11, %v2594_v10  ;;  %v2598_v13 = vpop.eup %2597 }
0x1016   : > { %v1609_v14 = vadd.f32 %v2598_v13, %v1605_v12 }
0x1018   : > { %2599 = vlog2.f32 %v1609_v14 }
0x1025   : > { %v2600_v16 = vpop.eup %2599 }
0x1026   : > { %v1611_v17 = vmul.f32 0.6931472, %v2600_v16  ;;  %v1689_v16 = vld [vmem:[#allocation4 + $0x19] sm:$0x1] }
0x1028   : > { %v1612_v20 = vadd.f32 %v1611_v17, %v1598_v3 }
0x102a   : > { %v1614_v23 = vadd.f32 %v1613_v45, %v1612_v20 }
0x102c   : > { %v1628_v24 = vsel %vm1627_vm9, %v1614_v23, %v1590_v58 }
0x102d   : > { %1632 = vrot.lane.b32.xlu0 %v1628_v24, %s2904_s13  ;;  %1629 = vrot.lane.b32.xlu1 %v1628_v24, %s2903_s6 }
0x1031   : > { %1659 = vperm.xlu1 %2402, %v1657_v25  }
0x109f   : > { %v1633_v26 = vpop.permute.xlu0 %1632  ;;  %v1630_v27 = vpop.permute.xlu1 %1629 }
0x10a0   : > { %v1631_v28 = vsel %vm709_vm1, %v1630_v27, -1e+30  ;;  %v1634_v30 = vsel %vm706_vm2, %v1633_v26, -1e+30 }
0x10a1   : > { %v1635_v29 = vmax.f32 %v1628_v24, %v1631_v28 }
0x10a3   : > { %v1636_v31 = vmax.f32 %v1635_v29, %v1634_v30 }
0x10a5   : > { %v1637_v32 = vsub.f32 %v1628_v24, %v1636_v31  ;;  %v1640_v33 = vsub.f32 %v1631_v28, %v1636_v31  ;;  %v1644_v34 = vsub.f32 %v1634_v30, %v1636_v31 }
0x10a7   : > { %v1638_v35 = vmul.f32 1.442695, %v1637_v32  ;;  %v1641_v36 = vmul.f32 1.442695, %v1640_v33  ;;  %v1645_v37 = vmul.f32 1.442695, %v1644_v34 }
0x10a9   : > { %2601 = vpow2.f32 %v1638_v35 }
0x10aa   : > { %2603 = vpow2.f32 %v1641_v36 }
0x10ab   : > { %2605 = vpow2.f32 %v1645_v37 }
0x10ac   : > { %v1660_v44 = vpop.permute.xlu1 %1659 }
0x10ad   : > { %v1664_v49 = vrot.slane %v1660_v44, %v3223_v22 }
0x10af   : > { %vm1665_vm11 = vcmp.eq.s32.totalorder %v1664_v49, 1 }
0x10b6   : > { %v2602_v39 = vpop.eup %2601 }
0x10b7   : > { %v2604_v40 = vpop.eup %2603 }
0x10b8   : > { %v1643_v41 = vadd.f32 %v2604_v40, %v2602_v39  ;;  %v2606_v43 = vpop.eup %2605 }
0x10ba   : > { %v1647_v46 = vadd.f32 %v2606_v43, %v1643_v41 }
0x10bc   : > { %2607 = vlog2.f32 %v1647_v46 }
0x10c9   : > { %v2608_v47 = vpop.eup %2607 }
0x10ca   : > { %v1649_v48 = vmul.f32 0.6931472, %v2608_v47  ;;  %v1769_v47 = vstv %s1768_s12 }
0x10cb   : > { %vm1770_vm0 = vcmp.lt.f32.partialorder %v1769_v47, %v3486_v19 }
0x10cc   : > { %v1650_v50 = vadd.f32 %v1649_v48, %v1636_v31  ;;  %v1727_v48 = vld [vmem:[#allocation4 + $0x1a] sm:$0x1]  ;;  %v1771_v51 = vsel %vm1770_vm0, 1, %v2902_v38 }
0x10ce   : > { %v1652_v53 = vadd.f32 %v1651_v52, %v1650_v50 }
0x10d0   : > { %v1666_v54 = vsel %vm1665_vm11, %v1652_v53, %v1628_v24 }
0x10d1   : > { %1670 = vrot.lane.b32.xlu1 %v1666_v54, %s2904_s13  ;;  %1667 = vrot.lane.b32.xlu0 %v1666_v54, %s2903_s6 }
0x10d5   : > { %1697 = vperm.xlu0 %2403, %v1695_v55  }
0x1143   : > { %v1671_v56 = vpop.permute.xlu1 %1670  ;;  %v1668_v57 = vpop.permute.xlu0 %1667 }
0x1144   : > { %v1669_v58 = vsel %vm709_vm1, %v1668_v57, -1e+30  ;;  %v1672_v61 = vsel %vm706_vm2, %v1671_v56, -1e+30 }
0x1145   : > { %v1673_v59 = vmax.f32 %v1666_v54, %v1669_v58 }
0x1147   : > { %v1674_v63 = vmax.f32 %v1673_v59, %v1672_v61 }
0x1149   : > { %v1675_v42 = vsub.f32 %v1666_v54, %v1674_v63  ;;  %v1678_v0 = vsub.f32 %v1669_v58, %v1674_v63  ;;  %v1682_v1 = vsub.f32 %v1672_v61, %v1674_v63 }
0x114b   : > { %v1676_v2 = vmul.f32 1.442695, %v1675_v42  ;;  %v1679_v3 = vmul.f32 1.442695, %v1678_v0  ;;  %v1683_v4 = vmul.f32 1.442695, %v1682_v1 }
0x114d   : > { %2609 = vpow2.f32 %v1676_v2 }
0x114e   : > { %2611 = vpow2.f32 %v1679_v3 }
0x114f   : > { %2613 = vpow2.f32 %v1683_v4 }
0x1150   : > { %v1698_v10 = vpop.permute.xlu0 %1697 }
0x1151   : > { %v1702_v13 = vrot.slane %v1698_v10, %v3223_v22 }
0x1153   : > { %vm1703_vm13 = vcmp.eq.s32.totalorder %v1702_v13, 1 }
0x115a   : > { %v2610_v5 = vpop.eup %2609 }
0x115b   : > { %v2612_v6 = vpop.eup %2611 }
0x115c   : > { %v1681_v7 = vadd.f32 %v2612_v6, %v2610_v5  ;;  %v2614_v8 = vpop.eup %2613 }
0x115e   : > { %v1685_v9 = vadd.f32 %v2614_v8, %v1681_v7 }
0x1160   : > { %2615 = vlog2.f32 %v1685_v9 }
0x116d   : > { %v2616_v11 = vpop.eup %2615 }
0x116e   : > { %v1687_v12 = vmul.f32 0.6931472, %v2616_v11  ;;  %v1807_v11 = vstv %s1806_s9 }
0x116f   : > { %vm1808_vm4 = vcmp.lt.f32.partialorder %v1807_v11, %v3486_v19 }
0x1170   : > { %v1688_v14 = vadd.f32 %v1687_v12, %v1674_v63  ;;  %v1765_v12 = vld [vmem:[#allocation4 + $0x1b] sm:$0x1]  ;;  %v1809_v15 = vsel %vm1808_vm4, 1, %v2902_v38 }
0x1172   : > { %v1690_v17 = vadd.f32 %v1689_v16, %v1688_v14 }
0x1174   : > { %v1704_v20 = vsel %vm1703_vm13, %v1690_v17, %v1666_v54 }
0x1175   : > { %1708 = vrot.lane.b32.xlu0 %v1704_v20, %s2904_s13  ;;  %1705 = vrot.lane.b32.xlu1 %v1704_v20, %s2903_s6 }
0x1179   : > { %1735 = vperm.xlu1 %2402, %v1733_v21  }
0x11e7   : > { %v1709_v45 = vpop.permute.xlu0 %1708  ;;  %v1706_v23 = vpop.permute.xlu1 %1705 }
0x11e8   : > { %v1707_v24 = vsel %vm709_vm1, %v1706_v23, -1e+30  ;;  %v1710_v26 = vsel %vm706_vm2, %v1709_v45, -1e+30 }
0x11e9   : > { %v1711_v25 = vmax.f32 %v1704_v20, %v1707_v24 }
0x11eb   : > { %v1712_v27 = vmax.f32 %v1711_v25, %v1710_v26 }
0x11ed   : > { %v1713_v28 = vsub.f32 %v1704_v20, %v1712_v27  ;;  %v1716_v29 = vsub.f32 %v1707_v24, %v1712_v27  ;;  %v1720_v30 = vsub.f32 %v1710_v26, %v1712_v27 }
0x11ef   : > { %v1714_v31 = vmul.f32 1.442695, %v1713_v28  ;;  %v1717_v32 = vmul.f32 1.442695, %v1716_v29  ;;  %v1721_v33 = vmul.f32 1.442695, %v1720_v30 }
0x11f1   : > { %2617 = vpow2.f32 %v1714_v31 }
0x11f2   : > { %2619 = vpow2.f32 %v1717_v32 }
0x11f3   : > { %2621 = vpow2.f32 %v1721_v33 }
0x11f4   : > { %v1736_v40 = vpop.permute.xlu1 %1735 }
0x11f5   : > { %v1740_v46 = vrot.slane %v1736_v40, %v3223_v22 }
0x11f7   : > { %vm1741_vm15 = vcmp.eq.s32.totalorder %v1740_v46, 1 }
0x11fe   : > { %v2618_v34 = vpop.eup %2617 }
0x11ff   : > { %v2620_v35 = vpop.eup %2619 }
0x1200   : > { %v1719_v36 = vadd.f32 %v2620_v35, %v2618_v34  ;;  %v2622_v37 = vpop.eup %2621 }
0x1202   : > { %v1723_v39 = vadd.f32 %v2622_v37, %v1719_v36 }
0x1204   : > { %2623 = vlog2.f32 %v1723_v39 }
0x1211   : > { %v2624_v41 = vpop.eup %2623 }
0x1212   : > { %v1725_v43 = vmul.f32 0.6931472, %v2624_v41  ;;  %v1845_v41 = vstv %s1844_s19 }
0x1213   : > { %vm1846_vm6 = vcmp.lt.f32.partialorder %v1845_v41, %v3486_v19  ;;  %v516_v41 = vadd.s32 24, %v3218_v18 }
0x1214   : > { %v1726_v44 = vadd.f32 %v1725_v43, %v1712_v27  ;;  %v1803_v43 = vld [vmem:[#allocation4 + $0x1c] sm:$0x1]  ;;  %v1847_v47 = vsel %vm1846_vm6, 1, %v2902_v38 }
0x1216   : > { %v1728_v49 = vadd.f32 %v1727_v48, %v1726_v44 }
0x1218   : > { %v1742_v50 = vsel %vm1741_vm15, %v1728_v49, %v1704_v20 }
0x1219   : > { %1746 = vrot.lane.b32.xlu1 %v1742_v50, %s2904_s13  ;;  %1743 = vrot.lane.b32.xlu0 %v1742_v50, %s2903_s6 }
0x121d   : > { %1773 = vperm.xlu0 %2403, %v1771_v51  }
0x128b   : > { %v1747_v52 = vpop.permute.xlu1 %1746  ;;  %v1744_v53 = vpop.permute.xlu0 %1743 }
0x128c   : > { %v1745_v54 = vsel %vm709_vm1, %v1744_v53, -1e+30  ;;  %v1748_v56 = vsel %vm706_vm2, %v1747_v52, -1e+30 }
0x128d   : > { %v1749_v55 = vmax.f32 %v1742_v50, %v1745_v54 }
0x128f   : > { %v1750_v57 = vmax.f32 %v1749_v55, %v1748_v56 }
0x1291   : > { %v1751_v58 = vsub.f32 %v1742_v50, %v1750_v57  ;;  %v1754_v59 = vsub.f32 %v1745_v54, %v1750_v57  ;;  %v1758_v61 = vsub.f32 %v1748_v56, %v1750_v57 }
0x1293   : > { %v1752_v63 = vmul.f32 1.442695, %v1751_v58  ;;  %v1755_v42 = vmul.f32 1.442695, %v1754_v59  ;;  %v1759_v0 = vmul.f32 1.442695, %v1758_v61 }
0x1295   : > { %2625 = vpow2.f32 %v1752_v63 }
0x1296   : > { %2627 = vpow2.f32 %v1755_v42 }
0x1297   : > { %2629 = vpow2.f32 %v1759_v0 }
0x1298   : > { %v1774_v6 = vpop.permute.xlu0 %1773 }
0x1299   : > { %v1778_v9 = vrot.slane %v1774_v6, %v3223_v22 }
0x129b   : > { %vm1779_vm3 = vcmp.eq.s32.totalorder %v1778_v9, 1 }
0x12a2   : > { %v2626_v1 = vpop.eup %2625 }
0x12a3   : > { %v2628_v2 = vpop.eup %2627 }
0x12a4   : > { %v1757_v3 = vadd.f32 %v2628_v2, %v2626_v1  ;;  %v2630_v4 = vpop.eup %2629 }
0x12a6   : > { %v1761_v5 = vadd.f32 %v2630_v4, %v1757_v3 }
0x12a8   : > { %2631 = vlog2.f32 %v1761_v5 }
0x12b5   : > { %v2632_v7 = vpop.eup %2631 }
0x12b6   : > { %v1763_v8 = vmul.f32 0.6931472, %v2632_v7  ;;  %v1883_v7 = vstv %s1882_s14 }
0x12b7   : > { %vm1884_vm8 = vcmp.lt.f32.partialorder %v1883_v7, %v3486_v19 }
0x12b8   : > { %v1764_v10 = vadd.f32 %v1763_v8, %v1750_v57  ;;  %v1841_v8 = vld [vmem:[#allocation4 + $0x1d] sm:$0x1]  ;;  %v1885_v11 = vsel %vm1884_vm8, 1, %v2902_v38 }
0x12ba   : > { %v1766_v13 = vadd.f32 %v1765_v12, %v1764_v10 }
0x12bc   : > { %v1780_v14 = vsel %vm1779_vm3, %v1766_v13, %v1742_v50 }
0x12bd   : > { %1784 = vrot.lane.b32.xlu0 %v1780_v14, %s2904_s13  ;;  %1781 = vrot.lane.b32.xlu1 %v1780_v14, %s2903_s6 }
0x12c1   : > { %1811 = vperm.xlu1 %2402, %v1809_v15  }
0x132f   : > { %v1785_v16 = vpop.permute.xlu0 %1784  ;;  %v1782_v17 = vpop.permute.xlu1 %1781 }
0x1330   : > { %v1783_v20 = vsel %vm709_vm1, %v1782_v17, -1e+30  ;;  %v1786_v45 = vsel %vm706_vm2, %v1785_v16, -1e+30 }
0x1331   : > { %v1787_v21 = vmax.f32 %v1780_v14, %v1783_v20 }
0x1333   : > { %v1788_v23 = vmax.f32 %v1787_v21, %v1786_v45 }
0x1335   : > { %v1789_v24 = vsub.f32 %v1780_v14, %v1788_v23  ;;  %v1792_v25 = vsub.f32 %v1783_v20, %v1788_v23  ;;  %v1796_v26 = vsub.f32 %v1786_v45, %v1788_v23 }
0x1337   : > { %v1790_v27 = vmul.f32 1.442695, %v1789_v24  ;;  %v1793_v28 = vmul.f32 1.442695, %v1792_v25  ;;  %v1797_v29 = vmul.f32 1.442695, %v1796_v26 }
0x1339   : > { %2633 = vpow2.f32 %v1790_v27 }
0x133a   : > { %2635 = vpow2.f32 %v1793_v28 }
0x133b   : > { %2637 = vpow2.f32 %v1797_v29 }
0x133c   : > { %v1812_v35 = vpop.permute.xlu1 %1811 }
0x133d   : > { %v1816_v39 = vrot.slane %v1812_v35, %v3223_v22 }
0x133f   : > { %vm1817_vm5 = vcmp.eq.s32.totalorder %v1816_v39, 1 }
0x1346   : > { %v2634_v30 = vpop.eup %2633 }
0x1347   : > { %v2636_v31 = vpop.eup %2635 }
0x1348   : > { %v1795_v32 = vadd.f32 %v2636_v31, %v2634_v30  ;;  %v2638_v33 = vpop.eup %2637  ;;  %v514_v31 = vadd.s32 8, %v3218_v18 }
0x134a   : > { %v1799_v34 = vadd.f32 %v2638_v33, %v1795_v32  ;;  %v517_v32 = vstv %s3183_s1  ;;  %v515_v33 = vadd.s32 16, %v3218_v18 }
0x134b   : > { %v519_v35 = vadd.s32 %v517_v32, %v514_v31 }
0x134c   : > { %2639 = vlog2.f32 %v1799_v34  ;;  %v518_v34 = vadd.s32 %v517_v32, %v3218_v18 }
0x134e   : > { %v522_v39 = vcvt.s32.f32 %v518_v34 }
0x1359   : > { %v2640_v36 = vpop.eup %2639 }
0x135a   : > { %v1801_v37 = vmul.f32 0.6931472, %v2640_v36  ;;  %v520_v36 = vadd.s32 %v517_v32, %v515_v33 }
0x135c   : > { %v1802_v40 = vadd.f32 %v1801_v37, %v1788_v23  ;;  %v530_v37 = vrot.slane %v3486_v19, %v3223_v22 }
0x135e   : > { %v1804_v46 = vadd.f32 %v1803_v43, %v1802_v40  ;;  %v523_v40 = vcvt.s32.f32 %v519_v35  ;;  %vm532_vm9 = vcmp.lt.f32.partialorder %v522_v39, %v530_v37 }
0x1360   : > { %v1818_v44 = vsel %vm1817_vm5, %v1804_v46, %v1780_v14  ;;  %vm533_vm10 = vcmp.lt.f32.partialorder %v523_v40, %v530_v37 }
0x1361   : > { %1822 = vrot.lane.b32.xlu1 %v1818_v44, %s2904_s13  ;;  %1819 = vrot.lane.b32.xlu0 %v1818_v44, %s2903_s6 }
0x1365   : > { %1849 = vperm.xlu0 %2403, %v1847_v47   ;;  %v524_v47 = vcvt.s32.f32 %v520_v36 }
0x1367   : > { %vm534_vm12 = vcmp.lt.f32.partialorder %v524_v47, %v530_v37 }
0x13d3   : > { %v1823_v48 = vpop.permute.xlu1 %1822  ;;  %v1820_v49 = vpop.permute.xlu0 %1819 }
0x13d4   : > { %v1821_v50 = vsel %vm709_vm1, %v1820_v49, -1e+30  ;;  %v1824_v52 = vsel %vm706_vm2, %v1823_v48, -1e+30  ;;  %v521_v49 = vadd.s32 %v517_v32, %v516_v41 }
0x13d5   : > { %v1825_v51 = vmax.f32 %v1818_v44, %v1821_v50 }
0x13d6   : > { %v525_v18 = vcvt.s32.f32 %v521_v49 }
0x13d7   : > { %v1826_v53 = vmax.f32 %v1825_v51, %v1824_v52  ;;  %v1879_v51 = vld [vmem:[#allocation4 + $0x1e] sm:$0x1] }
0x13d8   : > { %vm535_vm14 = vcmp.lt.f32.partialorder %v525_v18, %v530_v37 }
0x13d9   : > { %v1827_v54 = vsub.f32 %v1818_v44, %v1826_v53  ;;  %v1830_v55 = vsub.f32 %v1821_v50, %v1826_v53  ;;  %v1834_v56 = vsub.f32 %v1824_v52, %v1826_v53 }
0x13db   : > { %v1828_v57 = vmul.f32 1.442695, %v1827_v54  ;;  %v1831_v58 = vmul.f32 1.442695, %v1830_v55  ;;  %v1835_v59 = vmul.f32 1.442695, %v1834_v56 }
0x13dd   : > { %2641 = vpow2.f32 %v1828_v57  ;;  %v1921_v57 = vstv %s1920_s16 }
0x13de   : > { %2643 = vpow2.f32 %v1831_v58  ;;  %vm1922_vm13 = vcmp.lt.f32.partialorder %v1921_v57, %v3486_v19 }
0x13df   : > { %2645 = vpow2.f32 %v1835_v59 }
0x13e0   : > { %v1850_v2 = vpop.permute.xlu0 %1849 }
0x13e1   : > { %v1854_v5 = vrot.slane %v1850_v2, %v3223_v22 }
0x13e3   : > { %vm1855_vm7 = vcmp.eq.s32.totalorder %v1854_v5, 1  ;;  %v2679_v5 = vld [vmem:[%s3114_s18 + $0x18] sm:$0xff] }
0x13ea   : > { %v2642_v61 = vpop.eup %2641 }
0x13eb   : > { %v2644_v63 = vpop.eup %2643 }
0x13ec   : > { %v1833_v42 = vadd.f32 %v2644_v63, %v2642_v61  ;;  %v2646_v0 = vpop.eup %2645  ;;  %v1923_v61 = vsel %vm1922_vm13, 1, %v2902_v38 }
0x13ee   : > { %v1837_v1 = vadd.f32 %v2646_v0, %v1833_v42  ;;  %v2676_v42 = vld [vmem:[%s3114_s18] sm:$0xff] }
0x13ef   : > { %v544_v0 = vmul.f32 1.442695, %v2676_v42 }
0x13f0   : > { %2647 = vlog2.f32 %v1837_v1  ;;  %v2677_v1 = vld [vmem:[%s3114_s18 + $0x8] sm:$0xff] }
0x13f1   : > { %v546_v2 = vmul.f32 1.442695, %v2677_v1 }
0x13fd   : > { %v2648_v3 = vpop.eup %2647 }
0x13fe   : > { %v1839_v4 = vmul.f32 0.6931472, %v2648_v3  ;;  %v2678_v3 = vld [vmem:[%s3114_s18 + $0x10] sm:$0xff] }
0x1400   : > { %v1840_v6 = vadd.f32 %v1839_v4, %v1826_v53  ;;  %v2906_v53 = vmov 0.0   ;;  %v548_v4 = vmul.f32 1.442695, %v2678_v3 }
0x1401   : > { %v2181_v54 = vsel %vm532_vm9, 1.0, %v2906_v53  ;;  %v2182_v55 = vsel %vm533_vm10, 1.0, %v2906_v53  ;;  %v2183_v59 = vsel %vm534_vm12, 1.0, %v2906_v53  ;;  %v2184_v63 = vsel %vm535_vm14, 1.0, %v2906_v53 }
0x1402   : > { %v1842_v9 = vadd.f32 %v1841_v8, %v1840_v6  ;;  %v2404_v58 = vpack.i.bf16 %v2182_v55, %v2181_v54  ;;  %v550_v6 = vmul.f32 1.442695, %v2679_v5  ;;  %v1917_v54 = vld [vmem:[#allocation4 + $0x1f] sm:$0x1] }
0x1404   : > { %v1856_v10 = vsel %vm1855_vm7, %v1842_v9, %v1818_v44 }
0x1405   : > { %1860 = vrot.lane.b32.xlu0 %v1856_v10, %s2904_s13  ;;  %1857 = vrot.lane.b32.xlu1 %v1856_v10, %s2903_s6 }
0x1409   : > { %1887 = vperm.xlu1 %2402, %v1885_v11  }
0x1477   : > { %v1861_v12 = vpop.permute.xlu0 %1860  ;;  %v1858_v13 = vpop.permute.xlu1 %1857 }
0x1478   : > { %v1859_v14 = vsel %vm709_vm1, %v1858_v13, -1e+30  ;;  %v1862_v16 = vsel %vm706_vm2, %v1861_v12, -1e+30 }
0x1479   : > { %v1863_v15 = vmax.f32 %v1856_v10, %v1859_v14 }
0x147b   : > { %v1864_v17 = vmax.f32 %v1863_v15, %v1862_v16 }
0x147d   : > { %v1865_v20 = vsub.f32 %v1856_v10, %v1864_v17  ;;  %v1868_v21 = vsub.f32 %v1859_v14, %v1864_v17  ;;  %v1872_v45 = vsub.f32 %v1862_v16, %v1864_v17 }
0x147f   : > { %v1866_v23 = vmul.f32 1.442695, %v1865_v20  ;;  %v1869_v24 = vmul.f32 1.442695, %v1868_v21  ;;  %v1873_v25 = vmul.f32 1.442695, %v1872_v45 }
0x1481   : > { %2649 = vpow2.f32 %v1866_v23 }
0x1482   : > { %2651 = vpow2.f32 %v1869_v24 }
0x1483   : > { %2653 = vpow2.f32 %v1873_v25 }
0x1484   : > { %v1888_v43 = vpop.permute.xlu1 %1887 }
0x1485   : > { %v1892_v48 = vrot.slane %v1888_v43, %v3223_v22 }
0x1487   : > { %vm1893_vm11 = vcmp.eq.s32.totalorder %v1892_v48, 1 }
0x148e   : > { %v2650_v26 = vpop.eup %2649 }
0x148f   : > { %v2652_v27 = vpop.eup %2651 }
0x1490   : > { %v1871_v28 = vadd.f32 %v2652_v27, %v2650_v26  ;;  %v2654_v29 = vpop.eup %2653 }
0x1492   : > { %v1875_v30 = vadd.f32 %v2654_v29, %v1871_v28 }
0x1494   : > { %2655 = vlog2.f32 %v1875_v30 }
0x1495   : > { %2657 = vpow2.f32 %v544_v0 }
0x1496   : > { %2659 = vpow2.f32 %v546_v2 }
0x1497   : > { %2661 = vpow2.f32 %v548_v4 }
0x1498   : > { %2663 = vpow2.f32 %v550_v6 }
0x14a1   : > { %v2656_v46 = vpop.eup %2655 }
0x14a2   : > { %v1877_v44 = vmul.f32 0.6931472, %v2656_v46 }
0x14a4   : > { %v1878_v50 = vadd.f32 %v1877_v44, %v1864_v17  ;;  %v2658_v17 = vpop.eup %2657  ;;  %v576_v44 = vld [vmem:[%s3158_s5] sm:$0x1] }
0x14a5   : > { %v2660_v60 = vpop.eup %2659 }
0x14a6   : > { %v1880_v52 = vadd.f32 %v1879_v51, %v1878_v50  ;;  %v2662_v23 = vpop.eup %2661 }
0x14a7   : > { %v2664_v26 = vpop.eup %2663 }
0x14a8   : > { %v3545_v56 = vsel %vm1893_vm11, %v1880_v52, %v1856_v10 }
0x14a9   : > { %1898 = vrot.lane.b32.xlu1 %v3545_v56, %s2904_s13  ;;  %1895 = vrot.lane.b32.xlu0 %v3545_v56, %s2903_s6 }
0x14ad   : > { %564 = vperm.xlu1 %2402, %v2183_v59   ;;  %2405 = vperm.xlu0 %2403, %v2404_v58  }
0x14b1   : > { %1925 = vperm.xlu1 %2402, %v1923_v61   ;;  %569 = vperm.xlu0 %2403, %v2184_v63  }
0x151b   : > { %v1899_v19 = vpop.permute.xlu1 %1898  ;;  %v1896_v7 = vpop.permute.xlu0 %1895 }
0x151c   : > { %v1897_v8 = vsel %vm709_vm1, %v1896_v7, -1e+30  ;;  %v1900_v9 = vsel %vm706_vm2, %v1899_v19, -1e+30 }
0x151d   : > { %v1901_v38 = vmax.f32 %v3545_v56, %v1897_v8 }
0x151f   : > { %v1902_v10 = vmax.f32 %v1901_v38, %v1900_v9 }
0x1521   : > { %v1903_v11 = vsub.f32 %v3545_v56, %v1902_v10  ;;  %v1906_v12 = vsub.f32 %v1897_v8, %v1902_v10  ;;  %v1910_v13 = vsub.f32 %v1900_v9, %v1902_v10 }
0x1523   : > { %v1904_v14 = vmul.f32 1.442695, %v1903_v11  ;;  %v1907_v15 = vmul.f32 1.442695, %v1906_v12  ;;  %v1911_v16 = vmul.f32 1.442695, %v1910_v13 }
0x1525   : > { %2665 = vpow2.f32 %v1904_v14 }
0x1526   : > { %2667 = vpow2.f32 %v1907_v15 }
0x1527   : > { %2669 = vpow2.f32 %v1911_v16 }
0x1528   : > { %v2406_v20 = vpop.permute.xlu0 %2405  ;;  %v565_v62 = vpop.permute.xlu1 %564 }
0x1529   : > { %v2408_v21 = vunpack.i.h.bf16 %v2406_v20  ;;  %v2407_v45 = vunpack.i.l.bf16 %v2406_v20  ;;  %v574_v28 = vmul.f32 %v2662_v23, %v565_v62 }
0x152b   : > { %v573_v24 = vmul.f32 %v2660_v60, %v2408_v21  ;;  %v572_v25 = vmul.f32 %v2658_v17, %v2407_v45 }
0x152c   : > { %v570_v27 = vpop.permute.xlu0 %569  ;;  %v1926_v49 = vpop.permute.xlu1 %1925 }
0x152d   : > { %v577_v29 = vadd.f32 %v573_v24, %v572_v25  ;;  %v575_v30 = vmul.f32 %v2664_v26, %v570_v27  ;;  %v1930_v52 = vrot.slane %v1926_v49, %v3223_v22 }
0x152f   : > { %v578_v31 = vadd.f32 %v577_v29, %v574_v28  ;;  %vm1931_vm1 = vcmp.eq.s32.totalorder %v1930_v52, 1 }
0x1531   : > { %v579_v32 = vadd.f32 %v578_v31, %v575_v30 }
0x1532   : > { %v2666_v33 = vpop.eup %2665 }
0x1533   : > { %v2668_v34 = vpop.eup %2667  ;;  %v580_v35 = vrot.slane %v579_v32, 4 }
0x1534   : > { %v1909_v36 = vadd.f32 %v2668_v34, %v2666_v33  ;;  %v2670_v37 = vpop.eup %2669 }
0x1535   : > { %v581_v39 = vadd.f32 %v580_v35, %v579_v32 }
0x1536   : > { %v1913_v40 = vadd.f32 %v2670_v37, %v1909_v36 }
0x1537   : > { %v582_v41 = vrot.slane %v581_v39, 2 }
0x1538   : > { %2671 = vlog2.f32 %v1913_v40 }
0x1539   : > { %v583_v43 = vadd.f32 %v582_v41, %v581_v39 }
0x153b   : > { %v584_v46 = vrot.slane %v583_v43, 1 }
0x153d   : > { %v585_v47 = vadd.f32 %v584_v46, %v583_v43 }
0x153f   : > { %v587_v48 = vadd.f32 %v585_v47, %v576_v44 }
0x1541   : > { %588 = vst [vmem:[%s3158_s5] sm:$0x1] %v587_v48 }
0x1545   : > { %v2672_v50 = vpop.eup %2671 }
0x1546   : > { %v1915_v51 = vmul.f32 0.6931472, %v2672_v50 }
0x1548   : > { %v1916_v53 = vadd.f32 %v1915_v51, %v1902_v10 }
0x1549   : > { %1937 = sbr.rel (%p2186_p13) target bundleno = 5776 (0x1690), region = 60 }
0x154a   : > { %v1918_v55 = vadd.f32 %v1917_v54, %v1916_v53 }
0x154c   : > { %v1932_v18 = vsel %vm1931_vm1, %v1918_v55, %v3545_v56 }
0x154d   : > { %1933 = vst [vmem:[#allocation3] sm:$0x1] %v1932_v18 }
0x154e   : > { %v1938_v57 = vld [vmem:[%s409_s21] sm:$0x1]  ;;  %vm1941_vm2 = vcmask 1040384  }
0x154f   : > { %vm1939_vm15 = vcmp.gt.f32.partialorder %v1938_v57, 0.0 }
0x1550   : > { %v1940_v58 = vsel %vm1939_vm15, %v1932_v18, -1e+30 }
0x1551   : > { %v1942_v22 = vsel %vm1941_vm2, %v1940_v58, -inf }
0x1552   : > { %1943 = vmax.xlane.f32.xlu0 %v1942_v22 }
0x15db   : > { %v1944_v59 = vpop.xlane.xlu0 %1943 }
0x15dc   : > { %v1945_v61 = vsub.f32 %v1940_v58, %v1944_v59 }
0x15de   : > { %v1946_v63 = vmul.f32 1.442695, %v1945_v61 }
0x15e0   : > { %2680 = vpow2.f32 %v1946_v63 }
0x15ed   : > { %v2681_v56 = vpop.eup %2680 }
0x15ee   : > { %v1948_v42 = vmul.f32 %v2681_v56, %v1938_v57 }
0x15f0   : > { %v1949_v0 = vsel %vm1941_vm2, %v1948_v42, 0.0 }
0x15f1   : > { %1950 = vadd.xlane.f32.xlu0 %v1949_v0 }
0x167a   : > { %v1951_v1 = vpop.xlane.xlu0 %1950 }
0x167b   : > { %2682 = vlog2.f32 %v1951_v1 }
0x1688   : > { %v2683_v2 = vpop.eup %2682 }
0x1689   : > { %v1953_v3 = vmul.f32 0.6931472, %v2683_v2 }
0x168b   : > { %v1954_v4 = vadd.f32 %v1953_v3, %v1944_v59 }
0x168d   : > { %v1955_v5 = vsub.f32 0.0, %v1954_v4 }
0x168f   : > { %1956 = vst [vmem:[%s3155_s29] sm:$0x1] %v1955_v5 }
0x1690 PF: > { %s2187_s30 = sshll.u32 %s2882_s8, 4  ;;  %s3692_s13 = sld [smem:[#allocation27_spill]] }
0x1691   : > { %s1974_s12 = sshll.u32 %s3155_s29, 4  ;;  %s1958_s27 = scalar_lea.sflag [#allocation7], %s3121_s0  ;;  %s1975_s12 = int_to_ptr.vmem [resolvable:$true] %s1974_s12 }
0x1692   : > { %s2740_s9 = scalar_lea.vmem %s1975_s12, 16  ;;  %p3693_p5 = scmp.ne.s32.totalorder %s3685_s15, 0 }
0x1693   : > { %p2741_p4 = scmp.ne.s32.totalorder %s1975_s12, %s2740_s9  ;;  %s2907_s10 = smov [#allocation10]  }
0x1694   : > { %s2744_s19 = sshll.u32 %s2907_s10, 4  ;;  %s2745_s19 = int_to_ptr.vmem [resolvable:$false] %s2744_s19 }
0x1695   : > { %p2742_p7 = pnand %p2741_p4, %p3693_p5  ;;  %s2746_s22 = scalar_lea.vmem %s2745_s19, 32 }
0x1696   : > { %s1972_s7 = scalar_lea.hbm %s3692_s13, %s2187_s30  ;;  %p2747_p10 = scmp.lt.s32.totalorder %s1975_s12, %s2745_s19 }
0x1697   : > { %p2743_p2 = pneg %p2742_p7  ;;  %p2748_p11 = scmp.lt.s32.totalorder %s2746_s22, %s2740_s9 }
0x1699   : > { %p2749_p8 = por %p2748_p11, %p2747_p10 }
0x169b   : > { %p2750_p0 = pnand %p2749_p8, %p2743_p2 }
0x169d   : > { %2753 = shalt.err (!%p2750_p0)
}
0x169e   : > { %s2754_s14 = scalar_lea.hbm %s1972_s7, 16  ;;  %s2758_s16 = scalar_lea.hbm %s3692_s13, 32 }
0x169f   : > { %p2755_p1 = scmp.ne.s32.totalorder %s1972_s7, %s2754_s14  ;;  %p2759_p9 = scmp.lt.s32.totalorder %s1972_s7, %s3692_s13 }
0x16a0   : > { %p2760_p12 = scmp.lt.s32.totalorder %s2758_s16, %s2754_s14 }
0x16a1   : > { %p2756_p3 = pnand %p2755_p1, %p3693_p5 }
0x16a2   : > { %p2761_p13 = por %p2760_p12, %p2759_p9 }
0x16a3   : > { %p2757_p6 = pneg %p2756_p3 }
0x16a5   : > { %p2762_p4 = pnand %p2761_p13, %p2757_p6 }
0x16a7   : > { %2765 = shalt.err (!%p2762_p4)
}
0x16a8   : > { %2285 = dma.vmem_to_hbm [thread:$0]  (%p3693_p5), %s1975_s12, 16, %s1972_s7, %s1958_s27  }
0x16a9   : > { %s3694_s21 = sld [smem:[#allocation28_spill]]  ;;  %s1987_s10 = sshll.u32 %s3158_s5, 4  ;;  %s1988_s10 = int_to_ptr.vmem [resolvable:$true] %s1987_s10 }
0x16aa   : > { %s1962_s19 = scalar_lea.sflag [#allocation12], %s3121_s0  ;;  %s2766_s22 = scalar_lea.vmem %s1988_s10, 16 }
0x16ab   : > { %p2767_p7 = scmp.ne.s32.totalorder %s1988_s10, %s2766_s22  ;;  %s2908_s14 = smov [#allocation11]  }
0x16ac   : > { %s2770_s29 = sshll.u32 %s2908_s14, 4  ;;  %s2771_s29 = int_to_ptr.vmem [resolvable:$false] %s2770_s29 }
0x16ad   : > { %p2768_p2 = pnand %p2767_p7, %p3693_p5  ;;  %s2772_s17 = scalar_lea.vmem %s2771_s29, 32 }
0x16ae   : > { %p2773_p11 = scmp.lt.s32.totalorder %s1988_s10, %s2771_s29  ;;  %p2774_p8 = scmp.lt.s32.totalorder %s2772_s17, %s2766_s22 }
0x16af   : > { %s1985_s9 = scalar_lea.hbm %s3694_s21, %s2187_s30  ;;  %p2769_p10 = pneg %p2768_p2 }
0x16b0   : > { %p2775_p0 = por %p2774_p8, %p2773_p11 }
0x16b2   : > { %p2776_p1 = pnand %p2775_p0, %p2769_p10 }
0x16b4   : > { %2779 = shalt.err (!%p2776_p1)
}
0x16b5   : > { %s2780_s8 = scalar_lea.hbm %s1985_s9, 16  ;;  %s2784_s30 = scalar_lea.hbm %s3694_s21, 32 }
0x16b6   : > { %p2781_p3 = scmp.ne.s32.totalorder %s1985_s9, %s2780_s8  ;;  %p2785_p12 = scmp.lt.s32.totalorder %s1985_s9, %s3694_s21 }
0x16b7   : > { %p2786_p13 = scmp.lt.s32.totalorder %s2784_s30, %s2780_s8 }
0x16b8   : > { %p2782_p6 = pnand %p2781_p3, %p3693_p5 }
0x16b9   : > { %p2787_p4 = por %p2786_p13, %p2785_p12 }
0x16ba   : > { %p2783_p9 = pneg %p2782_p6 }
0x16bc   : > { %p2788_p7 = pnand %p2787_p4, %p2783_p9 }
0x16be   : > { %2791 = shalt.err (!%p2788_p7)
}
0x16bf   : > { %2286 = dma.vmem_to_hbm [thread:$0]  (%p3693_p5), %s1988_s10, 16, %s1985_s9, %s1962_s19  }
0x16c0 PF: > { %p2304_p2 = scmp.ge.s32.totalorder %s2894_s11, 2  ;;  %s1999_s27 = sand.u32 1, %s2854_s24  }
0x16c1   : > { %p3695_p10 = scmp.ne.s32.totalorder %s3686_s20, 0  ;;  %s2000_s16 = scalar_lea.sflag [#allocation7], %s1999_s27 }
0x16c3   : > { %p2297_p11 = pnand %p2304_p2, %p3695_p10 }
0x16c5   : > { %p2298_p8 = pneg %p2297_p11 }
0x16c7   : > { %2845 = dma.done.wait (%p2298_p8), %s2000_s16, 16  }
0x16c8   : > { %2847 = vsyncadd (%p2298_p8), %s2000_s16, 4294967280  ;;  %s2008_s18 = scalar_lea.sflag [#allocation12], %s1999_s27 }
0x16c9   : > { %2849 = dma.done.wait (%p2298_p8), %s2008_s18, 16  }
0x16ca   : > { %2851 = vsyncadd (%p2298_p8), %s2008_s18, 4294967280  ;;  %s30_s11 = sadd.s32 1, %s2894_s11   ;;  %s3696_s15 = sld [smem:[#allocation17_spill]] }
0x16cb   : > { %p27_p0 = scmp.ge.s32.totalorder %s30_s11, 6   ;;  %s3697_s29 = sld [smem:[#allocation22_spill]] }
0x16cc   : > { %s3698_s30 = sld [smem:[#allocation18_spill]]  ;;  %s3702_s24 = smov %s2858_s25 }
0x16cd   : > { %s3699_s8 = sld [smem:[#allocation19_spill]]  ;;  %s3703_s25 = smov %s2862_s26 }
0x16ce   : > { %s3700_s9 = sld [smem:[#allocation20_spill]]  ;;  %s3704_s26 = smov %s3072_s4 }
0x16cf   : > { %s3701_s10 = sld [smem:[#allocation21_spill]]  ;;  %s3705_s27 = smov %s2870_s28 }
0x16d0   : > { %s3706_s28 = smov %s3696_s15  ;;  %29 = sbr.rel (!%p27_p0) target bundleno = 20 (0x14), region = 139 }
0x16d5   :  { %2012 = vsyncpa [#allocation6], 1 }
0x16d6   :  { %2014 = vsyncpa [#allocation6 + $0x1], 1 }
0x16d7   :  { %2015 = vsyncpa [#allocation9], 1 }
0x16d8   :  { %2017 = vsyncpa [#allocation9 + $0x1], 1 }
0x16d9   :  { %2018 = vsyncpa [#allocation7], 1 }
0x16da   :  { %2020 = vsyncpa [#allocation7 + $0x1], 1 }
0x16db   :  { %2021 = vsyncpa [#allocation12], 1 }
0x16dc   :  { %2023 = vsyncpa [#allocation12 + $0x1], 1 }

</bundles_post_ra>
